<compile_context>
chip_gen: v5e
topology: v5e:2x2
jax: 0.10.0
libtpu: 0.0.40
codegen_flags: <defaults>
</compile_context>

<pallas_src>
import functools

import jax
import jax.numpy as jnp
from jax.experimental import pallas as pl
from jax.experimental.pallas import tpu as pltpu

INPUT_SIZE = 1260
N_LABELS = 2
LAYER_SIZES = [INPUT_SIZE, 512, 256, 128, 64, 32, N_LABELS]

# Lane-dense packed layer widths: 64 / 32 / 2-wide layers are zero-padded to a
# full 128-lane vreg so every intermediate activation stays lane-dense.
PADDED_SIZES = [INPUT_SIZE, 512, 256, 128, 128, 128, 128]
PAD_OUT = PADDED_SIZES[-1]          # logits live in the first N_LABELS lanes
DEFAULT_BLOCK_ROWS = 512            # batch rows per grid step (feeds the MXU)


def _round_up(x, m):
    return (x + m - 1) // m * m


def _has_bf16_vpu():
    """True on chips with a native bf16 VPU (v6e / v7x); False -> safe f32 path."""
    try:
        kind = jax.devices()[0].device_kind.lower()
    except Exception:
        return False
    return ("v6" in kind) or ("v7" in kind)


def _mlp_kernel(x_ref,
                w1_ref, b1_ref, w2_ref, b2_ref, w3_ref, b3_ref,
                w4_ref, b4_ref, w5_ref, b5_ref, w6_ref, b6_ref,
                o_ref, *, bf16_epilogue):
    """Fused MLP on one (TB, 1260) row tile.

    x is cast to bf16 in VMEM (no extra HBM pass), matmuls are bf16-in /
    f32-accumulate on the MXU, bias add stays f32 for accuracy, ReLU runs in
    bf16 on bf16-VPU chips (numerically identical: max/round commute).
    """
    h = x_ref[...].astype(jnp.bfloat16)              # (TB, 1260) bf16
    hidden = ((w1_ref, b1_ref), (w2_ref, b2_ref), (w3_ref, b3_ref),
              (w4_ref, b4_ref), (w5_ref, b5_ref))
    for w_ref, b_ref in hidden:
        acc = jnp.dot(h, w_ref[...], preferred_element_type=jnp.float32)
        acc = acc + b_ref[...]                       # f32 bias add
        if bf16_epilogue:
            # max(bf16(x), 0) == bf16(max(x, 0)); halves vreg traffic on v6e/v7x.
            h = jnp.maximum(acc.astype(jnp.bfloat16), 0.0)
        else:
            h = jnp.maximum(acc, 0.0).astype(jnp.bfloat16)
    out = jnp.dot(h, w6_ref[...], preferred_element_type=jnp.float32) + b6_ref[...]
    o_ref[...] = out                                 # f32, lane-dense (TB, 128)


def pack_params(params):
    """One-time padding + dtype conversion of the weights (off the hot path).

    params: list of (W, b) with W shaped (in_features, out_features), b (1, out).
    Returns list of (W_bf16_padded, b_f32_padded) with PADDED_SIZES widths.
    """
    # TODO(synk): on v7x the dominant layer-1 weight could be stored as fp8 for
    # up to ~2x on its matmul; not applied here (keeps bf16 on all generations).
    packed = []
    for li, (w, b) in enumerate(params):
        fi, fo = PADDED_SIZES[li], PADDED_SIZES[li + 1]
        wp = jnp.zeros((fi, fo), jnp.bfloat16)
        wp = wp.at[:w.shape[0], :w.shape[1]].set(w.astype(jnp.bfloat16))
        bp = jnp.zeros((1, fo), jnp.float32)
        bp = bp.at[:, :b.shape[1]].set(b.astype(jnp.float32))
        packed.append((wp, bp))
    return packed


def marvin_organizer_forward(x, packed_params, *, block_rows=DEFAULT_BLOCK_ROWS,
                             bf16_epilogue=None):
    """Pallas forward pass of MarvinOrganizer (logits only, like torch forward)."""
    batch, feat = x.shape
    assert feat == INPUT_SIZE
    if bf16_epilogue is None:
        bf16_epilogue = _has_bf16_vpu()

    # Row tile: multiple of 16 (bf16 sublane packing of the intermediates), as
    # large as block_rows, but capped at ceil(batch/2) so the "parallel" batch
    # axis keeps >= 2 grid steps for v7x's two TensorCores.
    half = _round_up((batch + 1) // 2, 16)
    tb = max(8, min(block_rows, half, _round_up(batch, 8)))
    grid = (pl.cdiv(batch, tb),)                      # partial last block is masked

    x = x.astype(jnp.float32)                         # mirrors torch .to(float32)

    flat_inputs = [x]
    in_specs = [pl.BlockSpec((tb, INPUT_SIZE), lambda i: (i, 0))]

    flops = 0
    bytes_accessed = batch * INPUT_SIZE * 4 + batch * PAD_OUT * 4
    for wp, bp in packed_params:
        fi, fo = wp.shape
        flat_inputs += [wp, bp]
        # Weights/biases: block index is always (0, 0) -> VMEM-resident, only
        # the x / out row tiles actually stream across grid steps.
        in_specs += [pl.BlockSpec((fi, fo), lambda i: (0, 0)),
                     pl.BlockSpec((1, fo), lambda i: (0, 0))]
        flops += 2 * batch * fi * fo
        bytes_accessed += wp.size * 2 + bp.size * 4

    kernel = functools.partial(_mlp_kernel, bf16_epilogue=bf16_epilogue)
    out_padded = pl.pallas_call(
        kernel,
        out_shape=jax.ShapeDtypeStruct((batch, PAD_OUT), jnp.float32),
        grid=grid,
        in_specs=in_specs,
        out_specs=pl.BlockSpec((tb, PAD_OUT), lambda i: (i, 0)),
        compiler_params=pltpu.CompilerParams(
            dimension_semantics=("parallel",),        # megacore on v7x
            vmem_limit_bytes=32 << 20,                # ~2 MB weights + tiles, ample headroom
        ),
        cost_estimate=pl.CostEstimate(
            flops=flops, transcendentals=0, bytes_accessed=bytes_accessed),
    )(*flat_inputs)

    return out_padded[:, :N_LABELS]


def init_params(key):
    """Deterministic PyTorch-nn.Linear-style init (uniform +-1/sqrt(fan_in))."""
    params = []
    for i in range(len(LAYER_SIZES) - 1):
        fan_in, fan_out = LAYER_SIZES[i], LAYER_SIZES[i + 1]
        key, kw, kb = jax.random.split(key, 3)
        bound = 1.0 / jnp.sqrt(float(fan_in))
        # Stored as (in, out) so the kernel computes x @ W + b (== torch y = x W^T + b).
        w = jax.random.uniform(kw, (fan_in, fan_out), jnp.float32, -bound, bound)
        b = jax.random.uniform(kb, (1, fan_out), jnp.float32, -bound, bound)
        params.append((w, b))
    return params


def reference_forward(x, params):
    """Pure-JAX reference mirroring the kernel's numerics (bf16 operands, f32 accum)."""
    h = x.astype(jnp.bfloat16).astype(jnp.float32)
    for i, (w, b) in enumerate(params):
        wq = w.astype(jnp.bfloat16).astype(jnp.float32)
        h = jnp.dot(h, wq, preferred_element_type=jnp.float32) + b
        if i < len(params) - 1:
            h = jnp.maximum(h, 0.0).astype(jnp.bfloat16).astype(jnp.float32)
    return h


if __name__ == "__main__":
    raw_params = init_params(jax.random.PRNGKey(0))
    packed_params = pack_params(raw_params)          # one-time pad+cast, off the hot path

    key = jax.random.PRNGKey(0)

    # Small deterministic check (single grid step, exact tile).
    key, kx = jax.random.split(key)
    x = jax.random.normal(kx, (8, INPUT_SIZE), jnp.float32)
    out = jax.block_until_ready(marvin_organizer_forward(x, packed_params))
    ref = reference_forward(x, raw_params)
    assert out.shape == (8, N_LABELS)
    assert jnp.allclose(out, ref, atol=2e-3, rtol=2e-3)

    # Larger batch: two "parallel" grid steps of 256 rows (both TCs busy on v7x).
    key, kx2 = jax.random.split(key)
    x2 = jax.random.normal(kx2, (512, INPUT_SIZE), jnp.float32)
    out2 = jax.block_until_ready(marvin_organizer_forward(x2, packed_params))
    ref2 = reference_forward(x2, raw_params)
    assert out2.shape == (512, N_LABELS)
    assert jnp.allclose(out2, ref2, atol=2e-3, rtol=2e-3)

    # Ragged batch: exercises partial-block masking on the last row tile.
    key, kx3 = jax.random.split(key)
    x3 = jax.random.normal(kx3, (40, INPUT_SIZE), jnp.float32)
    out3 = jax.block_until_ready(marvin_organizer_forward(x3, packed_params))
    ref3 = reference_forward(x3, raw_params)
    assert out3.shape == (40, N_LABELS)
    assert jnp.allclose(out3, ref3, atol=2e-3, rtol=2e-3)

    # TODO(synk): training loop / softmax-argmax predict() / file-parsing and
    # text-embedding utilities are host-side PyTorch plumbing, not translated.
    print("KERNEL_OK")
</pallas_src>

<mosaic_0001>
module attributes {stable_mosaic.version = 11 : i64} {
  func.func @_mlp_kernel(%arg0: i32, %arg1: memref<8x1260xf32, #tpu.memory_space<vmem>>, %arg2: memref<1260x512xbf16, #tpu.memory_space<vmem>>, %arg3: memref<1x512xf32, #tpu.memory_space<vmem>>, %arg4: memref<512x256xbf16, #tpu.memory_space<vmem>>, %arg5: memref<1x256xf32, #tpu.memory_space<vmem>>, %arg6: memref<256x128xbf16, #tpu.memory_space<vmem>>, %arg7: memref<1x128xf32, #tpu.memory_space<vmem>>, %arg8: memref<128x128xbf16, #tpu.memory_space<vmem>>, %arg9: memref<1x128xf32, #tpu.memory_space<vmem>>, %arg10: memref<128x128xbf16, #tpu.memory_space<vmem>>, %arg11: memref<1x128xf32, #tpu.memory_space<vmem>>, %arg12: memref<128x128xbf16, #tpu.memory_space<vmem>>, %arg13: memref<1x128xf32, #tpu.memory_space<vmem>>, %arg14: memref<8x128xf32, #tpu.memory_space<vmem>>) attributes {dimension_semantics = [#tpu.dimension_semantics<parallel>], iteration_bounds = array<i64: 1>, scalar_prefetch = 0 : i64, scratch_operands = 0 : i64, tpu.core_type = #tpu.core_type<tc>, window_params = [{transform_indices = @transform_0, window_bounds = array<i64: 8, 1260>}, {pipeline_mode = #tpu.pipeline_mode<synchronous>, transform_indices = @transform_1, window_bounds = array<i64: 1260, 512>}, {pipeline_mode = #tpu.pipeline_mode<synchronous>, transform_indices = @transform_2, window_bounds = array<i64: 1, 512>}, {pipeline_mode = #tpu.pipeline_mode<synchronous>, transform_indices = @transform_3, window_bounds = array<i64: 512, 256>}, {pipeline_mode = #tpu.pipeline_mode<synchronous>, transform_indices = @transform_4, window_bounds = array<i64: 1, 256>}, {pipeline_mode = #tpu.pipeline_mode<synchronous>, transform_indices = @transform_5, window_bounds = array<i64: 256, 128>}, {pipeline_mode = #tpu.pipeline_mode<synchronous>, transform_indices = @transform_6, window_bounds = array<i64: 1, 128>}, {pipeline_mode = #tpu.pipeline_mode<synchronous>, transform_indices = @transform_7, window_bounds = array<i64: 128, 128>}, {pipeline_mode = #tpu.pipeline_mode<synchronous>, transform_indices = @transform_8, window_bounds = array<i64: 1, 128>}, {pipeline_mode = #tpu.pipeline_mode<synchronous>, transform_indices = @transform_9, window_bounds = array<i64: 128, 128>}, {pipeline_mode = #tpu.pipeline_mode<synchronous>, transform_indices = @transform_10, window_bounds = array<i64: 1, 128>}, {pipeline_mode = #tpu.pipeline_mode<synchronous>, transform_indices = @transform_11, window_bounds = array<i64: 128, 128>}, {pipeline_mode = #tpu.pipeline_mode<synchronous>, transform_indices = @transform_12, window_bounds = array<i64: 1, 128>}, {transform_indices = @transform_13, window_bounds = array<i64: 8, 128>}]} {
    %c0 = arith.constant 0 : index
    %c0_0 = arith.constant 0 : index
    %0 = vector.load %arg1[%c0, %c0_0] : memref<8x1260xf32, #tpu.memory_space<vmem>>, vector<8x1260xf32>
    %1 = arith.truncf %0 : vector<8x1260xf32> to vector<8x1260xbf16>
    %c0_1 = arith.constant 0 : index
    %c0_2 = arith.constant 0 : index
    %2 = vector.load %arg2[%c0_1, %c0_2] : memref<1260x512xbf16, #tpu.memory_space<vmem>>, vector<1260x512xbf16>
    %cst = arith.constant dense<0.000000e+00> : vector<8x512xf32>
    %3 = tpu.matmul %1, %2, %cst {dimension_numbers = #tpu.dot_dimension_numbers<[1], [0], [0], [1], [0, 0, 1, 1], [], []>} : vector<8x1260xbf16>, vector<1260x512xbf16>, vector<8x512xf32> -> vector<8x512xf32>
    %c0_3 = arith.constant 0 : index
    %c0_4 = arith.constant 0 : index
    %4 = vector.load %arg3[%c0_3, %c0_4] : memref<1x512xf32, #tpu.memory_space<vmem>>, vector<1x512xf32>
    %5 = vector.broadcast %4 : vector<1x512xf32> to vector<8x512xf32>
    %6 = arith.addf %3, %5 : vector<8x512xf32>
    %cst_5 = arith.constant 0.000000e+00 : f32
    %7 = vector.broadcast %cst_5 : f32 to vector<8x512xf32>
    %8 = arith.maximumf %6, %7 : vector<8x512xf32>
    %9 = arith.truncf %8 : vector<8x512xf32> to vector<8x512xbf16>
    %c0_6 = arith.constant 0 : index
    %c0_7 = arith.constant 0 : index
    %10 = vector.load %arg4[%c0_6, %c0_7] : memref<512x256xbf16, #tpu.memory_space<vmem>>, vector<512x256xbf16>
    %cst_8 = arith.constant dense<0.000000e+00> : vector<8x256xf32>
    %11 = tpu.matmul %9, %10, %cst_8 {dimension_numbers = #tpu.dot_dimension_numbers<[1], [0], [0], [1], [0, 0, 1, 1], [], []>} : vector<8x512xbf16>, vector<512x256xbf16>, vector<8x256xf32> -> vector<8x256xf32>
    %c0_9 = arith.constant 0 : index
    %c0_10 = arith.constant 0 : index
    %12 = vector.load %arg5[%c0_9, %c0_10] : memref<1x256xf32, #tpu.memory_space<vmem>>, vector<1x256xf32>
    %13 = vector.broadcast %12 : vector<1x256xf32> to vector<8x256xf32>
    %14 = arith.addf %11, %13 : vector<8x256xf32>
    %cst_11 = arith.constant 0.000000e+00 : f32
    %15 = vector.broadcast %cst_11 : f32 to vector<8x256xf32>
    %16 = arith.maximumf %14, %15 : vector<8x256xf32>
    %17 = arith.truncf %16 : vector<8x256xf32> to vector<8x256xbf16>
    %c0_12 = arith.constant 0 : index
    %c0_13 = arith.constant 0 : index
    %18 = vector.load %arg6[%c0_12, %c0_13] : memref<256x128xbf16, #tpu.memory_space<vmem>>, vector<256x128xbf16>
    %cst_14 = arith.constant dense<0.000000e+00> : vector<8x128xf32>
    %19 = tpu.matmul %17, %18, %cst_14 {dimension_numbers = #tpu.dot_dimension_numbers<[1], [0], [0], [1], [0, 0, 1, 1], [], []>} : vector<8x256xbf16>, vector<256x128xbf16>, vector<8x128xf32> -> vector<8x128xf32>
    %c0_15 = arith.constant 0 : index
    %c0_16 = arith.constant 0 : index
    %20 = vector.load %arg7[%c0_15, %c0_16] : memref<1x128xf32, #tpu.memory_space<vmem>>, vector<1x128xf32>
    %21 = vector.broadcast %20 : vector<1x128xf32> to vector<8x128xf32>
    %22 = arith.addf %19, %21 : vector<8x128xf32>
    %cst_17 = arith.constant 0.000000e+00 : f32
    %23 = vector.broadcast %cst_17 : f32 to vector<8x128xf32>
    %24 = arith.maximumf %22, %23 : vector<8x128xf32>
    %25 = arith.truncf %24 : vector<8x128xf32> to vector<8x128xbf16>
    %c0_18 = arith.constant 0 : index
    %c0_19 = arith.constant 0 : index
    %26 = vector.load %arg8[%c0_18, %c0_19] : memref<128x128xbf16, #tpu.memory_space<vmem>>, vector<128x128xbf16>
    %cst_20 = arith.constant dense<0.000000e+00> : vector<8x128xf32>
    %27 = tpu.matmul %25, %26, %cst_20 {dimension_numbers = #tpu.dot_dimension_numbers<[1], [0], [0], [1], [0, 0, 1, 1], [], []>} : vector<8x128xbf16>, vector<128x128xbf16>, vector<8x128xf32> -> vector<8x128xf32>
    %c0_21 = arith.constant 0 : index
    %c0_22 = arith.constant 0 : index
    %28 = vector.load %arg9[%c0_21, %c0_22] : memref<1x128xf32, #tpu.memory_space<vmem>>, vector<1x128xf32>
    %29 = vector.broadcast %28 : vector<1x128xf32> to vector<8x128xf32>
    %30 = arith.addf %27, %29 : vector<8x128xf32>
    %cst_23 = arith.constant 0.000000e+00 : f32
    %31 = vector.broadcast %cst_23 : f32 to vector<8x128xf32>
    %32 = arith.maximumf %30, %31 : vector<8x128xf32>
    %33 = arith.truncf %32 : vector<8x128xf32> to vector<8x128xbf16>
    %c0_24 = arith.constant 0 : index
    %c0_25 = arith.constant 0 : index
    %34 = vector.load %arg10[%c0_24, %c0_25] : memref<128x128xbf16, #tpu.memory_space<vmem>>, vector<128x128xbf16>
    %cst_26 = arith.constant dense<0.000000e+00> : vector<8x128xf32>
    %35 = tpu.matmul %33, %34, %cst_26 {dimension_numbers = #tpu.dot_dimension_numbers<[1], [0], [0], [1], [0, 0, 1, 1], [], []>} : vector<8x128xbf16>, vector<128x128xbf16>, vector<8x128xf32> -> vector<8x128xf32>
    %c0_27 = arith.constant 0 : index
    %c0_28 = arith.constant 0 : index
    %36 = vector.load %arg11[%c0_27, %c0_28] : memref<1x128xf32, #tpu.memory_space<vmem>>, vector<1x128xf32>
    %37 = vector.broadcast %36 : vector<1x128xf32> to vector<8x128xf32>
    %38 = arith.addf %35, %37 : vector<8x128xf32>
    %cst_29 = arith.constant 0.000000e+00 : f32
    %39 = vector.broadcast %cst_29 : f32 to vector<8x128xf32>
    %40 = arith.maximumf %38, %39 : vector<8x128xf32>
    %41 = arith.truncf %40 : vector<8x128xf32> to vector<8x128xbf16>
    %c0_30 = arith.constant 0 : index
    %c0_31 = arith.constant 0 : index
    %42 = vector.load %arg12[%c0_30, %c0_31] : memref<128x128xbf16, #tpu.memory_space<vmem>>, vector<128x128xbf16>
    %cst_32 = arith.constant dense<0.000000e+00> : vector<8x128xf32>
    %43 = tpu.matmul %41, %42, %cst_32 {dimension_numbers = #tpu.dot_dimension_numbers<[1], [0], [0], [1], [0, 0, 1, 1], [], []>} : vector<8x128xbf16>, vector<128x128xbf16>, vector<8x128xf32> -> vector<8x128xf32>
    %c0_33 = arith.constant 0 : index
    %c0_34 = arith.constant 0 : index
    %44 = vector.load %arg13[%c0_33, %c0_34] : memref<1x128xf32, #tpu.memory_space<vmem>>, vector<1x128xf32>
    %45 = vector.broadcast %44 : vector<1x128xf32> to vector<8x128xf32>
    %46 = arith.addf %43, %45 : vector<8x128xf32>
    %c0_35 = arith.constant 0 : index
    %c0_36 = arith.constant 0 : index
    %47 = vector.load %arg14[%c0_35, %c0_36] : memref<8x128xf32, #tpu.memory_space<vmem>>, vector<8x128xf32>
    tpu.vector_store %arg14[%c0_35, %c0_36], %46 {strides = array<i32>} : memref<8x128xf32, #tpu.memory_space<vmem>>, vector<8x128xf32>,
    return
  }
  func.func @transform_0(%arg0: i32) -> (i32, i32) {
    %c0_i32 = arith.constant 0 : i32
    %c0_i32_0 = arith.constant 0 : i32
    return %arg0, %c0_i32 : i32, i32
  }
  func.func @transform_1(%arg0: i32) -> (i32, i32) {
    %c0_i32 = arith.constant 0 : i32
    %c0_i32_0 = arith.constant 0 : i32
    %c0_i32_1 = arith.constant 0 : i32
    return %c0_i32, %c0_i32_0 : i32, i32
  }
  func.func @transform_2(%arg0: i32) -> (i32, i32) {
    %c0_i32 = arith.constant 0 : i32
    %c0_i32_0 = arith.constant 0 : i32
    %c0_i32_1 = arith.constant 0 : i32
    return %c0_i32, %c0_i32_0 : i32, i32
  }
  func.func @transform_3(%arg0: i32) -> (i32, i32) {
    %c0_i32 = arith.constant 0 : i32
    %c0_i32_0 = arith.constant 0 : i32
    %c0_i32_1 = arith.constant 0 : i32
    return %c0_i32, %c0_i32_0 : i32, i32
  }
  func.func @transform_4(%arg0: i32) -> (i32, i32) {
    %c0_i32 = arith.constant 0 : i32
    %c0_i32_0 = arith.constant 0 : i32
    %c0_i32_1 = arith.constant 0 : i32
    return %c0_i32, %c0_i32_0 : i32, i32
  }
  func.func @transform_5(%arg0: i32) -> (i32, i32) {
    %c0_i32 = arith.constant 0 : i32
    %c0_i32_0 = arith.constant 0 : i32
    %c0_i32_1 = arith.constant 0 : i32
    return %c0_i32, %c0_i32_0 : i32, i32
  }
  func.func @transform_6(%arg0: i32) -> (i32, i32) {
    %c0_i32 = arith.constant 0 : i32
    %c0_i32_0 = arith.constant 0 : i32
    %c0_i32_1 = arith.constant 0 : i32
    return %c0_i32, %c0_i32_0 : i32, i32
  }
  func.func @transform_7(%arg0: i32) -> (i32, i32) {
    %c0_i32 = arith.constant 0 : i32
    %c0_i32_0 = arith.constant 0 : i32
    %c0_i32_1 = arith.constant 0 : i32
    return %c0_i32, %c0_i32_0 : i32, i32
  }
  func.func @transform_8(%arg0: i32) -> (i32, i32) {
    %c0_i32 = arith.constant 0 : i32
    %c0_i32_0 = arith.constant 0 : i32
    %c0_i32_1 = arith.constant 0 : i32
    return %c0_i32, %c0_i32_0 : i32, i32
  }
  func.func @transform_9(%arg0: i32) -> (i32, i32) {
    %c0_i32 = arith.constant 0 : i32
    %c0_i32_0 = arith.constant 0 : i32
    %c0_i32_1 = arith.constant 0 : i32
    return %c0_i32, %c0_i32_0 : i32, i32
  }
  func.func @transform_10(%arg0: i32) -> (i32, i32) {
    %c0_i32 = arith.constant 0 : i32
    %c0_i32_0 = arith.constant 0 : i32
    %c0_i32_1 = arith.constant 0 : i32
    return %c0_i32, %c0_i32_0 : i32, i32
  }
  func.func @transform_11(%arg0: i32) -> (i32, i32) {
    %c0_i32 = arith.constant 0 : i32
    %c0_i32_0 = arith.constant 0 : i32
    %c0_i32_1 = arith.constant 0 : i32
    return %c0_i32, %c0_i32_0 : i32, i32
  }
  func.func @transform_12(%arg0: i32) -> (i32, i32) {
    %c0_i32 = arith.constant 0 : i32
    %c0_i32_0 = arith.constant 0 : i32
    %c0_i32_1 = arith.constant 0 : i32
    return %c0_i32, %c0_i32_0 : i32, i32
  }
  func.func @transform_13(%arg0: i32) -> (i32, i32) {
    %c0_i32 = arith.constant 0 : i32
    %c0_i32_0 = arith.constant 0 : i32
    return %arg0, %c0_i32 : i32, i32
  }
}

</mosaic_0001>

<bundles_post_ra>
// kernel: tpu_custom_call.1
= control target key start
LH: loop header
LB: loop body
LE: loop exit
PB: predicated region body
PF: predicated region fallthrough
CT: control target
= control target key end

     0   :  { %18 = vsyncpa [#allocation3], 0  ;;  %s6375_s0 = inlined_call_operand.hbm [shape: f32[8,1260], index: 0, kind: input, shape index: {}]   ;;  %s6376_s1 = inlined_call_operand.hbm [shape: bf16[1260,512], index: 1, kind: input, shape index: {}]   ;;  %s6377_s2 = inlined_call_operand.hbm [shape: f32[1,512], index: 2, kind: input, shape index: {}]   ;;  %s6378_s3 = inlined_call_operand.hbm [shape: bf16[512,256], index: 3, kind: input, shape index: {}]   ;;  %s6379_s4 = inlined_call_operand.hbm [shape: f32[1,256], index: 4, kind: input, shape index: {}]   ;;  %s6380_s5 = inlined_call_operand.hbm [shape: bf16[256,128], index: 5, kind: input, shape index: {}]   ;;  %s6381_s6 = inlined_call_operand.hbm [shape: f32[1,128], index: 6, kind: input, shape index: {}]   ;;  %s6382_s7 = inlined_call_operand.hbm [shape: bf16[128,128], index: 7, kind: input, shape index: {}]   ;;  %s6383_s8 = inlined_call_operand.hbm [shape: f32[1,128], index: 8, kind: input, shape index: {}]   ;;  %s6384_s9 = inlined_call_operand.hbm [shape: bf16[128,128], index: 9, kind: input, shape index: {}]   ;;  %s6385_s10 = inlined_call_operand.hbm [shape: f32[1,128], index: 10, kind: input, shape index: {}]   ;;  %s6386_s11 = inlined_call_operand.hbm [shape: bf16[128,128], index: 11, kind: input, shape index: {}]   ;;  %s6387_s12 = inlined_call_operand.hbm [shape: f32[1,128], index: 12, kind: input, shape index: {}]   ;;  %s6388_s13 = inlined_call_operand.hbm [shape: f32[8,128], index: 13, kind: output, shape index: {}]  }
   0x1   :  { %19 = vsyncpa [#allocation6], 0 }
   0x2   :  { %20 = vsyncpa [#allocation9], 0 }
   0x3   :  { %21 = vsyncpa [#allocation12], 0 }
   0x4   :  { %22 = vsyncpa [#allocation15], 0 }
   0x5   :  { %23 = vsyncpa [#allocation18], 0 }
   0x6   :  { %24 = vsyncpa [#allocation21], 0  ;;  %s41_s27 = sshll.u32 %s6376_s1, 4  ;;  %s42_s27 = int_to_ptr.hbm [resolvable:$true] %s41_s27 }
   0x7   :  { %25 = vsyncpa [#allocation4], 0  ;;  %s6111_s28 = smov [#allocation5]   ;;  %s65_s15 = sshll.u32 %s6378_s3, 4  ;;  %s66_s15 = int_to_ptr.hbm [resolvable:$true] %s65_s15 }
   0x8   :  { %s43_s29 = sshll.u32 %s6111_s28, 4  ;;  %s6112_s16 = smov 256   ;;  %s44_s29 = int_to_ptr.vmem [resolvable:$true] %s43_s29 }
   0x9   :  { %s6113_s17 = smov 16   ;;  %s6114_s18 = smov [#allocation8]  }
   0xa   :  { %49 = dma.hbm_to_vmem [thread:$0]  %s42_s27, 40448, %s44_s29, [#allocation6], %s6112_s16, %s6112_s16, %s6113_s17  }
   0xb   :  { %s67_s19 = sshll.u32 %s6114_s18, 4  ;;  %s6115_s20 = smov 128   ;;  %s68_s19 = int_to_ptr.vmem [resolvable:$true] %s67_s19 }
   0xc   :  { %s6116_s21 = smov 8   ;;  %s89_s23 = sshll.u32 %s6380_s5, 4  ;;  %s90_s23 = int_to_ptr.hbm [resolvable:$true] %s89_s23 }
   0xd   :  { %73 = dma.hbm_to_vmem [thread:$0]  %s66_s15, 8192, %s68_s19, [#allocation9], %s6115_s20, %s6115_s20, %s6116_s21  }
   0xe   :  { %s6117_s24 = smov [#allocation11]   ;;  %s113_s28 = sshll.u32 %s6382_s7, 4  ;;  %s114_s28 = int_to_ptr.hbm [resolvable:$true] %s113_s28 }
   0xf   :  { %s91_s25 = sshll.u32 %s6117_s24, 4  ;;  %s6118_s27 = smov 64   ;;  %s92_s25 = int_to_ptr.vmem [resolvable:$true] %s91_s25 }
  0x10   :  { %s6119_s29 = smov 4   ;;  %s6120_s30 = smov [#allocation14]  }
  0x11   :  { %97 = dma.hbm_to_vmem [thread:$0]  %s90_s23, 2048, %s92_s25, [#allocation12], %s6118_s27, %s6118_s27, %s6119_s29  }
  0x12   :  { %s115_s14 = sshll.u32 %s6120_s30, 4  ;;  %s137_s17 = sshll.u32 %s6384_s9, 4  ;;  %s116_s14 = int_to_ptr.vmem [resolvable:$true] %s115_s14  ;;  %s138_s17 = int_to_ptr.hbm [resolvable:$true] %s137_s17 }
  0x13   :  { %121 = dma.hbm_to_vmem [thread:$0]  %s114_s28, 1024, %s116_s14, [#allocation15], %s6118_s27, %s6118_s27, %s6119_s29  }
  0x14   :  { %s161_s19 = sshll.u32 %s6386_s11, 4  ;;  %s6121_s20 = smov [#allocation17]   ;;  %s162_s19 = int_to_ptr.hbm [resolvable:$true] %s161_s19 }
  0x15   :  { %s139_s21 = sshll.u32 %s6121_s20, 4  ;;  %s6122_s7 = smov [#allocation20]   ;;  %s140_s21 = int_to_ptr.vmem [resolvable:$true] %s139_s21 }
  0x16   :  { %145 = dma.hbm_to_vmem [thread:$0]  %s138_s17, 1024, %s140_s21, [#allocation18], %s6118_s27, %s6118_s27, %s6119_s29  }
  0x17   :  { %s163_s1 = sshll.u32 %s6122_s7, 4  ;;  %s31_s24 = sshll.u32 %s6375_s0, 4  ;;  %s164_s1 = int_to_ptr.vmem [resolvable:$true] %s163_s1  ;;  %s32_s24 = int_to_ptr.hbm [resolvable:$true] %s31_s24 }
  0x18   :  { %169 = dma.hbm_to_vmem [thread:$0]  %s162_s19, 1024, %s164_s1, [#allocation21], %s6118_s27, %s6118_s27, %s6119_s29  }
  0x19   :  { %s55_s26 = sshll.u32 %s6377_s2, 4  ;;  %s6123_s3 = smov [#allocation2]   ;;  %s56_s26 = int_to_ptr.hbm [resolvable:$true] %s55_s26 }
  0x1a   :  { %s33_s11 = sshll.u32 %s6123_s3, 4  ;;  %s6124_s28 = smov [#allocation7]   ;;  %s34_s11 = int_to_ptr.vmem [resolvable:$true] %s33_s11 }
  0x1b   :  { %36 = dma.hbm_to_vmem [thread:$0]  %s32_s24, 1280, %s34_s11, [#allocation3]  }
  0x1c   :  { %s57_s30 = sshll.u32 %s6124_s28, 4  ;;  %s79_s15 = sshll.u32 %s6379_s4, 4  ;;  %s58_s30 = int_to_ptr.vmem [resolvable:$true] %s57_s30  ;;  %s80_s15 = int_to_ptr.hbm [resolvable:$true] %s79_s15 }
  0x1d   :  { %60 = dma.hbm_to_vmem [thread:$0]  %s56_s26, 64, %s58_s30, [#allocation6]  }
  0x1e   :  { %s103_s29 = sshll.u32 %s6381_s6, 4  ;;  %s6125_s17 = smov [#allocation10]   ;;  %s104_s29 = int_to_ptr.hbm [resolvable:$true] %s103_s29 }
  0x1f   :  { %s81_s2 = sshll.u32 %s6125_s17, 4  ;;  %s6126_s5 = smov [#allocation13]   ;;  %s82_s2 = int_to_ptr.vmem [resolvable:$true] %s81_s2 }
  0x20   :  { %84 = dma.hbm_to_vmem [thread:$0]  %s80_s15, 32, %s82_s2, [#allocation9]  }
  0x21   :  { %s105_s18 = sshll.u32 %s6126_s5, 4  ;;  %s127_s21 = sshll.u32 %s6383_s8, 4  ;;  %s106_s18 = int_to_ptr.vmem [resolvable:$true] %s105_s18  ;;  %s128_s21 = int_to_ptr.hbm [resolvable:$true] %s127_s21 }
  0x22   :  { %108 = dma.hbm_to_vmem [thread:$0]  %s104_s29, 16, %s106_s18, [#allocation12]  }
  0x23   :  { %s151_s1 = sshll.u32 %s6385_s10, 4  ;;  %s6127_s22 = smov [#allocation16]   ;;  %s152_s1 = int_to_ptr.hbm [resolvable:$true] %s151_s1 }
  0x24   :  { %s129_s6 = sshll.u32 %s6127_s22, 4  ;;  %s6128_s23 = smov [#allocation19]   ;;  %s130_s6 = int_to_ptr.vmem [resolvable:$true] %s129_s6 }
  0x25   :  { %132 = dma.hbm_to_vmem [thread:$0]  %s128_s21, 16, %s130_s6, [#allocation15]  }
  0x26   :  { %s153_s24 = sshll.u32 %s6128_s23, 4  ;;  %s175_s26 = sshll.u32 %s6387_s12, 4  ;;  %s154_s24 = int_to_ptr.vmem [resolvable:$true] %s153_s24  ;;  %s176_s26 = int_to_ptr.hbm [resolvable:$true] %s175_s26 }
  0x27   :  { %156 = dma.hbm_to_vmem [thread:$0]  %s152_s1, 16, %s154_s24, [#allocation18]  }
  0x28   :  { %s6129_s8 = smov [#allocation22]  }
  0x29   :  { %s177_s3 = sshll.u32 %s6129_s8, 4  ;;  %s178_s3 = int_to_ptr.vmem [resolvable:$true] %s177_s3 }
  0x2a   :  { %180 = dma.hbm_to_vmem [thread:$0]  %s176_s26, 16, %s178_s3, [#allocation21]  }
  0x2b   :  { %6095 = dma.done.wait [#allocation3], 1280  }
  0x2c   :  { %6096 = vsyncadd [#allocation3], 4294966016 }
  0x2d   :  { %6097 = dma.done.wait [#allocation6], 40512  }
  0x2e   :  { %6098 = vsyncadd [#allocation6], 4294926784 }
  0x2f   :  { %6099 = dma.done.wait [#allocation9], 8224  }
  0x30   :  { %6100 = vsyncadd [#allocation9], 4294959072 }
  0x31   :  { %6101 = dma.done.wait [#allocation12], 2064  }
  0x32   :  { %6102 = vsyncadd [#allocation12], 4294965232 }
  0x33   :  { %6103 = dma.done.wait [#allocation15], 1040  }
  0x34   :  { %6104 = vsyncadd [#allocation15], 4294966256 }
  0x35   :  { %6105 = dma.done.wait [#allocation18], 1040  }
  0x36   :  { %6106 = vsyncadd [#allocation18], 4294966256 }
  0x37   :  { %6107 = dma.done.wait [#allocation21], 1040  }
  0x38   :  { %6108 = vsyncadd [#allocation21], 4294966256  ;;  %v3744_v0 = vld [vmem:[#allocation5 + $0xe0] sm:$0xf]  ;;  %v5344_v1 = vld [vmem:[#allocation5 + $0xec] sm:$0xf0] }
  0x39   :  { %v3872_v2 = vld [vmem:[#allocation5 + $0x1e0] sm:$0xf]  ;;  %v3745_v3 = vor.u32 %v5344_v1, %v3744_v0  ;;  %v5376_v4 = vld [vmem:[#allocation5 + $0x1ec] sm:$0xf0]  ;;  %vm2160_vm0 = vcmask 1045504   ;;  %vm2156_vm1 = vcmask 883712  }
  0x3a   :  { %v4000_v5 = vld [vmem:[#allocation5 + $0x2e0] sm:$0xf]  ;;  %v5408_v6 = vld [vmem:[#allocation5 + $0x2ec] sm:$0xf0]  ;;  %v3873_v7 = vor.u32 %v5376_v4, %v3872_v2  ;;  %s6130_s10 = smov [#allocation23]   ;;  %s3614_s30 = sshll.u32 %s6388_s13, 4  ;;  %s3615_s30 = int_to_ptr.hbm [resolvable:$true] %s3614_s30 }
  0x3b   :  { %v4001_v8 = vor.u32 %v5408_v6, %v4000_v5  ;;  %v4128_v9 = vld [vmem:[#allocation5 + $0x3e0] sm:$0xf]  ;;  %v5440_v10 = vld [vmem:[#allocation5 + $0x3ec] sm:$0xf0]  ;;  %2173 = vmatpush.bf16.msra.mxu0 %v3745_v3  ;;  %s3612_s12 = sshll.u32 %s6130_s10, 4  ;;  %s3613_s12 = int_to_ptr.vmem [resolvable:$true] %s3612_s12 }
  0x3c   :  { %v3728_v11 = vld [vmem:[#allocation5 + $0xc0] sm:$0xf]  ;;  %v4129_v12 = vor.u32 %v5440_v10, %v4128_v9  ;;  %v5340_v13 = vld [vmem:[#allocation5 + $0xcc] sm:$0xf0]  ;;  %2186 = vmatpush.bf16.msra.mxu1 %v3873_v7 }
  0x3d   :  { %v3856_v14 = vld [vmem:[#allocation5 + $0x1c0] sm:$0xf]  ;;  %v5372_v15 = vld [vmem:[#allocation5 + $0x1cc] sm:$0xf0]  ;;  %2199 = vmatpush.bf16.msra.mxu2 %v4001_v8  ;;  %v3729_v16 = vor.u32 %v5340_v13, %v3728_v11 }
  0x3e   :  { %v3857_v17 = vor.u32 %v5372_v15, %v3856_v14  ;;  %v3984_v18 = vld [vmem:[#allocation5 + $0x2c0] sm:$0xf]  ;;  %v5404_v19 = vld [vmem:[#allocation5 + $0x2cc] sm:$0xf0]  ;;  %2212 = vmatpush.bf16.msra.mxu3 %v4129_v12 }
  0x3f   :  { %v4112_v20 = vld [vmem:[#allocation5 + $0x3c0] sm:$0xf]  ;;  %v3985_v21 = vor.u32 %v5404_v19, %v3984_v18  ;;  %v5436_v22 = vld [vmem:[#allocation5 + $0x3cc] sm:$0xf0]  ;;  %2174 = vmatpush.bf16.msra.mxu0 %v3729_v16 }
  0x40   :  { %v3712_v23 = vld [vmem:[#allocation5 + $0xa0] sm:$0xf]  ;;  %v5336_v24 = vld [vmem:[#allocation5 + $0xac] sm:$0xf0]  ;;  %v4113_v25 = vor.u32 %v5436_v22, %v4112_v20  ;;  %2187 = vmatpush.bf16.msra.mxu1 %v3857_v17 }
  0x41   :  { %v3840_v26 = vld [vmem:[#allocation5 + $0x1a0] sm:$0xf]  ;;  %v5368_v27 = vld [vmem:[#allocation5 + $0x1ac] sm:$0xf0]  ;;  %v3713_v29 = vor.u32 %v5336_v24, %v3712_v23  ;;  %2200 = vmatpush.bf16.msra.mxu2 %v3985_v21 }
  0x42   :  { %v3968_v28 = vld [vmem:[#allocation5 + $0x2a0] sm:$0xf]  ;;  %v5400_v30 = vld [vmem:[#allocation5 + $0x2ac] sm:$0xf0]  ;;  %v3841_v33 = vor.u32 %v5368_v27, %v3840_v26  ;;  %2213 = vmatpush.bf16.msra.mxu3 %v4113_v25 }
  0x43   :  { %v4096_v31 = vld [vmem:[#allocation5 + $0x3a0] sm:$0xf]  ;;  %v5432_v32 = vld [vmem:[#allocation5 + $0x3ac] sm:$0xf0]  ;;  %v3969_v34 = vor.u32 %v5400_v30, %v3968_v28  ;;  %2175 = vmatpush.bf16.msra.mxu0 %v3713_v29 }
  0x44   :  { %v3696_v35 = vld [vmem:[#allocation5 + $0x80] sm:$0xf]  ;;  %v5332_v36 = vld [vmem:[#allocation5 + $0x8c] sm:$0xf0]  ;;  %v4097_v38 = vor.u32 %v5432_v32, %v4096_v31  ;;  %2188 = vmatpush.bf16.msra.mxu1 %v3841_v33 }
  0x45   :  { %v3824_v37 = vld [vmem:[#allocation5 + $0x180] sm:$0xf]  ;;  %v5364_v39 = vld [vmem:[#allocation5 + $0x18c] sm:$0xf0]  ;;  %v3697_v44 = vor.u32 %v5332_v36, %v3696_v35  ;;  %2201 = vmatpush.bf16.msra.mxu2 %v3969_v34 }
  0x46   :  { %v3952_v40 = vld [vmem:[#allocation5 + $0x280] sm:$0xf]  ;;  %v5396_v41 = vld [vmem:[#allocation5 + $0x28c] sm:$0xf0]  ;;  %v3825_v45 = vor.u32 %v5364_v39, %v3824_v37  ;;  %2214 = vmatpush.bf16.msra.mxu3 %v4097_v38 }
  0x47   :  { %v4080_v42 = vld [vmem:[#allocation5 + $0x380] sm:$0xf]  ;;  %v5428_v43 = vld [vmem:[#allocation5 + $0x38c] sm:$0xf0]  ;;  %v3953_v46 = vor.u32 %v5396_v41, %v3952_v40  ;;  %2176 = vmatpush.bf16.msra.mxu0 %v3697_v44 }
  0x48   :  { %v3680_v47 = vld [vmem:[#allocation5 + $0x60] sm:$0xf]  ;;  %v5328_v48 = vld [vmem:[#allocation5 + $0x6c] sm:$0xf0]  ;;  %v4081_v50 = vor.u32 %v5428_v43, %v4080_v42  ;;  %2189 = vmatpush.bf16.msra.mxu1 %v3825_v45 }
  0x49   :  { %v3808_v49 = vld [vmem:[#allocation5 + $0x160] sm:$0xf]  ;;  %v5360_v51 = vld [vmem:[#allocation5 + $0x16c] sm:$0xf0]  ;;  %v3681_v56 = vor.u32 %v5328_v48, %v3680_v47  ;;  %2202 = vmatpush.bf16.msra.mxu2 %v3953_v46 }
  0x4a   :  { %v3936_v52 = vld [vmem:[#allocation5 + $0x260] sm:$0xf]  ;;  %v5392_v53 = vld [vmem:[#allocation5 + $0x26c] sm:$0xf0]  ;;  %v3809_v57 = vor.u32 %v5360_v51, %v3808_v49  ;;  %2215 = vmatpush.bf16.msra.mxu3 %v4081_v50 }
  0x4b   :  { %v4064_v54 = vld [vmem:[#allocation5 + $0x360] sm:$0xf]  ;;  %v5424_v55 = vld [vmem:[#allocation5 + $0x36c] sm:$0xf0]  ;;  %v3937_v58 = vor.u32 %v5392_v53, %v3936_v52  ;;  %2177 = vmatpush.bf16.msra.mxu0 %v3681_v56 }
  0x4c   :  { %v3664_v59 = vld [vmem:[#allocation5 + $0x40] sm:$0xf]  ;;  %v5324_v60 = vld [vmem:[#allocation5 + $0x4c] sm:$0xf0]  ;;  %v4065_v62 = vor.u32 %v5424_v55, %v4064_v54  ;;  %2190 = vmatpush.bf16.msra.mxu1 %v3809_v57 }
  0x4d   :  { %v3792_v61 = vld [vmem:[#allocation5 + $0x140] sm:$0xf]  ;;  %v5356_v63 = vld [vmem:[#allocation5 + $0x14c] sm:$0xf0]  ;;  %v3665_v4 = vor.u32 %v5324_v60, %v3664_v59  ;;  %2203 = vmatpush.bf16.msra.mxu2 %v3937_v58 }
  0x4e   :  { %v3920_v0 = vld [vmem:[#allocation5 + $0x240] sm:$0xf]  ;;  %v5388_v1 = vld [vmem:[#allocation5 + $0x24c] sm:$0xf0]  ;;  %v3793_v5 = vor.u32 %v5356_v63, %v3792_v61  ;;  %2216 = vmatpush.bf16.msra.mxu3 %v4065_v62 }
  0x4f   :  { %v4048_v2 = vld [vmem:[#allocation5 + $0x340] sm:$0xf]  ;;  %v5420_v3 = vld [vmem:[#allocation5 + $0x34c] sm:$0xf0]  ;;  %v3921_v6 = vor.u32 %v5388_v1, %v3920_v0  ;;  %2178 = vmatpush.bf16.msra.mxu0 %v3665_v4 }
  0x50   :  { %v3648_v7 = vld [vmem:[#allocation5 + $0x20] sm:$0xf]  ;;  %v5320_v8 = vld [vmem:[#allocation5 + $0x2c] sm:$0xf0]  ;;  %v4049_v10 = vor.u32 %v5420_v3, %v4048_v2  ;;  %2191 = vmatpush.bf16.msra.mxu1 %v3793_v5 }
  0x51   :  { %v3776_v9 = vld [vmem:[#allocation5 + $0x120] sm:$0xf]  ;;  %v5352_v11 = vld [vmem:[#allocation5 + $0x12c] sm:$0xf0]  ;;  %v3649_v16 = vor.u32 %v5320_v8, %v3648_v7  ;;  %2204 = vmatpush.bf16.msra.mxu2 %v3921_v6 }
  0x52   :  { %v3904_v12 = vld [vmem:[#allocation5 + $0x220] sm:$0xf]  ;;  %v5384_v13 = vld [vmem:[#allocation5 + $0x22c] sm:$0xf0]  ;;  %v3777_v19 = vor.u32 %v5352_v11, %v3776_v9  ;;  %2217 = vmatpush.bf16.msra.mxu3 %v4049_v10  ;;  %v237_v10 = vld [vmem:[#allocation2 + $0x18] sm:$0xff] }
  0x53   :  { %v4032_v14 = vld [vmem:[#allocation5 + $0x320] sm:$0xf]  ;;  %v5416_v15 = vld [vmem:[#allocation5 + $0x32c] sm:$0xf0]  ;;  %v3905_v20 = vor.u32 %v5384_v13, %v3904_v12  ;;  %2179 = vmatpush.bf16.msra.mxu0 %v3649_v16  ;;  %v235_v11 = vld [vmem:[#allocation2 + $0x8] sm:$0xff]  ;;  %v6245_v16 = vpack.c.bf16 %v237_v10, %v237_v10 }
  0x54   :  { %v3632_v17 = vld [vmem:[#allocation5] sm:$0xf]  ;;  %v5316_v18 = vld [vmem:[#allocation5 + $0xc] sm:$0xf0]  ;;  %v4033_v24 = vor.u32 %v5416_v15, %v4032_v14  ;;  %2192 = vmatpush.bf16.msra.mxu1 %v3777_v19 }
  0x55   :  { %v3760_v21 = vld [vmem:[#allocation5 + $0x100] sm:$0xf]  ;;  %v5348_v22 = vld [vmem:[#allocation5 + $0x10c] sm:$0xf0]  ;;  %v3633_v31 = vor.u32 %v5316_v18, %v3632_v17  ;;  %2205 = vmatpush.bf16.msra.mxu2 %v3905_v20  ;;  %v6247_v17 = vpack.c.bf16 %v235_v11, %v235_v11 }
  0x56   :  { %v3888_v23 = vld [vmem:[#allocation5 + $0x200] sm:$0xf]  ;;  %v5380_v25 = vld [vmem:[#allocation5 + $0x20c] sm:$0xf0]  ;;  %v3761_v35 = vor.u32 %v5348_v22, %v3760_v21  ;;  %2218 = vmatpush.bf16.msra.mxu3 %v4033_v24 }
  0x57   :  { %v4016_v26 = vld [vmem:[#allocation5 + $0x300] sm:$0xf]  ;;  %v5412_v27 = vld [vmem:[#allocation5 + $0x30c] sm:$0xf0]  ;;  %v3889_v36 = vor.u32 %v5380_v25, %v3888_v23  ;;  %2180 = vmatpush.bf16.msra.mxu0 %v3633_v31 }
  0x58   :  { %v4256_v28 = vld [vmem:[#allocation5 + $0x4e0] sm:$0xf]  ;;  %v5472_v29 = vld [vmem:[#allocation5 + $0x4ec] sm:$0xf0]  ;;  %v4017_v39 = vor.u32 %v5412_v27, %v4016_v26  ;;  %2193 = vmatpush.bf16.msra.mxu1 %v3761_v35 }
  0x59   :  { %v4384_v30 = vld [vmem:[#allocation5 + $0x5e0] sm:$0xf]  ;;  %v5504_v32 = vld [vmem:[#allocation5 + $0x5ec] sm:$0xf0]  ;;  %v4257_v40 = vor.u32 %v5472_v29, %v4256_v28  ;;  %2206 = vmatpush.bf16.msra.mxu2 %v3889_v36 }
  0x5a   :  { %v4512_v33 = vld [vmem:[#allocation5 + $0x6e0] sm:$0xf]  ;;  %v5536_v34 = vld [vmem:[#allocation5 + $0x6ec] sm:$0xf0]  ;;  %v4385_v41 = vor.u32 %v5504_v32, %v4384_v30  ;;  %2219 = vmatpush.bf16.msra.mxu3 %v4017_v39 }
  0x5b   :  { %v4640_v37 = vld [vmem:[#allocation5 + $0x7e0] sm:$0xf]  ;;  %v5568_v38 = vld [vmem:[#allocation5 + $0x7ec] sm:$0xf0]  ;;  %v4513_v42 = vor.u32 %v5536_v34, %v4512_v33  ;;  %2225 = vmatpush.bf16.msrb.mxu0 %v4257_v40  ;;  %2194 = vmatmul.bf16.vlgmr.msra.gmra.mxu1 %v6247_v17 }
  0x5c   :  { %v4240_v43 = vld [vmem:[#allocation5 + $0x4c0] sm:$0xf]  ;;  %v5468_v44 = vld [vmem:[#allocation5 + $0x4cc] sm:$0xf0]  ;;  %v4641_v46 = vor.u32 %v5568_v38, %v4640_v37  ;;  %2238 = vmatpush.bf16.msrb.mxu1 %v4385_v41 }
  0x5d   :  { %v4368_v45 = vld [vmem:[#allocation5 + $0x5c0] sm:$0xf]  ;;  %v5500_v47 = vld [vmem:[#allocation5 + $0x5cc] sm:$0xf0]  ;;  %v4241_v52 = vor.u32 %v5468_v44, %v4240_v43  ;;  %2251 = vmatpush.bf16.msrb.mxu2 %v4513_v42  ;;  %2220 = vmatmul.bf16.vlgmr.msra.gmra.mxu3 %v6245_v16 }
  0x5e   :  { %v4496_v48 = vld [vmem:[#allocation5 + $0x6c0] sm:$0xf]  ;;  %v5532_v49 = vld [vmem:[#allocation5 + $0x6cc] sm:$0xf0]  ;;  %v4369_v54 = vor.u32 %v5500_v47, %v4368_v45  ;;  %2264 = vmatpush.bf16.msrb.mxu3 %v4641_v46 }
  0x5f   :  { %v4624_v50 = vld [vmem:[#allocation5 + $0x7c0] sm:$0xf]  ;;  %v5564_v51 = vld [vmem:[#allocation5 + $0x7cc] sm:$0xf0]  ;;  %v4497_v55 = vor.u32 %v5532_v49, %v4496_v48  ;;  %2226 = vmatpush.bf16.msrb.mxu0 %v4241_v52 }
  0x60   :  { %v4224_v53 = vld [vmem:[#allocation5 + $0x4a0] sm:$0xf]  ;;  %v5464_v56 = vld [vmem:[#allocation5 + $0x4ac] sm:$0xf0]  ;;  %v4625_v59 = vor.u32 %v5564_v51, %v4624_v50  ;;  %2239 = vmatpush.bf16.msrb.mxu1 %v4369_v54 }
  0x61   :  { %v4352_v57 = vld [vmem:[#allocation5 + $0x5a0] sm:$0xf]  ;;  %v5496_v60 = vld [vmem:[#allocation5 + $0x5ac] sm:$0xf0]  ;;  %v4225_v2 = vor.u32 %v5464_v56, %v4224_v53  ;;  %2252 = vmatpush.bf16.msrb.mxu2 %v4497_v55 }
  0x62   :  { %v236_v58 = vld [vmem:[#allocation2 + $0x10] sm:$0xff]  ;;  %v5528_v62 = vld [vmem:[#allocation5 + $0x6ac] sm:$0xf0]  ;;  %v4353_v6 = vor.u32 %v5496_v60, %v4352_v57  ;;  %2265 = vmatpush.bf16.msrb.mxu3 %v4625_v59 }
  0x63   :  { %v4480_v61 = vld [vmem:[#allocation5 + $0x6a0] sm:$0xf]  ;;  %v6240_v63 = vpack.c.bf16 %v236_v58, %v236_v58  ;;  %v5560_v1 = vld [vmem:[#allocation5 + $0x7ac] sm:$0xf0]  ;;  %2227 = vmatpush.bf16.msrb.mxu0 %v4225_v2 }
  0x64   :  { %v4608_v0 = vld [vmem:[#allocation5 + $0x7a0] sm:$0xf]  ;;  %v5460_v4 = vld [vmem:[#allocation5 + $0x48c] sm:$0xf0]  ;;  %v4481_v7 = vor.u32 %v5528_v62, %v4480_v61  ;;  %2240 = vmatpush.bf16.msrb.mxu1 %v4353_v6 }
  0x65   :  { %v4208_v3 = vld [vmem:[#allocation5 + $0x480] sm:$0xf]  ;;  %2207 = vmatmul.bf16.vlgmr.msra.gmra.mxu2 %v6240_v63  ;;  %v234_v5 = vld [vmem:[#allocation2] sm:$0xff]  ;;  %v4609_v12 = vor.u32 %v5560_v1, %v4608_v0 }
  0x66   :  { %v4336_v8 = vld [vmem:[#allocation5 + $0x580] sm:$0xf]  ;;  %v6243_v9 = vpack.c.bf16 %v234_v5, %v234_v5  ;;  %v5492_v13 = vld [vmem:[#allocation5 + $0x58c] sm:$0xf0]  ;;  %v4209_v20 = vor.u32 %v5460_v4, %v4208_v3  ;;  %2253 = vmatpush.bf16.msrb.mxu2 %v4481_v7 }
  0x67   :  { %v4464_v14 = vld [vmem:[#allocation5 + $0x680] sm:$0xf]  ;;  %v5524_v15 = vld [vmem:[#allocation5 + $0x68c] sm:$0xf0]  ;;  %v4337_v21 = vor.u32 %v5492_v13, %v4336_v8  ;;  %2266 = vmatpush.bf16.msrb.mxu3 %v4609_v12  ;;  %v5342_v12 = vld [vmem:[#allocation5 + $0xe4] sm:$0xf] }
  0x68   :  { %v4592_v18 = vld [vmem:[#allocation5 + $0x780] sm:$0xf]  ;;  %v5556_v19 = vld [vmem:[#allocation5 + $0x78c] sm:$0xf0]  ;;  %2181 = vmatmul.bf16.vlgmr.msra.gmra.mxu0 %v6243_v9  ;;  %v4465_v22 = vor.u32 %v5524_v15, %v4464_v14  ;;  %v3746_v13 = vld [vmem:[#allocation5 + $0xf0] sm:$0xf0] }
  0x69   :  { %v4192_v23 = vld [vmem:[#allocation5 + $0x460] sm:$0xf]  ;;  %v5456_v24 = vld [vmem:[#allocation5 + $0x46c] sm:$0xf0]  ;;  %v4593_v26 = vor.u32 %v5556_v19, %v4592_v18  ;;  %2228 = vmatpush.bf16.msrb.mxu0 %v4209_v20  ;;  %2241 = vmatpush.bf16.msrb.mxu1 %v4337_v21  ;;  %v5374_v14 = vld [vmem:[#allocation5 + $0x1e4] sm:$0xf] }
  0x6a   :  { %v4320_v25 = vld [vmem:[#allocation5 + $0x560] sm:$0xf]  ;;  %v5488_v27 = vld [vmem:[#allocation5 + $0x56c] sm:$0xf0]  ;;  %v4193_v32 = vor.u32 %v5456_v24, %v4192_v23  ;;  %2254 = vmatpush.bf16.msrb.mxu2 %v4465_v22  ;;  %v3874_v19 = vld [vmem:[#allocation5 + $0x1f0] sm:$0xf0] }
  0x6b   :  { %v4448_v28 = vld [vmem:[#allocation5 + $0x660] sm:$0xf]  ;;  %v5520_v29 = vld [vmem:[#allocation5 + $0x66c] sm:$0xf0]  ;;  %v4321_v33 = vor.u32 %v5488_v27, %v4320_v25  ;;  %2267 = vmatpush.bf16.msrb.mxu3 %v4593_v26  ;;  %v241_v26 = vld [vmem:[#allocation2 + $0x38] sm:$0xff]  ;;  %v3749_v27 = vor.u32 %v5342_v12, %v3746_v13 }
  0x6c   :  { %v4576_v30 = vld [vmem:[#allocation5 + $0x760] sm:$0xf]  ;;  %v5552_v31 = vld [vmem:[#allocation5 + $0x76c] sm:$0xf0]  ;;  %v4449_v34 = vor.u32 %v5520_v29, %v4448_v28  ;;  %v3682_v12 = vld [vmem:[#allocation5 + $0x70] sm:$0xf0] }
  0x6d   :  { %v4176_v35 = vld [vmem:[#allocation5 + $0x440] sm:$0xf]  ;;  %v5452_v36 = vld [vmem:[#allocation5 + $0x44c] sm:$0xf0]  ;;  %v4577_v38 = vor.u32 %v5552_v31, %v4576_v30  ;;  %2229 = vmatpush.bf16.msrb.mxu0 %v4193_v32  ;;  %2242 = vmatpush.bf16.msrb.mxu1 %v4321_v33  ;;  %v239_v30 = vld [vmem:[#allocation2 + $0x28] sm:$0xff]  ;;  %v3877_v32 = vor.u32 %v5374_v14, %v3874_v19 }
  0x6e   :  { %v4304_v37 = vld [vmem:[#allocation5 + $0x540] sm:$0xf]  ;;  %v5484_v39 = vld [vmem:[#allocation5 + $0x54c] sm:$0xf0]  ;;  %v4177_v44 = vor.u32 %v5452_v36, %v4176_v35  ;;  %2255 = vmatpush.bf16.msrb.mxu2 %v4449_v34  ;;  %v5338_v33 = vld [vmem:[#allocation5 + $0xc4] sm:$0xf] }
  0x6f   :  { %v4432_v40 = vld [vmem:[#allocation5 + $0x640] sm:$0xf]  ;;  %v5516_v41 = vld [vmem:[#allocation5 + $0x64c] sm:$0xf0]  ;;  %v4305_v45 = vor.u32 %v5484_v39, %v4304_v37  ;;  %2268 = vmatpush.bf16.msrb.mxu3 %v4577_v38  ;;  %v3730_v34 = vld [vmem:[#allocation5 + $0xd0] sm:$0xf0]  ;;  %v6257_v39 = vpack.c.bf16 %v241_v26, %v241_v26 }
  0x70   :  { %v4560_v42 = vld [vmem:[#allocation5 + $0x740] sm:$0xf]  ;;  %v5548_v43 = vld [vmem:[#allocation5 + $0x74c] sm:$0xf0]  ;;  %v4433_v46 = vor.u32 %v5516_v41, %v4432_v40  ;;  %v5370_v36 = vld [vmem:[#allocation5 + $0x1c4] sm:$0xf]  ;;  %v6259_v41 = vpack.c.bf16 %v239_v30, %v239_v30 }
  0x71   :  { %v4160_v47 = vld [vmem:[#allocation5 + $0x420] sm:$0xf]  ;;  %v5448_v48 = vld [vmem:[#allocation5 + $0x42c] sm:$0xf0]  ;;  %v4561_v50 = vor.u32 %v5548_v43, %v4560_v42  ;;  %2230 = vmatpush.bf16.msrb.mxu0 %v4177_v44  ;;  %2243 = vmatpush.bf16.msrb.mxu1 %v4305_v45  ;;  %v3858_v37 = vld [vmem:[#allocation5 + $0x1d0] sm:$0xf0]  ;;  %v3733_v43 = vor.u32 %v5338_v33, %v3730_v34 }
  0x72   :  { %v4288_v49 = vld [vmem:[#allocation5 + $0x520] sm:$0xf]  ;;  %v5480_v51 = vld [vmem:[#allocation5 + $0x52c] sm:$0xf0]  ;;  %v4161_v56 = vor.u32 %v5448_v48, %v4160_v47  ;;  %2256 = vmatpush.bf16.msrb.mxu2 %v4433_v46  ;;  %v3861_v47 = vor.u32 %v5370_v36, %v3858_v37  ;;  %v5358_v13 = vld [vmem:[#allocation5 + $0x164] sm:$0xf] }
  0x73   :  { %v4416_v52 = vld [vmem:[#allocation5 + $0x620] sm:$0xf]  ;;  %v5512_v53 = vld [vmem:[#allocation5 + $0x62c] sm:$0xf0]  ;;  %v4289_v60 = vor.u32 %v5480_v51, %v4288_v49  ;;  %2269 = vmatpush.bf16.msrb.mxu3 %v4561_v50  ;;  %v5334_v49 = vld [vmem:[#allocation5 + $0xa4] sm:$0xf] }
  0x74   :  { %v4544_v54 = vld [vmem:[#allocation5 + $0x720] sm:$0xf]  ;;  %v5544_v55 = vld [vmem:[#allocation5 + $0x72c] sm:$0xf0]  ;;  %v4417_v61 = vor.u32 %v5512_v53, %v4416_v52  ;;  %v3714_v50 = vld [vmem:[#allocation5 + $0xb0] sm:$0xf0] }
  0x75   :  { %v4144_v57 = vld [vmem:[#allocation5 + $0x400] sm:$0xf]  ;;  %v5444_v58 = vld [vmem:[#allocation5 + $0x40c] sm:$0xf0]  ;;  %v4545_v2 = vor.u32 %v5544_v55, %v4544_v54  ;;  %2231 = vmatpush.bf16.msrb.mxu0 %v4161_v56  ;;  %2244 = vmatpush.bf16.msrb.mxu1 %v4289_v60  ;;  %v5366_v51 = vld [vmem:[#allocation5 + $0x1a4] sm:$0xf]  ;;  %v3717_v55 = vor.u32 %v5334_v49, %v3714_v50 }
  0x76   :  { %v4272_v59 = vld [vmem:[#allocation5 + $0x500] sm:$0xf]  ;;  %v5476_v62 = vld [vmem:[#allocation5 + $0x50c] sm:$0xf0]  ;;  %v4145_v10 = vor.u32 %v5444_v58, %v4144_v57  ;;  %2257 = vmatpush.bf16.msrb.mxu2 %v4417_v61  ;;  %v3842_v52 = vld [vmem:[#allocation5 + $0x1b0] sm:$0xf0] }
  0x77   :  { %v4880_v0 = vld [vmem:[#allocation5 + $0x9c0] sm:$0xf]  ;;  %v5628_v1 = vld [vmem:[#allocation5 + $0x9cc] sm:$0x30]  ;;  %v4273_v15 = vor.u32 %v5476_v62, %v4272_v59  ;;  %2270 = vmatpush.bf16.msrb.mxu3 %v4545_v2  ;;  %v3845_v59 = vor.u32 %v5366_v51, %v3842_v52  ;;  %v5330_v61 = vld [vmem:[#allocation5 + $0x84] sm:$0xf] }
  0x78   :  { %v4400_v3 = vld [vmem:[#allocation5 + $0x600] sm:$0xf]  ;;  %v5508_v4 = vld [vmem:[#allocation5 + $0x60c] sm:$0xf0]  ;;  %v4881_v11 = vor.u32 %v5628_v1, %v4880_v0  ;;  %v3698_v62 = vld [vmem:[#allocation5 + $0x90] sm:$0xf0] }
  0x79   :  { %v4528_v5 = vld [vmem:[#allocation5 + $0x700] sm:$0xf]  ;;  %v5540_v6 = vld [vmem:[#allocation5 + $0x70c] sm:$0xf0]  ;;  %v4401_v18 = vor.u32 %v5508_v4, %v4400_v3  ;;  %2232 = vmatpush.bf16.msrb.mxu0 %v4145_v10  ;;  %2245 = vmatpush.bf16.msrb.mxu1 %v4273_v15  ;;  %v5362_v0 = vld [vmem:[#allocation5 + $0x184] sm:$0xf]  ;;  %v3701_v4 = vor.u32 %v5330_v61, %v3698_v62 }
  0x7a   :  { %v4768_v7 = vld [vmem:[#allocation5 + $0x8e0] sm:$0xf]  ;;  %v5600_v8 = vld [vmem:[#allocation5 + $0x8ec] sm:$0xf0]  ;;  %v4529_v22 = vor.u32 %v5540_v6, %v4528_v5  ;;  %v2162_v31 = vsel %vm2160_vm0, %v4881_v11, 0 }
  0x7b   :  { %v4752_v20 = vld [vmem:[#allocation5 + $0x8c0] sm:$0xf]  ;;  %v4769_v23 = vor.u32 %v5600_v8, %v4768_v7  ;;  %v5596_v24 = vld [vmem:[#allocation5 + $0x8cc] sm:$0xf0]  ;;  %2258 = vmatpush.bf16.msrb.mxu2 %v4401_v18  ;;  %v3826_v1 = vld [vmem:[#allocation5 + $0x190] sm:$0xf0] }
  0x7c   :  { %v240_v21 = vld [vmem:[#allocation2 + $0x30] sm:$0xff]  ;;  %v238_v25 = vld [vmem:[#allocation2 + $0x20] sm:$0xff]  ;;  %2271 = vmatpush.bf16.msrb.mxu3 %v4529_v22  ;;  %v4753_v40 = vor.u32 %v5596_v24, %v4752_v20  ;;  %2246 = vmatmul.bf16.vlgmr.msrb.gmra.mxu1 %v6259_v41  ;;  %v3829_v8 = vor.u32 %v5362_v0, %v3826_v1 }
  0x7d   :  { %v4864_v28 = vld [vmem:[#allocation5 + $0x9a0] sm:$0xf]  ;;  %v5624_v29 = vld [vmem:[#allocation5 + $0x9ac] sm:$0xf0]  ;;  %v6253_v35 = vpack.c.bf16 %v240_v21, %v240_v21  ;;  %v6255_v38 = vpack.c.bf16 %v238_v25, %v238_v25  ;;  %2277 = vmatpush.bf16.msra.mxu0 %v4769_v23  ;;  %2291 = vmatpush.bf16.msra.mxu1 %v2162_v31  ;;  %v5326_v11 = vld [vmem:[#allocation5 + $0x64] sm:$0xf] }
  0x7e   :  { %v4865_v42 = vor.u32 %v5624_v29, %v4864_v28  ;;  %v4736_v44 = vld [vmem:[#allocation5 + $0x8a0] sm:$0xf]  ;;  %v5592_v45 = vld [vmem:[#allocation5 + $0x8ac] sm:$0xf0]  ;;  %v3810_v14 = vld [vmem:[#allocation5 + $0x170] sm:$0xf0]  ;;  %v3685_v19 = vor.u32 %v5326_v11, %v3682_v12 }
  0x7f   :  { %2303 = vmatpush.bf16.msra.mxu2 %v3749_v27  ;;  %v4848_v46 = vld [vmem:[#allocation5 + $0x980] sm:$0xf]  ;;  %v5620_v48 = vld [vmem:[#allocation5 + $0x98c] sm:$0xf0]  ;;  %2233 = vmatmul.bf16.vlgmr.msrb.gmra.mxu0 %v6255_v38  ;;  %v4737_v53 = vor.u32 %v5592_v45, %v4736_v44  ;;  %v3813_v23 = vor.u32 %v5358_v13, %v3810_v14  ;;  %v5322_v25 = vld [vmem:[#allocation5 + $0x44] sm:$0xf] }
  0x80   :  { %2316 = vmatpush.bf16.msra.mxu3 %v3877_v32  ;;  %2259 = vmatmul.bf16.vlgmr.msrb.gmra.mxu2 %v6253_v35  ;;  %v4849_v54 = vor.u32 %v5620_v48, %v4848_v46  ;;  %v4720_v56 = vld [vmem:[#allocation5 + $0x880] sm:$0xf]  ;;  %v5588_v57 = vld [vmem:[#allocation5 + $0x88c] sm:$0xf0]  ;;  %v3666_v26 = vld [vmem:[#allocation5 + $0x50] sm:$0xf0] }
  0x81   :  { %2272 = vmatmul.bf16.vlgmr.msrb.gmra.mxu3 %v6257_v39  ;;  %2278 = vmatpush.bf16.msra.mxu0 %v4753_v40  ;;  %v4832_v58 = vld [vmem:[#allocation5 + $0x960] sm:$0xf]  ;;  %v5616_v60 = vld [vmem:[#allocation5 + $0x96c] sm:$0xf0]  ;;  %v4721_v2 = vor.u32 %v5588_v57, %v4720_v56  ;;  %v5354_v27 = vld [vmem:[#allocation5 + $0x144] sm:$0xf]  ;;  %v3669_v33 = vor.u32 %v5322_v25, %v3666_v26 }
  0x82   :  { %2292 = vmatpush.bf16.msra.mxu1 %v4865_v42  ;;  %v4833_v3 = vor.u32 %v5616_v60, %v4832_v58  ;;  %v4704_v5 = vld [vmem:[#allocation5 + $0x860] sm:$0xf]  ;;  %v5584_v6 = vld [vmem:[#allocation5 + $0x86c] sm:$0xf0]  ;;  %v3794_v28 = vld [vmem:[#allocation5 + $0x150] sm:$0xf0] }
  0x83   :  { %2304 = vmatpush.bf16.msra.mxu2 %v3733_v43  ;;  %v4816_v7 = vld [vmem:[#allocation5 + $0x940] sm:$0xf]  ;;  %v5612_v10 = vld [vmem:[#allocation5 + $0x94c] sm:$0xf0]  ;;  %v4705_v15 = vor.u32 %v5584_v6, %v4704_v5  ;;  %v5318_v37 = vld [vmem:[#allocation5 + $0x24] sm:$0xf]  ;;  %v3797_v40 = vor.u32 %v5354_v27, %v3794_v28 }
  0x84   :  { %2317 = vmatpush.bf16.msra.mxu3 %v3861_v47  ;;  %v4817_v18 = vor.u32 %v5612_v10, %v4816_v7  ;;  %v4688_v20 = vld [vmem:[#allocation5 + $0x840] sm:$0xf]  ;;  %v5580_v21 = vld [vmem:[#allocation5 + $0x84c] sm:$0xf0]  ;;  %v3650_v42 = vld [vmem:[#allocation5 + $0x30] sm:$0xf0] }
  0x85   :  { %2279 = vmatpush.bf16.msra.mxu0 %v4737_v53  ;;  %v4800_v22 = vld [vmem:[#allocation5 + $0x920] sm:$0xf]  ;;  %v5608_v24 = vld [vmem:[#allocation5 + $0x92c] sm:$0xf0]  ;;  %v4689_v29 = vor.u32 %v5580_v21, %v4688_v20  ;;  %v5350_v43 = vld [vmem:[#allocation5 + $0x124] sm:$0xf]  ;;  %v3653_v53 = vor.u32 %v5318_v37, %v3650_v42 }
  0x86   :  { %2293 = vmatpush.bf16.msra.mxu1 %v4849_v54  ;;  %v4672_v30 = vld [vmem:[#allocation5 + $0x820] sm:$0xf]  ;;  %v5576_v31 = vld [vmem:[#allocation5 + $0x82c] sm:$0xf0]  ;;  %v4801_v32 = vor.u32 %v5608_v24, %v4800_v22  ;;  %v3778_v44 = vld [vmem:[#allocation5 + $0x130] sm:$0xf0] }
  0x87   :  { %2305 = vmatpush.bf16.msra.mxu2 %v3717_v55  ;;  %v4784_v34 = vld [vmem:[#allocation5 + $0x900] sm:$0xf]  ;;  %v5604_v36 = vld [vmem:[#allocation5 + $0x90c] sm:$0xf0]  ;;  %v5406_v45 = vld [vmem:[#allocation5 + $0x2e4] sm:$0xf]  ;;  %v4673_v48 = vor.u32 %v5576_v31, %v4672_v30  ;;  %v3781_v57 = vor.u32 %v5350_v43, %v3778_v44 }
  0x88   :  { %2318 = vmatpush.bf16.msra.mxu3 %v3845_v59  ;;  %v4002_v46 = vld [vmem:[#allocation5 + $0x2f0] sm:$0xf0]  ;;  %v4656_v47 = vld [vmem:[#allocation5 + $0x800] sm:$0xf]  ;;  %v5572_v49 = vld [vmem:[#allocation5 + $0x80c] sm:$0xf0]  ;;  %v4785_v52 = vor.u32 %v5604_v36, %v4784_v34 }
  0x89   :  { %2280 = vmatpush.bf16.msra.mxu0 %v4721_v2  ;;  %v5314_v50 = vld [vmem:[#allocation5 + $0x4] sm:$0xf]  ;;  %v3634_v51 = vld [vmem:[#allocation5 + $0x10] sm:$0xf0]  ;;  %v243_v56 = vld [vmem:[#allocation2 + $0x48] sm:$0xff]  ;;  %v4005_v58 = vor.u32 %v5406_v45, %v4002_v46  ;;  %v4657_v1 = vor.u32 %v5572_v49, %v4656_v47 }
  0x8a   :  { %2294 = vmatpush.bf16.msra.mxu1 %v4833_v3  ;;  %v5346_v54 = vld [vmem:[#allocation5 + $0x104] sm:$0xf]  ;;  %v3762_v55 = vld [vmem:[#allocation5 + $0x110] sm:$0xf0]  ;;  %v6265_v5 = vpack.c.bf16 %v243_v56, %v243_v56  ;;  %v3637_v6 = vor.u32 %v5314_v50, %v3634_v51 }
  0x8b   :  { %2306 = vmatpush.bf16.msra.mxu2 %v3701_v4  ;;  %v5402_v59 = vld [vmem:[#allocation5 + $0x2c4] sm:$0xf]  ;;  %v4130_v61 = vld [vmem:[#allocation5 + $0x3f0] sm:$0xf0]  ;;  %v3765_v10 = vor.u32 %v5346_v54, %v3762_v55 }
  0x8c   :  { %2319 = vmatpush.bf16.msra.mxu3 %v3829_v8  ;;  %v5438_v60 = vld [vmem:[#allocation5 + $0x3e4] sm:$0xf]  ;;  %v3986_v62 = vld [vmem:[#allocation5 + $0x2d0] sm:$0xf0] }
  0x8d   :  { %2281 = vmatpush.bf16.msra.mxu0 %v4705_v15  ;;  %v5470_v0 = vld [vmem:[#allocation5 + $0x4e4] sm:$0xf]  ;;  %v4258_v2 = vld [vmem:[#allocation5 + $0x4f0] sm:$0xf0]  ;;  %v4133_v7 = vor.u32 %v5438_v60, %v4130_v61  ;;  %v3989_v11 = vor.u32 %v5402_v59, %v3986_v62 }
  0x8e   :  { %2295 = vmatpush.bf16.msra.mxu1 %v4817_v18  ;;  %v5502_v3 = vld [vmem:[#allocation5 + $0x5e4] sm:$0xf]  ;;  %v4386_v4 = vld [vmem:[#allocation5 + $0x5f0] sm:$0xf0]  ;;  %v4261_v15 = vor.u32 %v5470_v0, %v4258_v2 }
  0x8f   :  { %2307 = vmatpush.bf16.msra.mxu2 %v3685_v19  ;;  %v242_v8 = vld [vmem:[#allocation2 + $0x40] sm:$0xff]  ;;  %v5398_v12 = vld [vmem:[#allocation5 + $0x2a4] sm:$0xf]  ;;  %v4389_v18 = vor.u32 %v5502_v3, %v4386_v4 }
  0x90   :  { %2320 = vmatpush.bf16.msra.mxu3 %v3813_v23  ;;  %v5434_v13 = vld [vmem:[#allocation5 + $0x3c4] sm:$0xf]  ;;  %v4114_v14 = vld [vmem:[#allocation5 + $0x3d0] sm:$0xf0]  ;;  %v6267_v22 = vpack.c.bf16 %v242_v8, %v242_v8 }
  0x91   :  { %2282 = vmatpush.bf16.msra.mxu0 %v4689_v29  ;;  %v3970_v19 = vld [vmem:[#allocation5 + $0x2b0] sm:$0xf0]  ;;  %v5466_v20 = vld [vmem:[#allocation5 + $0x4c4] sm:$0xf]  ;;  %v4117_v25 = vor.u32 %v5434_v13, %v4114_v14 }
  0x92   :  { %2296 = vmatpush.bf16.msra.mxu1 %v4801_v32  ;;  %v4242_v21 = vld [vmem:[#allocation5 + $0x4d0] sm:$0xf0]  ;;  %v5498_v23 = vld [vmem:[#allocation5 + $0x5c4] sm:$0xf]  ;;  %v3973_v26 = vor.u32 %v5398_v12, %v3970_v19 }
  0x93   :  { %2308 = vmatpush.bf16.msra.mxu2 %v3669_v33  ;;  %v4370_v24 = vld [vmem:[#allocation5 + $0x5d0] sm:$0xf0]  ;;  %v5394_v27 = vld [vmem:[#allocation5 + $0x284] sm:$0xf]  ;;  %v4245_v30 = vor.u32 %v5466_v20, %v4242_v21 }
  0x94   :  { %2321 = vmatpush.bf16.msra.mxu3 %v3797_v40  ;;  %v5430_v28 = vld [vmem:[#allocation5 + $0x3a4] sm:$0xf]  ;;  %v4098_v29 = vld [vmem:[#allocation5 + $0x3b0] sm:$0xf0]  ;;  %v4373_v31 = vor.u32 %v5498_v23, %v4370_v24 }
  0x95   :  { %2283 = vmatpush.bf16.msra.mxu0 %v4673_v48  ;;  %v3954_v32 = vld [vmem:[#allocation5 + $0x290] sm:$0xf0]  ;;  %v5462_v33 = vld [vmem:[#allocation5 + $0x4a4] sm:$0xf]  ;;  %v4101_v40 = vor.u32 %v5430_v28, %v4098_v29 }
  0x96   :  { %2297 = vmatpush.bf16.msra.mxu1 %v4785_v52  ;;  %v4226_v34 = vld [vmem:[#allocation5 + $0x4b0] sm:$0xf0]  ;;  %v5494_v36 = vld [vmem:[#allocation5 + $0x5a4] sm:$0xf]  ;;  %v3957_v42 = vor.u32 %v5394_v27, %v3954_v32 }
  0x97   :  { %2309 = vmatpush.bf16.msra.mxu2 %v3653_v53  ;;  %v4354_v37 = vld [vmem:[#allocation5 + $0x5b0] sm:$0xf0]  ;;  %v5426_v43 = vld [vmem:[#allocation5 + $0x384] sm:$0xf]  ;;  %v4229_v45 = vor.u32 %v5462_v33, %v4226_v34 }
  0x98   :  { %2322 = vmatpush.bf16.msra.mxu3 %v3781_v57  ;;  %v4082_v44 = vld [vmem:[#allocation5 + $0x390] sm:$0xf0]  ;;  %v4357_v46 = vor.u32 %v5494_v36, %v4354_v37  ;;  %v5390_v47 = vld [vmem:[#allocation5 + $0x264] sm:$0xf] }
  0x99   :  { %2284 = vmatpush.bf16.msra.mxu0 %v4657_v1  ;;  %4894 = vmatmul.msk.bf16.vlgmr.msra.gmra.mxu1 %vm2156_vm1, %v6265_v5  ;;  %v3938_v48 = vld [vmem:[#allocation5 + $0x270] sm:$0xf0]  ;;  %v5458_v49 = vld [vmem:[#allocation5 + $0x484] sm:$0xf]  ;;  %v4085_v53 = vor.u32 %v5426_v43, %v4082_v44 }
  0x9a   :  { %2329 = vmatpush.bf16.msrb.mxu1 %v4005_v58  ;;  %v4210_v50 = vld [vmem:[#allocation5 + $0x490] sm:$0xf0]  ;;  %v5490_v51 = vld [vmem:[#allocation5 + $0x584] sm:$0xf]  ;;  %v3941_v54 = vor.u32 %v5390_v47, %v3938_v48 }
  0x9b   :  { %2310 = vmatpush.bf16.msra.mxu2 %v3637_v6  ;;  %v4338_v52 = vld [vmem:[#allocation5 + $0x590] sm:$0xf0]  ;;  %v5422_v55 = vld [vmem:[#allocation5 + $0x364] sm:$0xf]  ;;  %v4213_v57 = vor.u32 %v5458_v49, %v4210_v50 }
  0x9c   :  { %2323 = vmatpush.bf16.msra.mxu3 %v3765_v10  ;;  %2285 = vmatmul.bf16.vlgmr.msra.gmra.mxu0 %v6267_v22  ;;  %v4066_v56 = vld [vmem:[#allocation5 + $0x370] sm:$0xf0]  ;;  %v4341_v58 = vor.u32 %v5490_v51, %v4338_v52  ;;  %v5386_v59 = vld [vmem:[#allocation5 + $0x244] sm:$0xf] }
  0x9d   :  { %2342 = vmatpush.bf16.msrb.mxu0 %v4133_v7  ;;  %v3922_v60 = vld [vmem:[#allocation5 + $0x250] sm:$0xf0]  ;;  %v5454_v61 = vld [vmem:[#allocation5 + $0x464] sm:$0xf]  ;;  %v4069_v2 = vor.u32 %v5422_v55, %v4066_v56 }
  0x9e   :  { %2330 = vmatpush.bf16.msrb.mxu1 %v3989_v11  ;;  %2311 = vmatmul.bf16.vlgmr.msra.gmra.mxu2 %v6243_v9  ;;  %v4194_v62 = vld [vmem:[#allocation5 + $0x470] sm:$0xf0]  ;;  %v5486_v0 = vld [vmem:[#allocation5 + $0x564] sm:$0xf]  ;;  %v3925_v3 = vor.u32 %v5386_v59, %v3922_v60 }
  0x9f   :  { %2355 = vmatpush.bf16.msrb.mxu2 %v4261_v15  ;;  %2324 = vmatmul.bf16.vlgmr.msra.gmra.mxu3 %v6247_v17  ;;  %v4322_v1 = vld [vmem:[#allocation5 + $0x570] sm:$0xf0]  ;;  %v5418_v4 = vld [vmem:[#allocation5 + $0x344] sm:$0xf]  ;;  %v4197_v7 = vor.u32 %v5454_v61, %v4194_v62 }
  0xa0   :  { %2368 = vmatpush.bf16.msrb.mxu3 %v4389_v18  ;;  %v4050_v6 = vld [vmem:[#allocation5 + $0x350] sm:$0xf0]  ;;  %v4325_v8 = vor.u32 %v5486_v0, %v4322_v1  ;;  %v5382_v10 = vld [vmem:[#allocation5 + $0x224] sm:$0xf] }
  0xa1   :  { %2343 = vmatpush.bf16.msrb.mxu0 %v4117_v25  ;;  %v3906_v11 = vld [vmem:[#allocation5 + $0x230] sm:$0xf0]  ;;  %v5450_v12 = vld [vmem:[#allocation5 + $0x444] sm:$0xf]  ;;  %v4053_v18 = vor.u32 %v5418_v4, %v4050_v6 }
  0xa2   :  { %2331 = vmatpush.bf16.msrb.mxu1 %v3973_v26  ;;  %v4178_v13 = vld [vmem:[#allocation5 + $0x450] sm:$0xf0]  ;;  %v5482_v14 = vld [vmem:[#allocation5 + $0x544] sm:$0xf]  ;;  %v3909_v19 = vor.u32 %v5382_v10, %v3906_v11 }
  0xa3   :  { %2356 = vmatpush.bf16.msrb.mxu2 %v4245_v30  ;;  %v4306_v15 = vld [vmem:[#allocation5 + $0x550] sm:$0xf0]  ;;  %v5378_v20 = vld [vmem:[#allocation5 + $0x204] sm:$0xf]  ;;  %v4181_v24 = vor.u32 %v5450_v12, %v4178_v13 }
  0xa4   :  { %2369 = vmatpush.bf16.msrb.mxu3 %v4373_v31  ;;  %v5414_v21 = vld [vmem:[#allocation5 + $0x324] sm:$0xf]  ;;  %v4034_v23 = vld [vmem:[#allocation5 + $0x330] sm:$0xf0]  ;;  %v4309_v25 = vor.u32 %v5482_v14, %v4306_v15 }
  0xa5   :  { %2344 = vmatpush.bf16.msrb.mxu0 %v4101_v40  ;;  %v3890_v26 = vld [vmem:[#allocation5 + $0x210] sm:$0xf0]  ;;  %v5446_v27 = vld [vmem:[#allocation5 + $0x424] sm:$0xf]  ;;  %v4037_v32 = vor.u32 %v5414_v21, %v4034_v23 }
  0xa6   :  { %2332 = vmatpush.bf16.msrb.mxu1 %v3957_v42  ;;  %v4162_v28 = vld [vmem:[#allocation5 + $0x430] sm:$0xf0]  ;;  %v5478_v29 = vld [vmem:[#allocation5 + $0x524] sm:$0xf]  ;;  %v3893_v37 = vor.u32 %v5378_v20, %v3890_v26 }
  0xa7   :  { %2357 = vmatpush.bf16.msrb.mxu2 %v4229_v45  ;;  %v4290_v30 = vld [vmem:[#allocation5 + $0x530] sm:$0xf0]  ;;  %v5534_v31 = vld [vmem:[#allocation5 + $0x6e4] sm:$0xf]  ;;  %v4165_v44 = vor.u32 %v5446_v27, %v4162_v28 }
  0xa8   :  { %2370 = vmatpush.bf16.msrb.mxu3 %v4357_v46  ;;  %v4514_v33 = vld [vmem:[#allocation5 + $0x6f0] sm:$0xf0]  ;;  %v5410_v34 = vld [vmem:[#allocation5 + $0x304] sm:$0xf]  ;;  %v4293_v45 = vor.u32 %v5478_v29, %v4290_v30 }
  0xa9   :  { %2345 = vmatpush.bf16.msrb.mxu0 %v4085_v53  ;;  %v4018_v36 = vld [vmem:[#allocation5 + $0x310] sm:$0xf0]  ;;  %v5442_v40 = vld [vmem:[#allocation5 + $0x404] sm:$0xf]  ;;  %v4517_v49 = vor.u32 %v5534_v31, %v4514_v33 }
  0xaa   :  { %2333 = vmatpush.bf16.msrb.mxu1 %v3941_v54  ;;  %v4146_v42 = vld [vmem:[#allocation5 + $0x410] sm:$0xf0]  ;;  %v5566_v43 = vld [vmem:[#allocation5 + $0x7e4] sm:$0xf]  ;;  %v4021_v53 = vor.u32 %v5410_v34, %v4018_v36 }
  0xab   :  { %2358 = vmatpush.bf16.msrb.mxu2 %v4213_v57  ;;  %v4642_v46 = vld [vmem:[#allocation5 + $0x7f0] sm:$0xf0]  ;;  %v5626_v47 = vld [vmem:[#allocation5 + $0x9c4] sm:$0xf]  ;;  %v4149_v59 = vor.u32 %v5442_v40, %v4146_v42 }
  0xac   :  { %2371 = vmatpush.bf16.msrb.mxu3 %v4341_v58  ;;  %v4882_v48 = vld [vmem:[#allocation5 + $0x9d0] sm:$0x30]  ;;  %v5474_v50 = vld [vmem:[#allocation5 + $0x504] sm:$0xf]  ;;  %v4645_v57 = vor.u32 %v5566_v43, %v4642_v46 }
  0xad   :  { %2346 = vmatpush.bf16.msrb.mxu0 %v4069_v2  ;;  %v4274_v51 = vld [vmem:[#allocation5 + $0x510] sm:$0xf0]  ;;  %v5530_v52 = vld [vmem:[#allocation5 + $0x6c4] sm:$0xf]  ;;  %v4885_v58 = vor.u32 %v5626_v47, %v4882_v48 }
  0xae   :  { %2334 = vmatpush.bf16.msrb.mxu1 %v3925_v3  ;;  %v4498_v54 = vld [vmem:[#allocation5 + $0x6d0] sm:$0xf0]  ;;  %v5598_v55 = vld [vmem:[#allocation5 + $0x8e4] sm:$0xf]  ;;  %v4277_v60 = vor.u32 %v5474_v50, %v4274_v51 }
  0xaf   :  { %2359 = vmatpush.bf16.msrb.mxu2 %v4197_v7  ;;  %v4770_v56 = vld [vmem:[#allocation5 + $0x8f0] sm:$0xf0]  ;;  %v5562_v61 = vld [vmem:[#allocation5 + $0x7c4] sm:$0xf]  ;;  %v4501_v0 = vor.u32 %v5530_v52, %v4498_v54  ;;  %v2165_v7 = vsel %vm2160_vm0, %v4885_v58, 0 }
  0xb0   :  { %2372 = vmatpush.bf16.msrb.mxu3 %v4325_v8  ;;  %v4626_v62 = vld [vmem:[#allocation5 + $0x7d0] sm:$0xf0]  ;;  %v4773_v1 = vor.u32 %v5598_v55, %v4770_v56  ;;  %v5526_v2 = vld [vmem:[#allocation5 + $0x6a4] sm:$0xf] }
  0xb1   :  { %2347 = vmatpush.bf16.msrb.mxu0 %v4053_v18  ;;  %v4482_v3 = vld [vmem:[#allocation5 + $0x6b0] sm:$0xf0]  ;;  %v5594_v4 = vld [vmem:[#allocation5 + $0x8c4] sm:$0xf]  ;;  %v4629_v8 = vor.u32 %v5562_v61, %v4626_v62 }
  0xb2   :  { %2335 = vmatpush.bf16.msrb.mxu1 %v3909_v19  ;;  %v4754_v6 = vld [vmem:[#allocation5 + $0x8d0] sm:$0xf0]  ;;  %v5622_v10 = vld [vmem:[#allocation5 + $0x9a4] sm:$0xf]  ;;  %v4485_v14 = vor.u32 %v5526_v2, %v4482_v3 }
  0xb3   :  { %2360 = vmatpush.bf16.msrb.mxu2 %v4181_v24  ;;  %v4866_v11 = vld [vmem:[#allocation5 + $0x9b0] sm:$0xf0]  ;;  %v5558_v12 = vld [vmem:[#allocation5 + $0x7a4] sm:$0xf]  ;;  %v4757_v15 = vor.u32 %v5594_v4, %v4754_v6 }
  0xb4   :  { %2373 = vmatpush.bf16.msrb.mxu3 %v4309_v25  ;;  %v4610_v13 = vld [vmem:[#allocation5 + $0x7b0] sm:$0xf0]  ;;  %v5522_v18 = vld [vmem:[#allocation5 + $0x684] sm:$0xf]  ;;  %v4869_v19 = vor.u32 %v5622_v10, %v4866_v11 }
  0xb5   :  { %2348 = vmatpush.bf16.msrb.mxu0 %v4037_v32  ;;  %v4466_v20 = vld [vmem:[#allocation5 + $0x690] sm:$0xf0]  ;;  %v5590_v21 = vld [vmem:[#allocation5 + $0x8a4] sm:$0xf]  ;;  %v4613_v24 = vor.u32 %v5558_v12, %v4610_v13 }
  0xb6   :  { %2336 = vmatpush.bf16.msrb.mxu1 %v3893_v37  ;;  %v4738_v23 = vld [vmem:[#allocation5 + $0x8b0] sm:$0xf0]  ;;  %v5618_v25 = vld [vmem:[#allocation5 + $0x984] sm:$0xf]  ;;  %v4469_v29 = vor.u32 %v5522_v18, %v4466_v20  ;;  %v3752_v20 = vld [vmem:[#allocation5 + $0xe8] sm:$0xf] }
  0xb7   :  { %2361 = vmatpush.bf16.msrb.mxu2 %v4165_v44  ;;  %v4850_v26 = vld [vmem:[#allocation5 + $0x990] sm:$0xf0]  ;;  %v5554_v27 = vld [vmem:[#allocation5 + $0x784] sm:$0xf]  ;;  %v4741_v30 = vor.u32 %v5590_v21, %v4738_v23  ;;  %v5345_v21 = vld [vmem:[#allocation5 + $0xf4] sm:$0xf0] }
  0xb8   :  { %2374 = vmatpush.bf16.msrb.mxu3 %v4293_v45  ;;  %v4594_v28 = vld [vmem:[#allocation5 + $0x790] sm:$0xf0]  ;;  %v5518_v31 = vld [vmem:[#allocation5 + $0x664] sm:$0xf]  ;;  %v4853_v32 = vor.u32 %v5618_v25, %v4850_v26  ;;  %v3880_v23 = vld [vmem:[#allocation5 + $0x1e8] sm:$0xf] }
  0xb9   :  { %2349 = vmatpush.bf16.msrb.mxu0 %v4021_v53  ;;  %2337 = vmatmul.bf16.vlgmr.msrb.gmra.mxu1 %v6240_v63  ;;  %v4450_v33 = vld [vmem:[#allocation5 + $0x670] sm:$0xf0]  ;;  %v5586_v34 = vld [vmem:[#allocation5 + $0x884] sm:$0xf]  ;;  %v4597_v37 = vor.u32 %v5554_v27, %v4594_v28 }
  0xba   :  { %2381 = vmatpush.bf16.msra.mxu1 %v4517_v49  ;;  %v4722_v36 = vld [vmem:[#allocation5 + $0x890] sm:$0xf0]  ;;  %v5614_v40 = vld [vmem:[#allocation5 + $0x964] sm:$0xf]  ;;  %v4453_v45 = vor.u32 %v5518_v31, %v4450_v33 }
  0xbb   :  { %2362 = vmatpush.bf16.msrb.mxu2 %v4149_v59  ;;  %v4834_v42 = vld [vmem:[#allocation5 + $0x970] sm:$0xf0]  ;;  %v5550_v43 = vld [vmem:[#allocation5 + $0x764] sm:$0xf]  ;;  %v4725_v46 = vor.u32 %v5586_v34, %v4722_v36  ;;  %v3736_v36 = vld [vmem:[#allocation5 + $0xc8] sm:$0xf] }
  0xbc   :  { %2375 = vmatpush.bf16.msrb.mxu3 %v4277_v60  ;;  %2350 = vmatmul.bf16.vlgmr.msrb.gmra.mxu0 %v6245_v16  ;;  %v4578_v44 = vld [vmem:[#allocation5 + $0x770] sm:$0xf0]  ;;  %v5514_v47 = vld [vmem:[#allocation5 + $0x644] sm:$0xf]  ;;  %v4837_v48 = vor.u32 %v5614_v40, %v4834_v42  ;;  %v5341_v42 = vld [vmem:[#allocation5 + $0xd4] sm:$0xf0] }
  0xbd   :  { %2394 = vmatpush.bf16.msra.mxu0 %v4645_v57  ;;  %v4434_v49 = vld [vmem:[#allocation5 + $0x650] sm:$0xf0]  ;;  %v5582_v50 = vld [vmem:[#allocation5 + $0x864] sm:$0xf]  ;;  %v4581_v52 = vor.u32 %v5550_v43, %v4578_v44  ;;  %v4136_v43 = vld [vmem:[#allocation5 + $0x3e8] sm:$0xf] }
  0xbe   :  { %2382 = vmatpush.bf16.msra.mxu1 %v4501_v0  ;;  %2363 = vmatmul.bf16.vlgmr.msrb.gmra.mxu2 %v6255_v38  ;;  %v4706_v51 = vld [vmem:[#allocation5 + $0x870] sm:$0xf0]  ;;  %v5610_v53 = vld [vmem:[#allocation5 + $0x944] sm:$0xf]  ;;  %v4437_v57 = vor.u32 %v5514_v47, %v4434_v49  ;;  %v5441_v44 = vld [vmem:[#allocation5 + $0x3f4] sm:$0xf0] }
  0xbf   :  { %2407 = vmatpush.bf16.msra.mxu2 %v4773_v1  ;;  %2376 = vmatmul.bf16.vlgmr.msrb.gmra.mxu3 %v6259_v41  ;;  %v4818_v54 = vld [vmem:[#allocation5 + $0x950] sm:$0xf0]  ;;  %v5546_v55 = vld [vmem:[#allocation5 + $0x744] sm:$0xf]  ;;  %v4709_v58 = vor.u32 %v5582_v50, %v4706_v51  ;;  %v3992_v49 = vld [vmem:[#allocation5 + $0x2c8] sm:$0xf]  ;;  %v3737_v51 = vor.u32 %v5341_v42, %v3736_v36 }
  0xc0   :  { %2421 = vmatpush.bf16.msra.mxu3 %v2165_v7  ;;  %v4562_v56 = vld [vmem:[#allocation5 + $0x750] sm:$0xf0]  ;;  %v5510_v59 = vld [vmem:[#allocation5 + $0x624] sm:$0xf]  ;;  %v4821_v60 = vor.u32 %v5610_v53, %v4818_v54  ;;  %v5405_v50 = vld [vmem:[#allocation5 + $0x2d4] sm:$0xf0] }
  0xc1   :  { %2395 = vmatpush.bf16.msra.mxu0 %v4629_v8  ;;  %v4418_v61 = vld [vmem:[#allocation5 + $0x630] sm:$0xf0]  ;;  %v5578_v62 = vld [vmem:[#allocation5 + $0x844] sm:$0xf]  ;;  %v4565_v1 = vor.u32 %v5546_v55, %v4562_v56  ;;  %v3720_v53 = vld [vmem:[#allocation5 + $0xa8] sm:$0xf] }
  0xc2   :  { %2383 = vmatpush.bf16.msra.mxu1 %v4485_v14  ;;  %v4690_v0 = vld [vmem:[#allocation5 + $0x850] sm:$0xf0]  ;;  %v5606_v2 = vld [vmem:[#allocation5 + $0x924] sm:$0xf]  ;;  %v4421_v7 = vor.u32 %v5510_v59, %v4418_v61  ;;  %v5337_v55 = vld [vmem:[#allocation5 + $0xb4] sm:$0xf0] }
  0xc3   :  { %2408 = vmatpush.bf16.msra.mxu2 %v4757_v15  ;;  %v4802_v3 = vld [vmem:[#allocation5 + $0x930] sm:$0xf0]  ;;  %v5542_v4 = vld [vmem:[#allocation5 + $0x724] sm:$0xf]  ;;  %v4693_v8 = vor.u32 %v5578_v62, %v4690_v0  ;;  %v4120_v56 = vld [vmem:[#allocation5 + $0x3c8] sm:$0xf]  ;;  %v3721_v0 = vor.u32 %v5337_v55, %v3720_v53 }
  0xc4   :  { %2422 = vmatpush.bf16.msra.mxu3 %v4869_v19  ;;  %v4546_v6 = vld [vmem:[#allocation5 + $0x730] sm:$0xf0]  ;;  %v5506_v10 = vld [vmem:[#allocation5 + $0x604] sm:$0xf]  ;;  %v4805_v13 = vor.u32 %v5606_v2, %v4802_v3  ;;  %v5369_v59 = vld [vmem:[#allocation5 + $0x1b4] sm:$0xf0] }
  0xc5   :  { %2396 = vmatpush.bf16.msra.mxu0 %v4613_v24  ;;  %v4402_v11 = vld [vmem:[#allocation5 + $0x610] sm:$0xf0]  ;;  %v5574_v12 = vld [vmem:[#allocation5 + $0x824] sm:$0xf]  ;;  %v4549_v19 = vor.u32 %v5542_v4, %v4546_v6  ;;  %v5377_v24 = vld [vmem:[#allocation5 + $0x1f4] sm:$0xf0] }
  0xc6   :  { %2384 = vmatpush.bf16.msra.mxu1 %v4469_v29  ;;  %v4674_v14 = vld [vmem:[#allocation5 + $0x830] sm:$0xf0]  ;;  %v5602_v15 = vld [vmem:[#allocation5 + $0x904] sm:$0xf]  ;;  %v4405_v27 = vor.u32 %v5506_v10, %v4402_v11  ;;  %v4008_v29 = vld [vmem:[#allocation5 + $0x2e8] sm:$0xf] }
  0xc7   :  { %2409 = vmatpush.bf16.msra.mxu2 %v4741_v30  ;;  %v4786_v18 = vld [vmem:[#allocation5 + $0x910] sm:$0xf0]  ;;  %v5538_v25 = vld [vmem:[#allocation5 + $0x704] sm:$0xf]  ;;  %v4677_v28 = vor.u32 %v5574_v12, %v4674_v14  ;;  %v5409_v30 = vld [vmem:[#allocation5 + $0x2f4] sm:$0xf0] }
  0xc8   :  { %2423 = vmatpush.bf16.msra.mxu3 %v4853_v32  ;;  %v4530_v26 = vld [vmem:[#allocation5 + $0x710] sm:$0xf0]  ;;  %v4789_v31 = vor.u32 %v5602_v15, %v4786_v18  ;;  %v3753_v32 = vor.u32 %v5345_v21, %v3752_v20  ;;  %v5570_v33 = vld [vmem:[#allocation5 + $0x804] sm:$0xf]  ;;  %v4009_v47 = vor.u32 %v5409_v30, %v4008_v29  ;;  %v3976_v61 = vld [vmem:[#allocation5 + $0x2a8] sm:$0xf] }
  0xc9   :  { %2397 = vmatpush.bf16.msra.mxu0 %v4597_v37  ;;  %v4658_v34 = vld [vmem:[#allocation5 + $0x810] sm:$0xf0]  ;;  %v3881_v37 = vor.u32 %v5377_v24, %v3880_v23  ;;  %v4533_v40 = vor.u32 %v5538_v25, %v4530_v26  ;;  %v5401_v62 = vld [vmem:[#allocation5 + $0x2b4] sm:$0xf0]  ;;  %v3704_v2 = vld [vmem:[#allocation5 + $0x88] sm:$0xf] }
  0xca   :  { %2385 = vmatpush.bf16.msra.mxu1 %v4453_v45  ;;  %v3864_v45 = vld [vmem:[#allocation5 + $0x1c8] sm:$0xf]  ;;  %v5333_v4 = vld [vmem:[#allocation5 + $0x94] sm:$0xf0]  ;;  %v3977_v11 = vor.u32 %v5401_v62, %v3976_v61  ;;  %v6284_v29 = vld [vmem:[#allocation7] sm:$0xf] }
  0xcb   :  { %2410 = vmatpush.bf16.msra.mxu2 %v4725_v46  ;;  %v5373_v46 = vld [vmem:[#allocation5 + $0x1d4] sm:$0xf0]  ;;  %v4104_v6 = vld [vmem:[#allocation5 + $0x3a8] sm:$0xf]  ;;  %v3705_v14 = vor.u32 %v5333_v4, %v3704_v2 }
  0xcc   :  { %2424 = vmatpush.bf16.msra.mxu3 %v4837_v48  ;;  %v4661_v48 = vor.u32 %v5570_v33, %v4658_v34  ;;  %v3865_v54 = vor.u32 %v5373_v46, %v3864_v45  ;;  %v5365_v10 = vld [vmem:[#allocation5 + $0x194] sm:$0xf0]  ;;  %v3960_v12 = vld [vmem:[#allocation5 + $0x288] sm:$0xf] }
  0xcd   :  { %2398 = vmatpush.bf16.msra.mxu0 %v4581_v52  ;;  %v4137_v52 = vor.u32 %v5441_v44, %v4136_v43  ;;  %v3688_v18 = vld [vmem:[#allocation5 + $0x68] sm:$0xf]  ;;  %v5329_v20 = vld [vmem:[#allocation5 + $0x74] sm:$0xf0]  ;;  %v572_v44 = vperm.slane %v6284_v29, 0 }
  0xce   :  { %2386 = vmatpush.bf16.msra.mxu1 %v4437_v57  ;;  %v5437_v57 = vld [vmem:[#allocation5 + $0x3d4] sm:$0xf0]  ;;  %v4088_v21 = vld [vmem:[#allocation5 + $0x388] sm:$0xf]  ;;  %v3689_v30 = vor.u32 %v5329_v20, %v3688_v18 }
  0xcf   :  { %2411 = vmatpush.bf16.msra.mxu2 %v4709_v58  ;;  %v3848_v58 = vld [vmem:[#allocation5 + $0x1a8] sm:$0xf]  ;;  %v5429_v23 = vld [vmem:[#allocation5 + $0x394] sm:$0xf0] }
  0xd0   :  { %2425 = vmatpush.bf16.msra.mxu3 %v4821_v60  ;;  %v3993_v60 = vor.u32 %v5405_v50, %v3992_v49  ;;  %v3849_v3 = vor.u32 %v5369_v59, %v3848_v58  ;;  %v3816_v24 = vld [vmem:[#allocation5 + $0x168] sm:$0xf]  ;;  %v5361_v25 = vld [vmem:[#allocation5 + $0x174] sm:$0xf0] }
  0xd1   :  { %2399 = vmatpush.bf16.msra.mxu0 %v4565_v1  ;;  %v4121_v1 = vor.u32 %v5437_v57, %v4120_v56  ;;  %v3817_v33 = vor.u32 %v5361_v25, %v3816_v24  ;;  %v5325_v34 = vld [vmem:[#allocation5 + $0x54] sm:$0xf0]  ;;  %v4072_v36 = vld [vmem:[#allocation5 + $0x368] sm:$0xf] }
  0xd2   :  { %2387 = vmatpush.bf16.msra.mxu1 %v4421_v7  ;;  %v5433_v7 = vld [vmem:[#allocation5 + $0x3b4] sm:$0xf0]  ;;  %v3928_v45 = vld [vmem:[#allocation5 + $0x248] sm:$0xf] }
  0xd3   :  { %2412 = vmatpush.bf16.msra.mxu2 %v4693_v8  ;;  %v3832_v8 = vld [vmem:[#allocation5 + $0x188] sm:$0xf]  ;;  %v4105_v15 = vor.u32 %v5433_v7, %v4104_v6  ;;  %v5357_v42 = vld [vmem:[#allocation5 + $0x154] sm:$0xf0] }
  0xd4   :  { %2426 = vmatpush.bf16.msra.mxu3 %v4805_v13  ;;  %v5397_v13 = vld [vmem:[#allocation5 + $0x294] sm:$0xf0]  ;;  %v3656_v49 = vld [vmem:[#allocation5 + $0x28] sm:$0xf] }
  0xd5   :  { %2400 = vmatpush.bf16.msra.mxu0 %v4549_v19  ;;  %v3833_v19 = vor.u32 %v5365_v10, %v3832_v8  ;;  %v3961_v26 = vor.u32 %v5397_v13, %v3960_v12  ;;  %v5389_v46 = vld [vmem:[#allocation5 + $0x254] sm:$0xf0]  ;;  %v3784_v55 = vld [vmem:[#allocation5 + $0x128] sm:$0xf] }
  0xd6   :  { %2388 = vmatpush.bf16.msra.mxu1 %v4405_v27  ;;  %v3944_v27 = vld [vmem:[#allocation5 + $0x268] sm:$0xf]  ;;  %v5421_v53 = vld [vmem:[#allocation5 + $0x354] sm:$0xf0]  ;;  %v3929_v57 = vor.u32 %v5389_v46, %v3928_v45 }
  0xd7   :  { %2413 = vmatpush.bf16.msra.mxu2 %v4677_v28  ;;  %v5393_v28 = vld [vmem:[#allocation5 + $0x274] sm:$0xf0]  ;;  %v3912_v59 = vld [vmem:[#allocation5 + $0x228] sm:$0xf] }
  0xd8   :  { %2427 = vmatpush.bf16.msra.mxu3 %v4789_v31  ;;  %v4089_v31 = vor.u32 %v5429_v23, %v4088_v21  ;;  %v3945_v43 = vor.u32 %v5393_v28, %v3944_v27  ;;  %v5353_v56 = vld [vmem:[#allocation5 + $0x134] sm:$0xf0]  ;;  %v3768_v2 = vld [vmem:[#allocation5 + $0x108] sm:$0xf] }
  0xd9   :  { %2401 = vmatpush.bf16.msra.mxu0 %v4533_v40  ;;  %2389 = vmatmul.bf16.vlgmr.msra.gmra.mxu1 %v6253_v35  ;;  %v3800_v40 = vld [vmem:[#allocation5 + $0x148] sm:$0xf]  ;;  %v3785_v6 = vor.u32 %v5353_v56, %v3784_v55  ;;  %v5349_v7 = vld [vmem:[#allocation5 + $0x114] sm:$0xf0] }
  0xda   :  { %2433 = vmatpush.bf16.msrb.mxu1 %v3753_v32  ;;  %v3672_v32 = vld [vmem:[#allocation5 + $0x48] sm:$0xf]  ;;  %v3801_v50 = vor.u32 %v5357_v42, %v3800_v40  ;;  %v5417_v10 = vld [vmem:[#allocation5 + $0x334] sm:$0xf0]  ;;  %v3769_v28 = vor.u32 %v5349_v7, %v3768_v2 }
  0xdb   :  { %2414 = vmatpush.bf16.msra.mxu2 %v4661_v48  ;;  %4895 = vmatmul.msk.bf16.vlgmr.msra.gmra.mxu3 %vm2156_vm1, %v6265_v5  ;;  %v4040_v8 = vld [vmem:[#allocation5 + $0x328] sm:$0xf]  ;;  %v5505_v18 = vld [vmem:[#allocation5 + $0x5f4] sm:$0xf0] }
  0xdc   :  { %2446 = vmatpush.bf16.msrb.mxu3 %v3881_v37  ;;  %2402 = vmatmul.bf16.vlgmr.msra.gmra.mxu0 %v6257_v39  ;;  %v5425_v37 = vld [vmem:[#allocation5 + $0x374] sm:$0xf0]  ;;  %v4264_v13 = vld [vmem:[#allocation5 + $0x4e8] sm:$0xf]  ;;  %v4041_v24 = vor.u32 %v5417_v10, %v4040_v8 }
  0xdd   :  { %2459 = vmatpush.bf16.msrb.mxu0 %v4009_v47  ;;  %v3673_v47 = vor.u32 %v5325_v34, %v3672_v32  ;;  %v4073_v48 = vor.u32 %v5425_v37, %v4072_v36  ;;  %v5381_v20 = vld [vmem:[#allocation5 + $0x214] sm:$0xf0]  ;;  %v4520_v25 = vld [vmem:[#allocation5 + $0x6e8] sm:$0xf] }
  0xde   :  { %2434 = vmatpush.bf16.msrb.mxu1 %v3737_v51  ;;  %2415 = vmatmul.bf16.vlgmr.msra.gmra.mxu2 %v6267_v22  ;;  %v5321_v51 = vld [vmem:[#allocation5 + $0x34] sm:$0xf0]  ;;  %v4376_v45 = vld [vmem:[#allocation5 + $0x5c8] sm:$0xf] }
  0xdf   :  { %2472 = vmatpush.bf16.msrb.mxu2 %v4137_v52  ;;  %v4056_v52 = vld [vmem:[#allocation5 + $0x348] sm:$0xf]  ;;  %v3657_v61 = vor.u32 %v5321_v51, %v3656_v49  ;;  %v5413_v32 = vld [vmem:[#allocation5 + $0x314] sm:$0xf0] }
  0xe0   :  { %2447 = vmatpush.bf16.msrb.mxu3 %v3865_v54  ;;  %v4057_v62 = vor.u32 %v5421_v53, %v4056_v52  ;;  %v2221_v27 = vpop.f32.mrf.mxu3  ;;  %v5469_v42 = vld [vmem:[#allocation5 + $0x4d4] sm:$0xf0]  ;;  %v4504_v49 = vld [vmem:[#allocation5 + $0x6c8] sm:$0xf] }
  0xe1   :  { %2460 = vmatpush.bf16.msrb.mxu0 %v3993_v60  ;;  %v5385_v60 = vld [vmem:[#allocation5 + $0x234] sm:$0xf0]  ;;  %v4232_v55 = vld [vmem:[#allocation5 + $0x4a8] sm:$0xf] }
  0xe2   :  { %2435 = vmatpush.bf16.msrb.mxu1 %v3721_v0  ;;  %v3640_v0 = vld [vmem:[#allocation5 + $0x8] sm:$0xf]  ;;  %v3913_v12 = vor.u32 %v5385_v60, %v3912_v59  ;;  %v5501_v46 = vld [vmem:[#allocation5 + $0x5d4] sm:$0xf0] }
  0xe3   :  { %2473 = vmatpush.bf16.msrb.mxu2 %v4121_v1  ;;  %v5317_v1 = vld [vmem:[#allocation5 + $0x14] sm:$0xf0]  ;;  %v4377_v56 = vor.u32 %v5501_v46, %v4376_v45  ;;  %v4360_v60 = vld [vmem:[#allocation5 + $0x5a8] sm:$0xf] }
  0xe4   :  { %2448 = vmatpush.bf16.msrb.mxu3 %v3849_v3  ;;  %v2195_v3 = vpop.f32.mrf.mxu1  ;;  %v3641_v23 = vor.u32 %v5317_v1, %v3640_v0  ;;  %v5565_v59 = vld [vmem:[#allocation5 + $0x7d4] sm:$0xf0]  ;;  %v4488_v0 = vld [vmem:[#allocation5 + $0x6a8] sm:$0xf] }
  0xe5   :  { %2461 = vmatpush.bf16.msrb.mxu0 %v3977_v11  ;;  %v2182_v54 = vpop.f32.mrf.mxu0  ;;  %v5529_v1 = vld [vmem:[#allocation5 + $0x6b4] sm:$0xf0]  ;;  %v4616_v10 = vld [vmem:[#allocation5 + $0x7a8] sm:$0xf] }
  0xe6   :  { %2436 = vmatpush.bf16.msrb.mxu1 %v3705_v14  ;;  %v2183_v58 = vadd.f32 %v2182_v54, %v572_v44  ;;  %v5473_v14 = vld [vmem:[#allocation5 + $0x4f4] sm:$0xf0]  ;;  %v4312_v45 = vld [vmem:[#allocation5 + $0x548] sm:$0xf] }
  0xe7   :  { %2474 = vmatpush.bf16.msrb.mxu2 %v4105_v15  ;;  %v4392_v15 = vld [vmem:[#allocation5 + $0x5e8] sm:$0xf]  ;;  %v5569_v44 = vld [vmem:[#allocation5 + $0x7f4] sm:$0xf0] }
  0xe8   :  { %2449 = vmatpush.bf16.msrb.mxu3 %v3833_v19  ;;  %v2208_v4 = vpop.f32.mrf.mxu2  ;;  %v2196_v11 = vadd.f32 %v2195_v3, %v2183_v58  ;;  %v3896_v19 = vld [vmem:[#allocation5 + $0x208] sm:$0xf]  ;;  %v4393_v37 = vor.u32 %v5505_v18, %v4392_v15  ;;  %v2223_v2 = vpop.f32.mrf.mxu3  ;;  %v5461_v8 = vld [vmem:[#allocation5 + $0x494] sm:$0xf0] }
  0xe9   :  { %2462 = vmatpush.bf16.msrb.mxu0 %v3961_v26  ;;  %v5537_v26 = vld [vmem:[#allocation5 + $0x6f4] sm:$0xf0]  ;;  %v3897_v40 = vor.u32 %v5381_v20, %v3896_v19  ;;  %v4632_v58 = vld [vmem:[#allocation5 + $0x7c8] sm:$0xf] }
  0xea   :  { %2437 = vmatpush.bf16.msrb.mxu1 %v3689_v30  ;;  %v2209_v21 = vadd.f32 %v2208_v4, %v2196_v11  ;;  %v4265_v30 = vor.u32 %v5473_v14, %v4264_v13  ;;  %v4633_v4 = vor.u32 %v5565_v59, %v4632_v58  ;;  %v5561_v11 = vld [vmem:[#allocation5 + $0x7b4] sm:$0xf0]  ;;  %v4489_v14 = vor.u32 %v5529_v1, %v4488_v0  ;;  %v4472_v15 = vld [vmem:[#allocation5 + $0x688] sm:$0xf] }
  0xeb   :  { %2475 = vmatpush.bf16.msrb.mxu2 %v4089_v31  ;;  %v4024_v31 = vld [vmem:[#allocation5 + $0x308] sm:$0xf]  ;;  %v5493_v13 = vld [vmem:[#allocation5 + $0x594] sm:$0xf0]  ;;  %v4617_v20 = vor.u32 %v5561_v11, %v4616_v10 }
  0xec   :  { %2450 = vmatpush.bf16.msrb.mxu3 %v3817_v33  ;;  %v4248_v33 = vld [vmem:[#allocation5 + $0x4c8] sm:$0xf]  ;;  %v6287_v34 = vadd.f32 %v2221_v27, %v2209_v21  ;;  %v2197_v51 = vpop.f32.mrf.mxu1  ;;  %v5525_v18 = vld [vmem:[#allocation5 + $0x694] sm:$0xf0] }
  0xed   :  { %2463 = vmatpush.bf16.msrb.mxu0 %v3945_v43  ;;  %v2184_v36 = vpop.f32.mrf.mxu0  ;;  %v4648_v43 = vld [vmem:[#allocation5 + $0x7e8] sm:$0xf]  ;;  %v4249_v53 = vor.u32 %v5469_v42, %v4248_v33  ;;  %v5453_v42 = vld [vmem:[#allocation5 + $0x454] sm:$0xf0] }
  0xee   :  { %2438 = vmatpush.bf16.msrb.mxu1 %v3673_v47  ;;  %v4521_v47 = vor.u32 %v5537_v26, %v4520_v25  ;;  %v4649_v54 = vor.u32 %v5569_v44, %v4648_v43  ;;  %v4200_v21 = vld [vmem:[#allocation5 + $0x468] sm:$0xf]  ;;  %v5557_v26 = vld [vmem:[#allocation5 + $0x794] sm:$0xf0] }
  0xef   :  { %2476 = vmatpush.bf16.msrb.mxu2 %v4073_v48  ;;  %v4025_v48 = vor.u32 %v5413_v32, %v4024_v31  ;;  %v4600_v25 = vld [vmem:[#allocation5 + $0x788] sm:$0xf]  ;;  %v5521_v32 = vld [vmem:[#allocation5 + $0x674] sm:$0xf0] }
  0xf0   :  { %2451 = vmatpush.bf16.msrb.mxu3 %v3801_v50  ;;  %v5533_v50 = vld [vmem:[#allocation5 + $0x6d4] sm:$0xf0]  ;;  %v2210_v52 = vpop.f32.mrf.mxu2  ;;  %v4328_v27 = vld [vmem:[#allocation5 + $0x568] sm:$0xf]  ;;  %v4601_v36 = vor.u32 %v5557_v26, %v4600_v25 }
  0xf1   :  { %2464 = vmatpush.bf16.msrb.mxu0 %v3929_v57  ;;  %v5465_v57 = vld [vmem:[#allocation5 + $0x4b4] sm:$0xf0]  ;;  %v4456_v31 = vld [vmem:[#allocation5 + $0x668] sm:$0xf] }
  0xf2   :  { %2439 = vmatpush.bf16.msrb.mxu1 %v3657_v61  ;;  %v5497_v61 = vld [vmem:[#allocation5 + $0x5b4] sm:$0xf0]  ;;  %v4233_v3 = vor.u32 %v5465_v57, %v4232_v55  ;;  %v4584_v43 = vld [vmem:[#allocation5 + $0x768] sm:$0xf] }
  0xf3   :  { %2477 = vmatpush.bf16.msrb.mxu2 %v4057_v62  ;;  %v4505_v62 = vor.u32 %v5533_v50, %v4504_v49  ;;  %v4361_v7 = vor.u32 %v5497_v61, %v4360_v60  ;;  %v5553_v44 = vld [vmem:[#allocation5 + $0x774] sm:$0xf0]  ;;  %v4440_v51 = vld [vmem:[#allocation5 + $0x648] sm:$0xf] }
  0xf4   :  { %2452 = vmatpush.bf16.msrb.mxu3 %v3785_v6  ;;  %v4216_v6 = vld [vmem:[#allocation5 + $0x488] sm:$0xf]  ;;  %v5485_v46 = vld [vmem:[#allocation5 + $0x554] sm:$0xf0] }
  0xf5   :  { %2465 = vmatpush.bf16.msrb.mxu0 %v3913_v12  ;;  %v4344_v12 = vld [vmem:[#allocation5 + $0x588] sm:$0xf]  ;;  %v4217_v19 = vor.u32 %v5461_v8, %v4216_v6  ;;  %v5517_v52 = vld [vmem:[#allocation5 + $0x654] sm:$0xf0] }
  0xf6   :  { %2440 = vmatpush.bf16.msrb.mxu1 %v3641_v23  ;;  %v4345_v23 = vor.u32 %v5493_v13, %v4344_v12  ;;  %v4168_v55 = vld [vmem:[#allocation5 + $0x428] sm:$0xf]  ;;  %v5449_v58 = vld [vmem:[#allocation5 + $0x434] sm:$0xf0]  ;;  %v4441_v0 = vor.u32 %v5517_v52, %v4440_v51 }
  0xf7   :  { %2478 = vmatpush.bf16.msrb.mxu2 %v4041_v24  ;;  %v5457_v24 = vld [vmem:[#allocation5 + $0x474] sm:$0xf0]  ;;  %v4568_v59 = vld [vmem:[#allocation5 + $0x748] sm:$0xf] }
  0xf8   :  { %2453 = vmatpush.bf16.msrb.mxu3 %v3769_v28  ;;  %v5489_v28 = vld [vmem:[#allocation5 + $0x574] sm:$0xf0]  ;;  %v4201_v33 = vor.u32 %v5457_v24, %v4200_v21  ;;  %v4296_v61 = vld [vmem:[#allocation5 + $0x528] sm:$0xf] }
  0xf9   :  { %2466 = vmatpush.bf16.msrb.mxu0 %v3897_v40  ;;  %2441 = vmatmul.bf16.vlgmr.msrb.gmra.mxu1 %v6243_v9  ;;  %v4329_v40 = vor.u32 %v5489_v28, %v4328_v27  ;;  %v2247_v50 = vpop.f32.mrf.mxu1  ;;  %v5549_v60 = vld [vmem:[#allocation5 + $0x754] sm:$0xf0]  ;;  %v4424_v2 = vld [vmem:[#allocation5 + $0x628] sm:$0xf] }
  0xfa   :  { %2485 = vmatpush.bf16.msra.mxu1 %v4265_v30  ;;  %v4473_v30 = vor.u32 %v5525_v18, %v4472_v15  ;;  %v4569_v6 = vor.u32 %v5549_v60, %v4568_v59  ;;  %v5445_v10 = vld [vmem:[#allocation5 + $0x414] sm:$0xf0]  ;;  %v4888_v11 = vld [vmem:[#allocation5 + $0x9c8] sm:$0xf] }
  0xfb   :  { %2479 = vmatpush.bf16.msrb.mxu2 %v4025_v48  ;;  %2454 = vmatmul.bf16.vlgmr.msrb.gmra.mxu3 %v6247_v17  ;;  %v5629_v12 = vld [vmem:[#allocation5 + $0x9d4] sm:$0x30]  ;;  %v4552_v15 = vld [vmem:[#allocation5 + $0x728] sm:$0xf] }
  0xfc   :  { %2498 = vmatpush.bf16.msra.mxu3 %v4393_v37  ;;  %2467 = vmatmul.bf16.vlgmr.msrb.gmra.mxu0 %v6240_v63  ;;  %v4184_v37 = vld [vmem:[#allocation5 + $0x448] sm:$0xf]  ;;  %v2234_v48 = vpop.f32.mrf.mxu0  ;;  %v5545_v18 = vld [vmem:[#allocation5 + $0x734] sm:$0xf0]  ;;  %v4889_v26 = vor.u32 %v5629_v12, %v4888_v11 }
  0xfd   :  { %2511 = vmatpush.bf16.msra.mxu0 %v4521_v47  ;;  %v4457_v47 = vor.u32 %v5521_v32, %v4456_v31  ;;  %v2235_v49 = vadd.f32 %v2234_v48, %v6287_v34  ;;  %v4152_v34 = vld [vmem:[#allocation5 + $0x408] sm:$0xf]  ;;  %v5601_v24 = vld [vmem:[#allocation5 + $0x8f4] sm:$0xf0]  ;;  %v4553_v32 = vor.u32 %v5545_v18, %v4552_v15  ;;  %v3882_v48 = vld [vmem:[#allocation5 + $0x1f8] sm:$0xf0] }
  0xfe   :  { %2486 = vmatpush.bf16.msra.mxu1 %v4249_v53  ;;  %2480 = vmatmul.bf16.vlgmr.msrb.gmra.mxu2 %v6245_v16  ;;  %v4185_v53 = vor.u32 %v5453_v42, %v4184_v37  ;;  %v4408_v27 = vld [vmem:[#allocation5 + $0x608] sm:$0xf]  ;;  %v5509_v28 = vld [vmem:[#allocation5 + $0x614] sm:$0xf0]  ;;  %v4153_v31 = vor.u32 %v5445_v10, %v4152_v34 }
  0xff   :  { %2524 = vmatpush.bf16.msra.mxu2 %v4649_v54  ;;  %v4585_v54 = vor.u32 %v5553_v44, %v4584_v43  ;;  %v2248_v57 = vadd.f32 %v2247_v50, %v2235_v49  ;;  %v4536_v42 = vld [vmem:[#allocation5 + $0x708] sm:$0xf]  ;;  %v5541_v43 = vld [vmem:[#allocation5 + $0x714] sm:$0xf0]  ;;  %v2168_v49 = vsel %vm2160_vm0, %v4889_v26, 0 }
 0x100   :  { %2499 = vmatpush.bf16.msra.mxu3 %v4377_v56  ;;  %v4313_v56 = vor.u32 %v5485_v46, %v4312_v45  ;;  %v4760_v44 = vld [vmem:[#allocation5 + $0x8c8] sm:$0xf]  ;;  %v4409_v45 = vor.u32 %v5509_v28, %v4408_v27  ;;  %v5597_v46 = vld [vmem:[#allocation5 + $0x8d4] sm:$0xf0] }
 0x101   :  { %2512 = vmatpush.bf16.msra.mxu0 %v4505_v62  ;;  %v5481_v62 = vld [vmem:[#allocation5 + $0x534] sm:$0xf0]  ;;  %v4872_v50 = vld [vmem:[#allocation5 + $0x9a8] sm:$0xf] }
 0x102   :  { %2487 = vmatpush.bf16.msra.mxu1 %v4233_v3  ;;  %v5513_v3 = vld [vmem:[#allocation5 + $0x634] sm:$0xf0]  ;;  %v4297_v13 = vor.u32 %v5481_v62, %v4296_v61  ;;  %v4744_v60 = vld [vmem:[#allocation5 + $0x8a8] sm:$0xf] }
 0x103   :  { %2525 = vmatpush.bf16.msra.mxu2 %v4633_v4  ;;  %v2260_v1 = vpop.f32.mrf.mxu2  ;;  %v4169_v4 = vor.u32 %v5449_v58, %v4168_v55  ;;  %v4425_v21 = vor.u32 %v5513_v3, %v4424_v2  ;;  %v5625_v51 = vld [vmem:[#allocation5 + $0x9b4] sm:$0xf0]  ;;  %v5339_v55 = vld [vmem:[#allocation5 + $0xcc] sm:$0xf]  ;;  %v4761_v58 = vor.u32 %v5597_v46, %v4760_v44  ;;  %v4856_v34 = vld [vmem:[#allocation5 + $0x988] sm:$0xf] }
 0x104   :  { %2500 = vmatpush.bf16.msra.mxu3 %v4361_v7  ;;  %v2261_v7 = vadd.f32 %v2260_v1, %v2248_v57  ;;  %v2273_v8 = vpop.f32.mrf.mxu3  ;;  %v2236_v25 = vpop.f32.mrf.mxu0  ;;  %v4873_v61 = vor.u32 %v5625_v51, %v4872_v50  ;;  %v5593_v62 = vld [vmem:[#allocation5 + $0x8b4] sm:$0xf0]  ;;  %v3866_v1 = vld [vmem:[#allocation5 + $0x1d8] sm:$0xf0]  ;;  %v4728_v10 = vld [vmem:[#allocation5 + $0x888] sm:$0xf] }
 0x105   :  { %2513 = vmatpush.bf16.msra.mxu0 %v4489_v14  ;;  %v4280_v14 = vld [vmem:[#allocation5 + $0x508] sm:$0xf]  ;;  %v5621_v2 = vld [vmem:[#allocation5 + $0x994] sm:$0xf0] }
 0x106   :  { %2488 = vmatpush.bf16.msra.mxu1 %v4217_v19  ;;  %v6294_v19 = vadd.f32 %v2273_v8, %v2261_v7  ;;  %v4745_v7 = vor.u32 %v5593_v62, %v4744_v60  ;;  %v4857_v11 = vor.u32 %v5621_v2, %v4856_v34  ;;  %v5589_v12 = vld [vmem:[#allocation5 + $0x894] sm:$0xf0]  ;;  %v4840_v15 = vld [vmem:[#allocation5 + $0x968] sm:$0xf]  ;;  %v573_v34 = vperm.slane %v6284_v29, 1 }
 0x107   :  { %2526 = vmatpush.bf16.msra.mxu2 %v4617_v20  ;;  %v5477_v20 = vld [vmem:[#allocation5 + $0x514] sm:$0xf0]  ;;  %v4712_v26 = vld [vmem:[#allocation5 + $0x868] sm:$0xf]  ;;  %v3786_v29 = vld [vmem:[#allocation5 + $0x138] sm:$0xf0] }
 0x108   :  { %2501 = vmatpush.bf16.msra.mxu3 %v4345_v23  ;;  %v4776_v23 = vld [vmem:[#allocation5 + $0x8e8] sm:$0xf]  ;;  %v4281_v37 = vor.u32 %v5477_v20, %v4280_v14  ;;  %v3850_v14 = vld [vmem:[#allocation5 + $0x1b8] sm:$0xf0]  ;;  %v5617_v18 = vld [vmem:[#allocation5 + $0x974] sm:$0xf0] }
 0x109   :  { %2514 = vmatpush.bf16.msra.mxu0 %v4473_v30  ;;  %v2249_v30 = vpop.f32.mrf.mxu1  ;;  %v4841_v27 = vor.u32 %v5617_v18, %v4840_v15  ;;  %v5585_v28 = vld [vmem:[#allocation5 + $0x874] sm:$0xf0]  ;;  %v4808_v51 = vld [vmem:[#allocation5 + $0x928] sm:$0xf] }
 0x10a   :  { %2489 = vmatpush.bf16.msra.mxu1 %v4201_v33  ;;  %v5343_v33 = vld [vmem:[#allocation5 + $0xec] sm:$0xf]  ;;  %v5577_v60 = vld [vmem:[#allocation5 + $0x834] sm:$0xf0]  ;;  %v4792_v2 = vld [vmem:[#allocation5 + $0x908] sm:$0xf] }
 0x10b   :  { %2527 = vmatpush.bf16.msra.mxu2 %v4601_v36  ;;  %v3754_v36 = vld [vmem:[#allocation5 + $0xf8] sm:$0xf0]  ;;  %v5363_v30 = vld [vmem:[#allocation5 + $0x18c] sm:$0xf]  ;;  %v5573_v18 = vld [vmem:[#allocation5 + $0x814] sm:$0xf0] }
 0x10c   :  { %2502 = vmatpush.bf16.msra.mxu3 %v4329_v40  ;;  %v4777_v40 = vor.u32 %v5601_v24, %v4776_v23  ;;  %v3757_v52 = vor.u32 %v5343_v33, %v3754_v36  ;;  %v2275_v57 = vpop.f32.mrf.mxu3  ;;  %v3706_v23 = vld [vmem:[#allocation5 + $0x98] sm:$0xf0]  ;;  %v4729_v24 = vor.u32 %v5589_v12, %v4728_v10  ;;  %v5613_v33 = vld [vmem:[#allocation5 + $0x954] sm:$0xf0] }
 0x10d   :  { %2515 = vmatpush.bf16.msra.mxu0 %v4457_v47  ;;  %v5375_v47 = vld [vmem:[#allocation5 + $0x1ec] sm:$0xf]  ;;  %v3658_v10 = vld [vmem:[#allocation5 + $0x38] sm:$0xf0] }
 0x10e   :  { %2490 = vmatpush.bf16.msra.mxu1 %v4185_v53  ;;  %v2262_v53 = vpop.f32.mrf.mxu2  ;;  %v3885_v59 = vor.u32 %v5375_v47, %v3882_v48  ;;  %v5581_v47 = vld [vmem:[#allocation5 + $0x854] sm:$0xf0]  ;;  %v5359_v48 = vld [vmem:[#allocation5 + $0x16c] sm:$0xf] }
 0x10f   :  { %2528 = vmatpush.bf16.msra.mxu2 %v4585_v54  ;;  %v4537_v54 = vor.u32 %v5541_v43, %v4536_v42  ;;  %v3690_v42 = vld [vmem:[#allocation5 + $0x78] sm:$0xf0]  ;;  %v4713_v43 = vor.u32 %v5585_v28, %v4712_v26  ;;  %v5403_v26 = vld [vmem:[#allocation5 + $0x2cc] sm:$0xf] }
 0x110   :  { %2503 = vmatpush.bf16.msra.mxu3 %v4313_v56  ;;  %v3738_v56 = vld [vmem:[#allocation5 + $0xd8] sm:$0xf0] }
 0x111   :  { %2516 = vmatpush.bf16.msra.mxu0 %v4441_v0  ;;  %v5371_v0 = vld [vmem:[#allocation5 + $0x1cc] sm:$0xf]  ;;  %v3741_v3 = vor.u32 %v5339_v55, %v3738_v56  ;;  %v3674_v56 = vld [vmem:[#allocation5 + $0x58] sm:$0xf0] }
 0x112   :  { %2491 = vmatpush.bf16.msra.mxu1 %v4169_v4  ;;  %v5335_v4 = vld [vmem:[#allocation5 + $0xac] sm:$0xf]  ;;  %v3869_v8 = vor.u32 %v5371_v0, %v3866_v1  ;;  %v3802_v1 = vld [vmem:[#allocation5 + $0x158] sm:$0xf0] }
 0x113   :  { %2529 = vmatpush.bf16.msra.mxu2 %v4569_v6  ;;  %v3722_v6 = vld [vmem:[#allocation5 + $0xb8] sm:$0xf0]  ;;  %v5323_v55 = vld [vmem:[#allocation5 + $0x4c] sm:$0xf] }
 0x114   :  { %2504 = vmatpush.bf16.msra.mxu3 %v4297_v13  ;;  %v5367_v13 = vld [vmem:[#allocation5 + $0x1ac] sm:$0xf]  ;;  %v3725_v20 = vor.u32 %v5335_v4, %v3722_v6  ;;  %v4138_v28 = vld [vmem:[#allocation5 + $0x3f8] sm:$0xf0] }
 0x115   :  { %2517 = vmatpush.bf16.msra.mxu0 %v4425_v21  ;;  %v5331_v21 = vld [vmem:[#allocation5 + $0x8c] sm:$0xf]  ;;  %v3853_v25 = vor.u32 %v5367_v13, %v3850_v14  ;;  %v4664_v13 = vld [vmem:[#allocation5 + $0x808] sm:$0xf] }
 0x116   :  { %2492 = vmatpush.bf16.msra.mxu1 %v4153_v31  ;;  %v3834_v31 = vld [vmem:[#allocation5 + $0x198] sm:$0xf0]  ;;  %v3709_v36 = vor.u32 %v5331_v21, %v3706_v23  ;;  %v5355_v0 = vld [vmem:[#allocation5 + $0x14c] sm:$0xf] }
 0x117   :  { %2530 = vmatpush.bf16.msra.mxu2 %v4553_v32  ;;  %v4824_v32 = vld [vmem:[#allocation5 + $0x948] sm:$0xf]  ;;  %v3837_v44 = vor.u32 %v5363_v30, %v3834_v31  ;;  %v5407_v4 = vld [vmem:[#allocation5 + $0x2ec] sm:$0xf]  ;;  %v3805_v12 = vor.u32 %v5355_v0, %v3802_v1  ;;  %v3994_v31 = vld [vmem:[#allocation5 + $0x2d8] sm:$0xf0] }
 0x118   :  { %2505 = vmatpush.bf16.msra.mxu3 %v4281_v37  ;;  %v2299_v37 = vpop.f32.mrf.mxu1  ;;  %v4825_v46 = vor.u32 %v5613_v33, %v4824_v32  ;;  %v5315_v32 = vld [vmem:[#allocation5 + $0xc] sm:$0xf]  ;;  %v3642_v33 = vld [vmem:[#allocation5 + $0x18] sm:$0xf0] }
 0x119   :  { %2518 = vmatpush.bf16.msra.mxu0 %v4409_v45  ;;  %2493 = vmatmul.bf16.vlgmr.msra.gmra.mxu1 %v6255_v38  ;;  %v4696_v45 = vld [vmem:[#allocation5 + $0x848] sm:$0xf]  ;;  %v2286_v50 = vpop.f32.mrf.mxu0 }
 0x11a   :  { %2537 = vmatpush.bf16.msrb.mxu1 %v4777_v40  ;;  %v5327_v40 = vld [vmem:[#allocation5 + $0x6c] sm:$0xf]  ;;  %v4697_v57 = vor.u32 %v5581_v47, %v4696_v45  ;;  %v3997_v47 = vor.u32 %v5403_v26, %v3994_v31 }
 0x11b   :  { %2531 = vmatpush.bf16.msra.mxu2 %v4537_v54  ;;  %2506 = vmatmul.bf16.vlgmr.msra.gmra.mxu3 %v6259_v41  ;;  %v3693_v53 = vor.u32 %v5327_v40, %v3690_v42  ;;  %v2287_v54 = vadd.f32 %v2286_v50, %v6294_v19  ;;  %v3677_v19 = vor.u32 %v5323_v55, %v3674_v56  ;;  %v5471_v40 = vld [vmem:[#allocation5 + $0x4ec] sm:$0xf]  ;;  %v4266_v42 = vld [vmem:[#allocation5 + $0x4f8] sm:$0xf0] }
 0x11c   :  { %2551 = vmatpush.bf16.msrb.mxu3 %v2168_v49  ;;  %2519 = vmatmul.bf16.vlgmr.msra.gmra.mxu0 %v6253_v35  ;;  %v3818_v49 = vld [vmem:[#allocation5 + $0x178] sm:$0xf0]  ;;  %v5347_v45 = vld [vmem:[#allocation5 + $0x10c] sm:$0xf] }
 0x11d   :  { %2563 = vmatpush.bf16.msrb.mxu0 %v3757_v52  ;;  %v5609_v52 = vld [vmem:[#allocation5 + $0x934] sm:$0xf0]  ;;  %v5435_v50 = vld [vmem:[#allocation5 + $0x3cc] sm:$0xf]  ;;  %v4394_v55 = vld [vmem:[#allocation5 + $0x5f8] sm:$0xf0] }
 0x11e   :  { %2538 = vmatpush.bf16.msrb.mxu1 %v4761_v58  ;;  %2532 = vmatmul.bf16.vlgmr.msra.gmra.mxu2 %v6257_v39  ;;  %v3821_v58 = vor.u32 %v5359_v48, %v3818_v49  ;;  %v4809_v62 = vor.u32 %v5609_v52, %v4808_v51  ;;  %v3645_v48 = vor.u32 %v5315_v32, %v3642_v33  ;;  %v5399_v49 = vld [vmem:[#allocation5 + $0x2ac] sm:$0xf]  ;;  %v4122_v51 = vld [vmem:[#allocation5 + $0x3d8] sm:$0xf0] }
 0x11f   :  { %2576 = vmatpush.bf16.msrb.mxu2 %v3885_v59  ;;  %v4680_v59 = vld [vmem:[#allocation5 + $0x828] sm:$0xf]  ;;  %v3978_v52 = vld [vmem:[#allocation5 + $0x2b8] sm:$0xf0]  ;;  %v5467_v56 = vld [vmem:[#allocation5 + $0x4cc] sm:$0xf] }
 0x120   :  { %2552 = vmatpush.bf16.msrb.mxu3 %v4873_v61  ;;  %v6302_v61 = vadd.f32 %v2299_v37, %v2287_v54  ;;  %v2301_v6 = vpop.f32.mrf.mxu1  ;;  %v4665_v37 = vor.u32 %v5573_v18, %v4664_v13  ;;  %v5503_v54 = vld [vmem:[#allocation5 + $0x5ec] sm:$0xf]  ;;  %v3981_v0 = vor.u32 %v5399_v49, %v3978_v52  ;;  %v4090_v18 = vld [vmem:[#allocation5 + $0x398] sm:$0xf0] }
 0x121   :  { %2564 = vmatpush.bf16.msrb.mxu0 %v3741_v3  ;;  %v5605_v3 = vld [vmem:[#allocation5 + $0x914] sm:$0xf0]  ;;  %v2312_v14 = vpop.f32.mrf.mxu2  ;;  %v2288_v30 = vpop.f32.mrf.mxu0  ;;  %v4397_v1 = vor.u32 %v5503_v54, %v4394_v55  ;;  %v5499_v6 = vld [vmem:[#allocation5 + $0x5cc] sm:$0xf]  ;;  %v4074_v32 = vld [vmem:[#allocation5 + $0x378] sm:$0xf0] }
 0x122   :  { %2539 = vmatpush.bf16.msrb.mxu1 %v4745_v7  ;;  %v4010_v7 = vld [vmem:[#allocation5 + $0x2f8] sm:$0xf0]  ;;  %v4793_v15 = vor.u32 %v5605_v3, %v4792_v2  ;;  %v2313_v21 = vadd.f32 %v2312_v14, %v573_v34  ;;  %v2325_v23 = vpop.f32.mrf.mxu3  ;;  %v5395_v34 = vld [vmem:[#allocation5 + $0x28c] sm:$0xf] }
 0x123   :  { %2577 = vmatpush.bf16.msrb.mxu2 %v3869_v8  ;;  %v5319_v8 = vld [vmem:[#allocation5 + $0x2c] sm:$0xf]  ;;  %v4106_v3 = vld [vmem:[#allocation5 + $0x3b8] sm:$0xf0] }
 0x124   :  { %2553 = vmatpush.bf16.msrb.mxu3 %v4857_v11  ;;  %v4681_v11 = vor.u32 %v5577_v60, %v4680_v59  ;;  %v4125_v60 = vor.u32 %v5435_v50, %v4122_v51  ;;  %v5431_v2 = vld [vmem:[#allocation5 + $0x3ac] sm:$0xf]  ;;  %v3930_v33 = vld [vmem:[#allocation5 + $0x258] sm:$0xf0] }
 0x125   :  { %2565 = vmatpush.bf16.msrb.mxu0 %v3725_v20  ;;  %v5351_v20 = vld [vmem:[#allocation5 + $0x12c] sm:$0xf]  ;;  %v4058_v49 = vld [vmem:[#allocation5 + $0x358] sm:$0xf0] }
 0x126   :  { %2540 = vmatpush.bf16.msrb.mxu1 %v4729_v24  ;;  %v4013_v24 = vor.u32 %v5407_v4, %v4010_v7  ;;  %v4378_v7 = vld [vmem:[#allocation5 + $0x5d8] sm:$0xf0]  ;;  %v5391_v14 = vld [vmem:[#allocation5 + $0x26c] sm:$0xf] }
 0x127   :  { %2578 = vmatpush.bf16.msrb.mxu2 %v3853_v25  ;;  %v3661_v25 = vor.u32 %v5319_v8, %v3658_v10  ;;  %v5463_v8 = vld [vmem:[#allocation5 + $0x4ac] sm:$0xf]  ;;  %v4234_v10 = vld [vmem:[#allocation5 + $0x4b8] sm:$0xf0]  ;;  %v4381_v13 = vor.u32 %v5499_v6, %v4378_v7 }
 0x128   :  { %2554 = vmatpush.bf16.msrb.mxu3 %v4841_v27  ;;  %v5439_v27 = vld [vmem:[#allocation5 + $0x3ec] sm:$0xf]  ;;  %v3914_v50 = vld [vmem:[#allocation5 + $0x238] sm:$0xf0] }
 0x129   :  { %2566 = vmatpush.bf16.msrb.mxu0 %v3709_v36  ;;  %v6305_v36 = vadd.f32 %v2325_v23, %v2313_v21  ;;  %v5495_v21 = vld [vmem:[#allocation5 + $0x5ac] sm:$0xf]  ;;  %v4362_v23 = vld [vmem:[#allocation5 + $0x5b8] sm:$0xf0] }
 0x12a   :  { %2541 = vmatpush.bf16.msrb.mxu1 %v4713_v43  ;;  %v3789_v43 = vor.u32 %v5351_v20, %v3786_v29  ;;  %v3946_v20 = vld [vmem:[#allocation5 + $0x278] sm:$0xf0]  ;;  %v4237_v29 = vor.u32 %v5463_v8, %v4234_v10  ;;  %v5387_v30 = vld [vmem:[#allocation5 + $0x24c] sm:$0xf] }
 0x12b   :  { %2579 = vmatpush.bf16.msrb.mxu2 %v3837_v44  ;;  %v4141_v44 = vor.u32 %v5439_v27, %v4138_v28  ;;  %v3949_v27 = vor.u32 %v5391_v14, %v3946_v20  ;;  %v4365_v28 = vor.u32 %v5495_v21, %v4362_v23  ;;  %v5423_v31 = vld [vmem:[#allocation5 + $0x36c] sm:$0xf]  ;;  %v4522_v6 = vld [vmem:[#allocation5 + $0x6f8] sm:$0xf0] }
 0x12c   :  { %2555 = vmatpush.bf16.msrb.mxu3 %v4825_v46  ;;  %v3770_v46 = vld [vmem:[#allocation5 + $0x118] sm:$0xf0]  ;;  %v5487_v52 = vld [vmem:[#allocation5 + $0x56c] sm:$0xf] }
 0x12d   :  { %2567 = vmatpush.bf16.msrb.mxu0 %v3693_v53  ;;  %v4269_v53 = vor.u32 %v5471_v40, %v4266_v42  ;;  %v3773_v59 = vor.u32 %v5347_v45, %v3770_v46  ;;  %v5491_v40 = vld [vmem:[#allocation5 + $0x58c] sm:$0xf]  ;;  %v4346_v42 = vld [vmem:[#allocation5 + $0x598] sm:$0xf0]  ;;  %v3933_v45 = vor.u32 %v5387_v30, %v3930_v33 }
 0x12e   :  { %2542 = vmatpush.bf16.msrb.mxu1 %v4697_v57  ;;  %v4250_v57 = vld [vmem:[#allocation5 + $0x4d8] sm:$0xf0]  ;;  %v4349_v46 = vor.u32 %v5491_v40, %v4346_v42  ;;  %v5451_v55 = vld [vmem:[#allocation5 + $0x44c] sm:$0xf] }
 0x12f   :  { %2580 = vmatpush.bf16.msrb.mxu2 %v3821_v58  ;;  %v2314_v58 = vpop.f32.mrf.mxu2  ;;  %v4253_v4 = vor.u32 %v5467_v56, %v4250_v57  ;;  %v4186_v56 = vld [vmem:[#allocation5 + $0x458] sm:$0xf0]  ;;  %v5447_v7 = vld [vmem:[#allocation5 + $0x42c] sm:$0xf] }
 0x130   :  { %2556 = vmatpush.bf16.msrb.mxu3 %v4809_v62  ;;  %v2327_v62 = vpop.f32.mrf.mxu3  ;;  %v5379_v58 = vld [vmem:[#allocation5 + $0x20c] sm:$0xf]  ;;  %v4170_v8 = vld [vmem:[#allocation5 + $0x438] sm:$0xf0] }
 0x131   :  { %2568 = vmatpush.bf16.msrb.mxu0 %v3677_v19  ;;  %v3962_v19 = vld [vmem:[#allocation5 + $0x298] sm:$0xf0]  ;;  %v5443_v30 = vld [vmem:[#allocation5 + $0x40c] sm:$0xf] }
 0x132   :  { %2543 = vmatpush.bf16.msrb.mxu1 %v4681_v11  ;;  %v4109_v11 = vor.u32 %v5431_v2, %v4106_v3  ;;  %v3898_v62 = vld [vmem:[#allocation5 + $0x218] sm:$0xf0]  ;;  %v5483_v2 = vld [vmem:[#allocation5 + $0x54c] sm:$0xf] }
 0x133   :  { %2581 = vmatpush.bf16.msrb.mxu2 %v3805_v12  ;;  %v3965_v12 = vor.u32 %v5395_v34, %v3962_v19  ;;  %v4189_v34 = vor.u32 %v5451_v55, %v4186_v56  ;;  %v4314_v3 = vld [vmem:[#allocation5 + $0x558] sm:$0xf0]  ;;  %v5535_v19 = vld [vmem:[#allocation5 + $0x6ec] sm:$0xf] }
 0x134   :  { %2557 = vmatpush.bf16.msrb.mxu3 %v4793_v15  ;;  %v5427_v15 = vld [vmem:[#allocation5 + $0x38c] sm:$0xf]  ;;  %v4317_v14 = vor.u32 %v5483_v2, %v4314_v3  ;;  %v4298_v20 = vld [vmem:[#allocation5 + $0x538] sm:$0xf0]  ;;  %v4525_v21 = vor.u32 %v5535_v19, %v4522_v6 }
 0x135   :  { %2569 = vmatpush.bf16.msrb.mxu0 %v3661_v25  ;;  %v4218_v25 = vld [vmem:[#allocation5 + $0x498] sm:$0xf0]  ;;  %v4093_v26 = vor.u32 %v5427_v15, %v4090_v18  ;;  %v5479_v18 = vld [vmem:[#allocation5 + $0x52c] sm:$0xf] }
 0x136   :  { %2544 = vmatpush.bf16.msrb.mxu1 %v4665_v37  ;;  %v5627_v40 = vld [vmem:[#allocation5 + $0x9cc] sm:$0xf]  ;;  %v4890_v42 = vld [vmem:[#allocation5 + $0x9d8] sm:$0x30] }
 0x137   :  { %4896 = vmatmul.msk.bf16.vlgmr.msrb.gmra.mxu3 %vm2156_vm1, %v6265_v5  ;;  %2582 = vmatpush.bf16.msrb.mxu2 %v3789_v43  ;;  %v6312_v43 = vpop.f32.mrf.mxu1  ;;  %v5595_v55 = vld [vmem:[#allocation5 + $0x8cc] sm:$0xf]  ;;  %v4762_v56 = vld [vmem:[#allocation5 + $0x8d8] sm:$0xf0] }
 0x138   :  { %2589 = vmatpush.bf16.msra.mxu3 %v4013_v24  ;;  %v5459_v24 = vld [vmem:[#allocation5 + $0x48c] sm:$0xf]  ;;  %v4765_v19 = vor.u32 %v5595_v55, %v4762_v56  ;;  %v4698_v55 = vld [vmem:[#allocation5 + $0x858] sm:$0xf0] }
 0x139   :  { %2570 = vmatpush.bf16.msrb.mxu0 %v3645_v48  ;;  %2545 = vmatmul.bf16.vlgmr.msrb.gmra.mxu1 %v6267_v22  ;;  %v4221_v37 = vor.u32 %v5459_v24, %v4218_v25  ;;  %v5419_v48 = vld [vmem:[#allocation5 + $0x34c] sm:$0xf]  ;;  %v6314_v54 = vpop.f32.mrf.mxu0  ;;  %v4173_v24 = vor.u32 %v5447_v7, %v4170_v8  ;;  %v4506_v25 = vld [vmem:[#allocation5 + $0x6d8] sm:$0xf0] }
 0x13a   :  { %2602 = vmatpush.bf16.msra.mxu1 %v4141_v44  ;;  %v5455_v44 = vld [vmem:[#allocation5 + $0x46c] sm:$0xf]  ;;  %v4061_v57 = vor.u32 %v5419_v48, %v4058_v49  ;;  %v4634_v49 = vld [vmem:[#allocation5 + $0x7d8] sm:$0xf0] }
 0x13b   :  { %2583 = vmatpush.bf16.msrb.mxu2 %v3773_v59  ;;  %v5563_v48 = vld [vmem:[#allocation5 + $0x7cc] sm:$0xf]  ;;  %v4746_v7 = vld [vmem:[#allocation5 + $0x8b8] sm:$0xf0] }
 0x13c   :  { %2590 = vmatpush.bf16.msra.mxu3 %v3997_v47  ;;  %2571 = vmatmul.bf16.vlgmr.msrb.gmra.mxu0 %v6243_v9  ;;  %v4077_v9 = vor.u32 %v5423_v31, %v4074_v32  ;;  %v5383_v47 = vld [vmem:[#allocation5 + $0x22c] sm:$0xf]  ;;  %v4154_v31 = vld [vmem:[#allocation5 + $0x418] sm:$0xf0] }
 0x13d   :  { %2615 = vmatpush.bf16.msra.mxu0 %v4269_v53  ;;  %v4330_v53 = vld [vmem:[#allocation5 + $0x578] sm:$0xf0]  ;;  %v3917_v59 = vor.u32 %v5383_v47, %v3914_v50  ;;  %v5599_v32 = vld [vmem:[#allocation5 + $0x8ec] sm:$0xf] }
 0x13e   :  { %2603 = vmatpush.bf16.msra.mxu1 %v4125_v60  ;;  %2584 = vmatmul.bf16.vlgmr.msrb.gmra.mxu2 %v6247_v17  ;;  %v4202_v17 = vld [vmem:[#allocation5 + $0x478] sm:$0xf0]  ;;  %v4333_v60 = vor.u32 %v5487_v52, %v4330_v53  ;;  %v5527_v50 = vld [vmem:[#allocation5 + $0x6ac] sm:$0xf]  ;;  %v4893_v53 = vor.u32 %v5627_v40, %v4890_v42 }
 0x13f   :  { %2628 = vmatpush.bf16.msra.mxu2 %v4397_v1  ;;  %v4205_v51 = vor.u32 %v5455_v44, %v4202_v17  ;;  %v4042_v1 = vld [vmem:[#allocation5 + $0x338] sm:$0xf0]  ;;  %v4301_v44 = vor.u32 %v5479_v18, %v4298_v20  ;;  %v5591_v6 = vld [vmem:[#allocation5 + $0x8ac] sm:$0xf] }
 0x140   :  { %2591 = vmatpush.bf16.msra.mxu3 %v3981_v0  ;;  %v5415_v0 = vld [vmem:[#allocation5 + $0x32c] sm:$0xf]  ;;  %v4282_v47 = vld [vmem:[#allocation5 + $0x518] sm:$0xf0]  ;;  %v2171_v3 = vsel %vm2160_vm0, %v4893_v53, 0  ;;  %v4749_v20 = vor.u32 %v5591_v6, %v4746_v7 }
 0x141   :  { %2616 = vmatpush.bf16.msra.mxu0 %v4253_v4  ;;  %v2340_v4 = vpop.f32.mrf.mxu1  ;;  %v4045_v10 = vor.u32 %v5415_v0, %v4042_v1  ;;  %v6316_v15 = vpop.f32.mrf.mxu2  ;;  %v4474_v0 = vld [vmem:[#allocation5 + $0x698] sm:$0xf0]  ;;  %v5559_v1 = vld [vmem:[#allocation5 + $0x7ac] sm:$0xf] }
 0x142   :  { %2604 = vmatpush.bf16.msra.mxu1 %v4109_v11  ;;  %v5411_v11 = vld [vmem:[#allocation5 + $0x30c] sm:$0xf]  ;;  %v6318_v23 = vpop.f32.mrf.mxu3  ;;  %v4874_v4 = vld [vmem:[#allocation5 + $0x9b8] sm:$0xf0] }
 0x143   :  { %2629 = vmatpush.bf16.msra.mxu2 %v4381_v13  ;;  %v3901_v13 = vor.u32 %v5379_v58, %v3898_v62  ;;  %v4637_v58 = vor.u32 %v5563_v48, %v4634_v49  ;;  %v4458_v18 = vld [vmem:[#allocation5 + $0x678] sm:$0xf0]  ;;  %v5579_v53 = vld [vmem:[#allocation5 + $0x84c] sm:$0xf] }
 0x144   :  { %2592 = vmatpush.bf16.msra.mxu3 %v3965_v12  ;;  %v4026_v12 = vld [vmem:[#allocation5 + $0x318] sm:$0xf0] }
 0x145   :  { %2617 = vmatpush.bf16.msra.mxu0 %v4237_v29  ;;  %v5531_v29 = vld [vmem:[#allocation5 + $0x6cc] sm:$0xf]  ;;  %v4029_v33 = vor.u32 %v5411_v11, %v4026_v12  ;;  %v4842_v40 = vld [vmem:[#allocation5 + $0x978] sm:$0xf0] }
 0x146   :  { %2605 = vmatpush.bf16.msra.mxu1 %v4093_v26  ;;  %v5567_v26 = vld [vmem:[#allocation5 + $0x7ec] sm:$0xf]  ;;  %v4426_v49 = vld [vmem:[#allocation5 + $0x638] sm:$0xf0] }
 0x147   :  { %2630 = vmatpush.bf16.msra.mxu2 %v4365_v28  ;;  %v2353_v28 = vpop.f32.mrf.mxu0  ;;  %v5519_v12 = vld [vmem:[#allocation5 + $0x66c] sm:$0xf]  ;;  %v4682_v6 = vld [vmem:[#allocation5 + $0x838] sm:$0xf0] }
 0x148   :  { %2593 = vmatpush.bf16.msra.mxu3 %v3949_v27  ;;  %v4650_v27 = vld [vmem:[#allocation5 + $0x7f8] sm:$0xf0]  ;;  %v5515_v28 = vld [vmem:[#allocation5 + $0x64c] sm:$0xf] }
 0x149   :  { %2618 = vmatpush.bf16.msra.mxu0 %v4221_v37  ;;  %v4778_v37 = vld [vmem:[#allocation5 + $0x8f8] sm:$0xf0]  ;;  %v4653_v17 = vor.u32 %v5567_v26, %v4650_v27  ;;  %v4461_v26 = vor.u32 %v5519_v12, %v4458_v18  ;;  %v5603_v18 = vld [vmem:[#allocation5 + $0x90c] sm:$0xf] }
 0x14a   :  { %2606 = vmatpush.bf16.msra.mxu1 %v4077_v9  ;;  %v5475_v9 = vld [vmem:[#allocation5 + $0x50c] sm:$0xf]  ;;  %v4781_v52 = vor.u32 %v5599_v32, %v4778_v37  ;;  %v2379_v2 = vpop.f32.mrf.mxu3  ;;  %v4442_v32 = vld [vmem:[#allocation5 + $0x658] sm:$0xf0] }
 0x14b   :  { %2631 = vmatpush.bf16.msra.mxu2 %v4349_v46  ;;  %v4157_v46 = vor.u32 %v5443_v30, %v4154_v31  ;;  %v5551_v30 = vld [vmem:[#allocation5 + $0x76c] sm:$0xf]  ;;  %v4586_v31 = vld [vmem:[#allocation5 + $0x778] sm:$0xf0] }
 0x14c   :  { %2594 = vmatpush.bf16.msra.mxu3 %v3933_v45  ;;  %v4509_v45 = vor.u32 %v5531_v29, %v4506_v25  ;;  %v5619_v29 = vld [vmem:[#allocation5 + $0x98c] sm:$0xf] }
 0x14d   :  { %2619 = vmatpush.bf16.msra.mxu0 %v4205_v51  ;;  %v4490_v51 = vld [vmem:[#allocation5 + $0x6b8] sm:$0xf0]  ;;  %v5615_v37 = vld [vmem:[#allocation5 + $0x96c] sm:$0xf] }
 0x14e   :  { %2607 = vmatpush.bf16.msra.mxu1 %v4061_v57  ;;  %v4285_v57 = vor.u32 %v5475_v9, %v4282_v47  ;;  %v4493_v62 = vor.u32 %v5527_v50, %v4490_v51  ;;  %v4845_v9 = vor.u32 %v5615_v37, %v4842_v40  ;;  %v4570_v47 = vld [vmem:[#allocation5 + $0x758] sm:$0xf0]  ;;  %v5611_v51 = vld [vmem:[#allocation5 + $0x94c] sm:$0xf] }
 0x14f   :  { %2632 = vmatpush.bf16.msra.mxu2 %v4333_v60  ;;  %v2366_v60 = vpop.f32.mrf.mxu2  ;;  %v5607_v2 = vld [vmem:[#allocation5 + $0x92c] sm:$0xf] }
 0x150   :  { %2595 = vmatpush.bf16.msra.mxu3 %v3917_v59  ;;  %v5523_v59 = vld [vmem:[#allocation5 + $0x68c] sm:$0xf]  ;;  %v4410_v60 = vld [vmem:[#allocation5 + $0x618] sm:$0xf0] }
 0x151   :  { %2620 = vmatpush.bf16.msra.mxu0 %v4189_v34  ;;  %v4618_v34 = vld [vmem:[#allocation5 + $0x7b8] sm:$0xf0] }
 0x152   :  { %2608 = vmatpush.bf16.msra.mxu1 %v4045_v10  ;;  %v4621_v8 = vor.u32 %v5559_v1, %v4618_v34  ;;  %v4477_v10 = vor.u32 %v5523_v59, %v4474_v0  ;;  %v4554_v0 = vld [vmem:[#allocation5 + $0x738] sm:$0xf0]  ;;  %v4701_v34 = vor.u32 %v5579_v53, %v4698_v55  ;;  %v4932_v55 = vld [vmem:[#allocation8 + $0x40] sm:$0xf] }
 0x153   :  { %2633 = vmatpush.bf16.msra.mxu2 %v4317_v14  ;;  %v4602_v14 = vld [vmem:[#allocation5 + $0x798] sm:$0xf0] }
 0x154   :  { %2596 = vmatpush.bf16.msra.mxu3 %v3901_v13  ;;  %v5555_v13 = vld [vmem:[#allocation5 + $0x78c] sm:$0xf]  ;;  %v5677_v53 = vld [vmem:[#allocation8 + $0x174] sm:$0xf0] }
 0x155   :  { %2621 = vmatpush.bf16.msra.mxu0 %v4173_v24  ;;  %v4730_v24 = vld [vmem:[#allocation5 + $0x898] sm:$0xf0]  ;;  %v4605_v25 = vor.u32 %v5555_v13, %v4602_v14 }
 0x156   :  { %2609 = vmatpush.bf16.msra.mxu1 %v4029_v33  ;;  %v6325_v42 = vpop.f32.mrf.mxu1  ;;  %v4538_v14 = vld [vmem:[#allocation5 + $0x718] sm:$0xf0] }
 0x157   :  { %2597 = vmatmul.bf16.vlgmr.msra.gmra.mxu3 %v6240_v63  ;;  %2634 = vmatpush.bf16.msra.mxu2 %v4301_v44  ;;  %v5623_v63 = vld [vmem:[#allocation5 + $0x9ac] sm:$0xf]  ;;  %v4589_v44 = vor.u32 %v5551_v30, %v4586_v31  ;;  %v4666_v30 = vld [vmem:[#allocation5 + $0x818] sm:$0xf0] }
 0x158   :  { %2641 = vmatpush.bf16.msrb.mxu3 %v4525_v21  ;;  %v4877_v11 = vor.u32 %v5623_v63, %v4874_v4  ;;  %v4858_v21 = vld [vmem:[#allocation5 + $0x998] sm:$0xf0]  ;;  %v5575_v4 = vld [vmem:[#allocation5 + $0x82c] sm:$0xf] }
 0x159   :  { %2622 = vmatpush.bf16.msra.mxu0 %v4157_v46  ;;  %2610 = vmatmul.bf16.vlgmr.msra.gmra.mxu1 %v6245_v16  ;;  %v5587_v16 = vld [vmem:[#allocation5 + $0x88c] sm:$0xf]  ;;  %v4861_v27 = vor.u32 %v5619_v29, %v4858_v21  ;;  %v6327_v48 = vpop.f32.mrf.mxu0  ;;  %v5645_v63 = vld [vmem:[#allocation8 + $0x74] sm:$0xf0]  ;;  %v4685_v21 = vor.u32 %v5575_v4, %v4682_v6  ;;  %v4916_v6 = vld [vmem:[#allocation8 + $0x20] sm:$0xf] }
 0x15a   :  { %2654 = vmatpush.bf16.msrb.mxu1 %v4653_v17  ;;  %v4733_v33 = vor.u32 %v5587_v16, %v4730_v24  ;;  %v4445_v17 = vor.u32 %v5515_v28, %v4442_v32  ;;  %v5547_v46 = vld [vmem:[#allocation5 + $0x74c] sm:$0xf]  ;;  %v4948_v16 = vld [vmem:[#allocation8 + $0x60] sm:$0xf]  ;;  %v5020_v24 = vld [vmem:[#allocation8 + $0xf0] sm:$0xf] }
 0x15b   :  { %2635 = vmatpush.bf16.msra.mxu2 %v4285_v57  ;;  %v4573_v56 = vor.u32 %v5547_v46, %v4570_v47  ;;  %v5507_v57 = vld [vmem:[#allocation5 + $0x60c] sm:$0xf] }
 0x15c   :  { %2642 = vmatpush.bf16.msrb.mxu3 %v4509_v45  ;;  %2623 = vmatmul.bf16.vlgmr.msra.gmra.mxu0 %v6255_v38  ;;  %v4714_v38 = vld [vmem:[#allocation5 + $0x878] sm:$0xf0]  ;;  %v5511_v45 = vld [vmem:[#allocation5 + $0x62c] sm:$0xf]  ;;  %v4413_v12 = vor.u32 %v5507_v57, %v4410_v60  ;;  %v4996_v60 = vld [vmem:[#allocation8 + $0xc0] sm:$0xf] }
 0x15d   :  { %2667 = vmatpush.bf16.msrb.mxu0 %v4781_v52  ;;  %v4826_v52 = vld [vmem:[#allocation5 + $0x958] sm:$0xf0]  ;;  %v5571_v28 = vld [vmem:[#allocation5 + $0x80c] sm:$0xf] }
 0x15e   :  { %2655 = vmatpush.bf16.msrb.mxu1 %v4637_v58  ;;  %2636 = vmatmul.bf16.vlgmr.msra.gmra.mxu2 %v6259_v41  ;;  %v5583_v41 = vld [vmem:[#allocation5 + $0x86c] sm:$0xf]  ;;  %v4429_v58 = vor.u32 %v5511_v45, %v4426_v49  ;;  %v4829_v59 = vor.u32 %v5611_v51, %v4826_v52  ;;  %v6329_v1 = vpop.f32.mrf.mxu3  ;;  %v2392_v7 = vpop.f32.mrf.mxu1  ;;  %v4669_v40 = vor.u32 %v5571_v28, %v4666_v30  ;;  %v5084_v49 = vld [vmem:[#allocation8 + $0x170] sm:$0xf]  ;;  %v5657_v52 = vld [vmem:[#allocation8 + $0xd4] sm:$0xf0] }
 0x15f   :  { %2681 = vmatpush.bf16.msrb.mxu2 %v2171_v3  ;;  %v4717_v50 = vor.u32 %v5583_v41, %v4714_v38  ;;  %v4810_v3 = vld [vmem:[#allocation5 + $0x938] sm:$0xf0]  ;;  %v5012_v41 = vld [vmem:[#allocation8 + $0xe0] sm:$0xf]  ;;  %v5659_v38 = vld [vmem:[#allocation8 + $0xe4] sm:$0xf0]  ;;  %v2339_v45 = vadd.f32 %v6312_v43, %v6305_v36  ;;  %v5085_v57 = vor.u32 %v5677_v53, %v5084_v49 }
 0x160   :  { %2643 = vmatpush.bf16.msrb.mxu3 %v4493_v62  ;;  %v5543_v62 = vld [vmem:[#allocation5 + $0x72c] sm:$0xf]  ;;  %v4813_v13 = vor.u32 %v5607_v2, %v4810_v3  ;;  %v5013_v46 = vor.u32 %v5659_v38, %v5012_v41  ;;  %v5004_v51 = vld [vmem:[#allocation8 + $0xd0] sm:$0xf]  ;;  %v5076_v43 = vld [vmem:[#allocation8 + $0x160] sm:$0xf] }
 0x161   :  { %2668 = vmatpush.bf16.msrb.mxu0 %v4765_v19  ;;  %v4956_v19 = vld [vmem:[#allocation8 + $0x70] sm:$0xf]  ;;  %v2352_v36 = vadd.f32 %v6314_v54, %v2339_v45  ;;  %v5635_v7 = vld [vmem:[#allocation8 + $0x24] sm:$0xf0]  ;;  %v5669_v28 = vld [vmem:[#allocation8 + $0x134] sm:$0xf0] }
 0x162   :  { %2656 = vmatpush.bf16.msrb.mxu1 %v4621_v8  ;;  %v4557_v8 = vor.u32 %v5543_v62, %v4554_v0  ;;  %v4957_v29 = vor.u32 %v5645_v63, %v4956_v19  ;;  %v5655_v62 = vld [vmem:[#allocation8 + $0xc4] sm:$0xf0]  ;;  %v4924_v0 = vld [vmem:[#allocation8 + $0x30] sm:$0xf]  ;;  %v5653_v63 = vld [vmem:[#allocation8 + $0xb4] sm:$0xf0] }
 0x163   :  { %2682 = vmatpush.bf16.msrb.mxu2 %v4877_v11  ;;  %v6331_v11 = vpop.f32.mrf.mxu2  ;;  %v2365_v2 = vadd.f32 %v6316_v15, %v2352_v36  ;;  %v4997_v54 = vor.u32 %v5655_v62, %v4996_v60  ;;  %v5068_v3 = vld [vmem:[#allocation8 + $0x150] sm:$0xf]  ;;  %v5671_v15 = vld [vmem:[#allocation8 + $0x144] sm:$0xf0]  ;;  %v5644_v38 = vld [vmem:[#allocation8 + $0x74] sm:$0xf] }
 0x164   :  { %2644 = vmatpush.bf16.msrb.mxu3 %v4477_v10  ;;  %v5539_v10 = vld [vmem:[#allocation5 + $0x70c] sm:$0xf]  ;;  %v5642_v36 = vld [vmem:[#allocation8 + $0x64] sm:$0xf] }
 0x165   :  { %2669 = vmatpush.bf16.msrb.mxu0 %v4749_v20  ;;  %v4794_v20 = vld [vmem:[#allocation5 + $0x918] sm:$0xf0]  ;;  %v4541_v31 = vor.u32 %v5539_v10, %v4538_v14  ;;  %v5667_v45 = vld [vmem:[#allocation8 + $0x124] sm:$0xf0] }
 0x166   :  { %2657 = vmatpush.bf16.msrb.mxu1 %v4605_v25  ;;  %v5661_v25 = vld [vmem:[#allocation8 + $0xf4] sm:$0xf0]  ;;  %v4797_v32 = vor.u32 %v5603_v18, %v4794_v20  ;;  %v4917_v18 = vor.u32 %v5635_v7, %v4916_v6  ;;  %v4980_v20 = vld [vmem:[#allocation8 + $0xa0] sm:$0xf]  ;;  %v5647_v49 = vld [vmem:[#allocation8 + $0x84] sm:$0xf0] }
 0x167   :  { %2683 = vmatpush.bf16.msrb.mxu2 %v4861_v27  ;;  %v5643_v27 = vld [vmem:[#allocation8 + $0x64] sm:$0xf0] }
 0x168   :  { %2645 = vmatpush.bf16.msrb.mxu3 %v4461_v26  ;;  %v2405_v26 = vpop.f32.mrf.mxu0  ;;  %v4949_v37 = vor.u32 %v5643_v27, %v4948_v16  ;;  %v4908_v16 = vld [vmem:[#allocation8 + $0x10] sm:$0xf] }
 0x169   :  { %2670 = vmatpush.bf16.msrb.mxu0 %v4733_v33  ;;  %v5021_v33 = vor.u32 %v5661_v25, %v5020_v24  ;;  %v5633_v24 = vld [vmem:[#allocation8 + $0x14] sm:$0xf0]  ;;  %v5052_v27 = vld [vmem:[#allocation8 + $0x130] sm:$0xf] }
 0x16a   :  { %2658 = vmatpush.bf16.msrb.mxu1 %v4589_v44  ;;  %v2431_v44 = vpop.f32.mrf.mxu3 }
 0x16b   :  { %2684 = vmatpush.bf16.msrb.mxu2 %v4845_v9  ;;  %v5641_v9 = vld [vmem:[#allocation8 + $0x54] sm:$0xf0]  ;;  %v2418_v47 = vpop.f32.mrf.mxu2  ;;  %v4958_v44 = vld [vmem:[#allocation8 + $0x78] sm:$0xf0] }
 0x16c   :  { %2646 = vmatpush.bf16.msrb.mxu3 %v4445_v17  ;;  %v4940_v17 = vld [vmem:[#allocation8 + $0x50] sm:$0xf]  ;;  %v4964_v47 = vld [vmem:[#allocation8 + $0x80] sm:$0xf]  ;;  %v4961_v53 = vor.u32 %v5644_v38, %v4958_v44  ;;  %v5652_v38 = vld [vmem:[#allocation8 + $0xb4] sm:$0xf] }
 0x16d   :  { %2671 = vmatpush.bf16.msrb.mxu0 %v4717_v50  ;;  %v4941_v50 = vor.u32 %v5641_v9, %v4940_v17  ;;  %v5044_v9 = vld [vmem:[#allocation8 + $0x120] sm:$0xf]  ;;  %v4990_v44 = vld [vmem:[#allocation8 + $0xb8] sm:$0xf0] }
 0x16e   :  { %2659 = vmatpush.bf16.msrb.mxu1 %v4573_v56  ;;  %v5639_v56 = vld [vmem:[#allocation8 + $0x44] sm:$0xf0] }
 0x16f   :  { %2685 = vmatpush.bf16.msrb.mxu2 %v4829_v59  ;;  %v4933_v59 = vor.u32 %v5639_v56, %v4932_v55  ;;  %v5660_v55 = vld [vmem:[#allocation8 + $0xf4] sm:$0xf]  ;;  %v5022_v56 = vld [vmem:[#allocation8 + $0xf8] sm:$0xf0] }
 0x170   :  { %2647 = vmatpush.bf16.msrb.mxu3 %v4429_v58  ;;  %v5675_v58 = vld [vmem:[#allocation8 + $0x164] sm:$0xf0]  ;;  %v5025_v60 = vor.u32 %v5660_v55, %v5022_v56  ;;  %v5632_v56 = vld [vmem:[#allocation8 + $0x14] sm:$0xf] }
 0x171   :  { %2672 = vmatpush.bf16.msrb.mxu0 %v4701_v34  ;;  %v5637_v34 = vld [vmem:[#allocation8 + $0x34] sm:$0xf0] }
 0x172   :  { %2660 = vmatpush.bf16.msrb.mxu1 %v4557_v8  ;;  %v4925_v19 = vor.u32 %v5637_v34, %v4924_v0  ;;  %v2378_v8 = vadd.f32 %v6318_v23, %v2365_v2  ;;  %v5014_v34 = vld [vmem:[#allocation8 + $0xe8] sm:$0xf0] }
 0x173   :  { %2686 = vmatpush.bf16.msrb.mxu2 %v4813_v13  ;;  %v5060_v13 = vld [vmem:[#allocation8 + $0x140] sm:$0xf] }
 0x174   :  { %2648 = vmatpush.bf16.msrb.mxu3 %v4413_v12  ;;  %v2391_v14 = vadd.f32 %v6325_v42, %v2378_v8  ;;  %v4909_v42 = vor.u32 %v5633_v24, %v4908_v16  ;;  %v5086_v8 = vld [vmem:[#allocation8 + $0x178] sm:$0xf0] }
 0x175   :  { %2673 = vmatpush.bf16.msrb.mxu0 %v4685_v21  ;;  %v5061_v21 = vor.u32 %v5671_v15, %v5060_v13  ;;  %v5638_v13 = vld [vmem:[#allocation8 + $0x44] sm:$0xf]  ;;  %v5656_v15 = vld [vmem:[#allocation8 + $0xd4] sm:$0xf] }
 0x176   :  { %2661 = vmatpush.bf16.msrb.mxu1 %v4541_v31  ;;  %v6343_v10 = vpop.f32.mrf.mxu1  ;;  %v2404_v23 = vadd.f32 %v6327_v48, %v2391_v14  ;;  %v4972_v31 = vld [vmem:[#allocation8 + $0x90] sm:$0xf]  ;;  %v5006_v14 = vld [vmem:[#allocation8 + $0xd8] sm:$0xf0] }
 0x177   :  { %2649 = vmatmul.bf16.vlgmr.msrb.gmra.mxu3 %v6253_v35  ;;  %2687 = vmatpush.bf16.msrb.mxu2 %v4797_v32  ;;  %v5005_v35 = vor.u32 %v5657_v52, %v5004_v51  ;;  %v5649_v32 = vld [vmem:[#allocation8 + $0x94] sm:$0xf0]  ;;  %v5045_v51 = vor.u32 %v5667_v45, %v5044_v9  ;;  %v2693_v52 = vmax.f32 %v6302_v61, 0.0  ;;  %v5658_v61 = vld [vmem:[#allocation8 + $0xe4] sm:$0xf]  ;;  %v5009_v16 = vor.u32 %v5656_v15, %v5006_v14 }
 0x178   :  { %3091 = vmatpush.bf16.msra.mxu3 %v4957_v29  ;;  %v5651_v29 = vld [vmem:[#allocation8 + $0xa4] sm:$0xf0]  ;;  %v2417_v30 = vadd.f32 %v6331_v11, %v2404_v23  ;;  %v4973_v48 = vor.u32 %v5649_v32, %v4972_v31  ;;  %v5654_v23 = vld [vmem:[#allocation8 + $0xc4] sm:$0xf]  ;;  %v4918_v9 = vld [vmem:[#allocation8 + $0x28] sm:$0xf0] }
 0x179   :  { %2674 = vmatpush.bf16.msrb.mxu0 %v4669_v40  ;;  %2662 = vmatmul.bf16.vlgmr.msrb.gmra.mxu1 %v6257_v39  ;;  %v5077_v39 = vor.u32 %v5675_v58, %v5076_v43  ;;  %v6346_v25 = vpop.f32.mrf.mxu0  ;;  %v4981_v26 = vor.u32 %v5651_v29, %v4980_v20  ;;  %v5631_v40 = vld [vmem:[#allocation8 + $0x4] sm:$0xf0]  ;;  %v4965_v43 = vor.u32 %v5647_v49, %v4964_v47  ;;  %v5036_v58 = vld [vmem:[#allocation8 + $0x110] sm:$0xf]  ;;  %v4934_v20 = vld [vmem:[#allocation8 + $0x48] sm:$0xf0] }
 0x17a   :  { %3104 = vmatpush.bf16.msra.mxu1 %v5021_v33  ;;  %4897 = vmatmul.msk.bf16.vlgmr.msrb.gmra.mxu2 %vm2156_vm1, %v6265_v5  ;;  %v5673_v5 = vld [vmem:[#allocation8 + $0x154] sm:$0xf0]  ;;  %v5053_v33 = vor.u32 %v5669_v28, %v5052_v27  ;;  %v5674_v29 = vld [vmem:[#allocation8 + $0x164] sm:$0xf]  ;;  %v4937_v24 = vor.u32 %v5638_v13, %v4934_v20  ;;  %v5636_v28 = vld [vmem:[#allocation8 + $0x34] sm:$0xf] }
 0x17b   :  { %3117 = vmatpush.bf16.msra.mxu2 %v5085_v57  ;;  %v5069_v4 = vor.u32 %v5673_v5, %v5068_v3  ;;  %v4942_v3 = vld [vmem:[#allocation8 + $0x58] sm:$0xf0]  ;;  %v5028_v5 = vld [vmem:[#allocation8 + $0x100] sm:$0xf]  ;;  %v5670_v47 = vld [vmem:[#allocation8 + $0x144] sm:$0xf] }
 0x17c   :  { %3092 = vmatpush.bf16.msra.mxu3 %v4949_v37  ;;  %2675 = vmatmul.bf16.vlgmr.msrb.gmra.mxu0 %v6267_v22  ;;  %v4988_v22 = vld [vmem:[#allocation8 + $0xb0] sm:$0xf]  ;;  %v4900_v37 = vld [vmem:[#allocation8] sm:$0xf]  ;;  %v5062_v49 = vld [vmem:[#allocation8 + $0x148] sm:$0xf0] }
 0x17d   :  { %v4989_v12 = vor.u32 %v5653_v63, %v4988_v22  ;;  %v4901_v11 = vor.u32 %v5631_v40, %v4900_v37  ;;  %v5676_v22 = vld [vmem:[#allocation8 + $0x174] sm:$0xf]  ;;  %v5070_v37 = vld [vmem:[#allocation8 + $0x158] sm:$0xf0]  ;;  %v5065_v55 = vor.u32 %v5670_v47, %v5062_v49  ;;  %v5662_v20 = vld [vmem:[#allocation8 + $0x104] sm:$0xf] }
 0x17e   :  { %3105 = vmatpush.bf16.msra.mxu1 %v5013_v46  ;;  %v6350_v41 = vpop.f32.mrf.mxu3  ;;  %v2444_v17 = vpop.f32.mrf.mxu1  ;;  %v2430_v46 = vadd.f32 %v6329_v1, %v2417_v30  ;;  %v5665_v1 = vld [vmem:[#allocation8 + $0x114] sm:$0xf0]  ;;  %v4926_v30 = vld [vmem:[#allocation8 + $0x38] sm:$0xf0] }
 0x17f   :  { %3118 = vmatpush.bf16.msra.mxu2 %v5077_v39  ;;  %v5037_v62 = vor.u32 %v5665_v1, %v5036_v58  ;;  %v6356_v39 = vpack.c.bf16 %v2693_v52, %v2693_v52  ;;  %v4929_v40 = vor.u32 %v5636_v28, %v4926_v30  ;;  %v5650_v52 = vld [vmem:[#allocation8 + $0xa4] sm:$0xf]  ;;  %v5668_v58 = vld [vmem:[#allocation8 + $0x134] sm:$0xf]  ;;  %v5038_v13 = vld [vmem:[#allocation8 + $0x118] sm:$0xf0] }
 0x180   :  { %3093 = vmatpush.bf16.msra.mxu3 %v4941_v50 }
 0x181   :  { %v6353_v50 = vpop.f32.mrf.mxu2  ;;  %v2470_v57 = vpop.f32.mrf.mxu0 }
 0x182   :  { %3106 = vmatpush.bf16.msra.mxu1 %v5005_v35  ;;  %v4950_v35 = vld [vmem:[#allocation8 + $0x68] sm:$0xf0]  ;;  %v4910_v57 = vld [vmem:[#allocation8 + $0x18] sm:$0xf0] }
 0x183   :  { %3119 = vmatpush.bf16.msra.mxu2 %v5069_v4  ;;  %v4953_v0 = vor.u32 %v5642_v36, %v4950_v35  ;;  %v5017_v4 = vor.u32 %v5658_v61, %v5014_v34  ;;  %v4913_v1 = vor.u32 %v5632_v56, %v4910_v57  ;;  %v4902_v34 = vld [vmem:[#allocation8 + $0x8] sm:$0xf0]  ;;  %v5683_v56 = vld [vmem:[#allocation8 + $0x1a4] sm:$0xf0] }
 0x184   :  { %3094 = vmatpush.bf16.msra.mxu3 %v4933_v59  ;;  %v2694_v59 = vmax.f32 %v2430_v46, 0.0 }
 0x186   :  { %3107 = vmatpush.bf16.msra.mxu1 %v4997_v54  ;;  %v2457_v2 = vpop.f32.mrf.mxu3  ;;  %v5640_v54 = vld [vmem:[#allocation8 + $0x54] sm:$0xf]  ;;  %v6359_v63 = vpack.c.bf16 %v2694_v59, %v2694_v59  ;;  %v5630_v59 = vld [vmem:[#allocation8 + $0x4] sm:$0xf] }
 0x187   :  { %3120 = vmatpush.bf16.msra.mxu2 %v5061_v21  ;;  %v5078_v21 = vld [vmem:[#allocation8 + $0x168] sm:$0xf0]  ;;  %v5666_v2 = vld [vmem:[#allocation8 + $0x124] sm:$0xf] }
 0x188   :  { %3095 = vmatpush.bf16.msra.mxu3 %v4925_v19  ;;  %v5663_v19 = vld [vmem:[#allocation8 + $0x104] sm:$0xf0]  ;;  %v5081_v27 = vor.u32 %v5674_v29, %v5078_v21  ;;  %v5030_v29 = vld [vmem:[#allocation8 + $0x108] sm:$0xf0] }
 0x189   :  { %v2483_v6 = vpop.f32.mrf.mxu2  ;;  %v5029_v7 = vor.u32 %v5663_v19, %v5028_v5  ;;  %v4905_v19 = vor.u32 %v5630_v59, %v4902_v34  ;;  %v5092_v59 = vld [vmem:[#allocation8 + $0x180] sm:$0xf]  ;;  %v5150_v34 = vld [vmem:[#allocation8 + $0x1f8] sm:$0xf0] }
 0x18a   :  { %3108 = vmatpush.bf16.msra.mxu1 %v4989_v12  ;;  %v4945_v12 = vor.u32 %v5640_v54, %v4942_v3  ;;  %v5046_v54 = vld [vmem:[#allocation8 + $0x128] sm:$0xf0] }
 0x18b   :  { %3121 = vmatpush.bf16.msra.mxu2 %v5053_v33  ;;  %v5672_v33 = vld [vmem:[#allocation8 + $0x154] sm:$0xf]  ;;  %v4966_v6 = vld [vmem:[#allocation8 + $0x88] sm:$0xf0] }
 0x18c   :  { %3096 = vmatpush.bf16.msra.mxu3 %v4917_v18  ;;  %v5089_v18 = vor.u32 %v5676_v22, %v5086_v8  ;;  %v5073_v17 = vor.u32 %v5672_v33, %v5070_v37 }
 0x18e   :  { %3109 = vmatpush.bf16.msra.mxu1 %v4981_v26  ;;  %v4998_v26 = vld [vmem:[#allocation8 + $0xc8] sm:$0xf0] }
 0x18f   :  { %3122 = vmatpush.bf16.msra.mxu2 %v5045_v51  ;;  %v5001_v32 = vor.u32 %v5654_v23, %v4998_v26  ;;  %v5693_v26 = vld [vmem:[#allocation8 + $0x1f4] sm:$0xf0] }
 0x190   :  { %3097 = vmatpush.bf16.msra.mxu3 %v4909_v42  ;;  %v6362_v42 = vld [vmem:[#allocation7] sm:$0xf] }
 0x191   :  { %v574_v31 = vperm.slane %v6362_v42, 2 }
 0x192   :  { %3110 = vmatpush.bf16.msra.mxu1 %v4973_v48  ;;  %v5634_v48 = vld [vmem:[#allocation8 + $0x24] sm:$0xf] }
 0x193   :  { %3123 = vmatpush.bf16.msra.mxu2 %v5037_v62  ;;  %v2443_v45 = vadd.f32 %v6343_v10, %v574_v31  ;;  %v4921_v51 = vor.u32 %v5634_v48, %v4918_v9  ;;  %v5054_v10 = vld [vmem:[#allocation8 + $0x138] sm:$0xf0]  ;;  %v5691_v31 = vld [vmem:[#allocation8 + $0x1e4] sm:$0xf0] }
 0x194   :  { %3098 = vmatpush.bf16.msra.mxu3 %v4901_v11  ;;  %v4993_v11 = vor.u32 %v5652_v38, %v4990_v44  ;;  %v4974_v62 = vld [vmem:[#allocation8 + $0x98] sm:$0xf0]  ;;  %v5689_v38 = vld [vmem:[#allocation8 + $0x1d4] sm:$0xf0] }
 0x195   :  { %v2456_v35 = vadd.f32 %v6350_v41, %v2443_v45  ;;  %v5687_v45 = vld [vmem:[#allocation8 + $0x1c4] sm:$0xf0] }
 0x196   :  { %3111 = vmatpush.bf16.msra.mxu1 %v4965_v43  ;;  %v2494_v46 = vpop.f32.mrf.mxu1 }
 0x197   :  { %3099 = vmatmul.bf16.vlgmr.msra.gmra.mxu3 %v6356_v39  ;;  %3124 = vmatpush.bf16.msra.mxu2 %v5029_v7  ;;  %v2469_v3 = vadd.f32 %v6346_v25, %v2456_v35  ;;  %v5049_v7 = vor.u32 %v5666_v2, %v5046_v54  ;;  %v5690_v54 = vld [vmem:[#allocation8 + $0x1e4] sm:$0xf] }
 0x198   :  { %3143 = vmatpush.bf16.msrb.mxu3 %v4961_v53  ;;  %v4982_v53 = vld [vmem:[#allocation8 + $0xa8] sm:$0xf0] }
 0x199   :  { %3112 = vmatmul.bf16.vlgmr.msra.gmra.mxu1 %v6359_v63  ;;  %v2520_v36 = vpop.f32.mrf.mxu0  ;;  %v4985_v43 = vor.u32 %v5650_v52, %v4982_v53  ;;  %v2482_v15 = vadd.f32 %v6353_v50, %v2469_v3  ;;  %v5148_v50 = vld [vmem:[#allocation8 + $0x1f0] sm:$0xf]  ;;  %v5685_v52 = vld [vmem:[#allocation8 + $0x1b4] sm:$0xf0]  ;;  %v5142_v3 = vld [vmem:[#allocation8 + $0x1e8] sm:$0xf0] }
 0x19a   :  { %3156 = vmatpush.bf16.msrb.mxu1 %v5025_v60  ;;  %v5648_v60 = vld [vmem:[#allocation8 + $0x94] sm:$0xf]  ;;  %v5149_v30 = vor.u32 %v5693_v26, %v5148_v50  ;;  %v5110_v50 = vld [vmem:[#allocation8 + $0x1a8] sm:$0xf0] }
 0x19b   :  { %3169 = vmatpush.bf16.msrb.mxu2 %v5089_v18  ;;  %v4977_v41 = vor.u32 %v5648_v60, %v4974_v62  ;;  %v2495_v21 = vadd.f32 %v2494_v46, %v2482_v15  ;;  %v5679_v60 = vld [vmem:[#allocation8 + $0x184] sm:$0xf0] }
 0x19c   :  { %3144 = vmatpush.bf16.msrb.mxu3 %v4953_v0  ;;  %v5057_v0 = vor.u32 %v5668_v58, %v5054_v10  ;;  %3130 = vmatpush.bf16.msra.mxu0 %v5149_v30  ;;  %v5100_v58 = vld [vmem:[#allocation8 + $0x190] sm:$0xf]  ;;  %v5681_v10 = vld [vmem:[#allocation8 + $0x194] sm:$0xf0]  ;;  %v5102_v30 = vld [vmem:[#allocation8 + $0x198] sm:$0xf0] }
 0x19e   :  { %3157 = vmatpush.bf16.msrb.mxu1 %v5017_v4  ;;  %v2507_v61 = vpop.f32.mrf.mxu3  ;;  %v2496_v5 = vpop.f32.mrf.mxu1  ;;  %v5646_v4 = vld [vmem:[#allocation8 + $0x84] sm:$0xf] }
 0x19f   :  { %3170 = vmatpush.bf16.msrb.mxu2 %v5081_v27  ;;  %v4969_v14 = vor.u32 %v5646_v4, %v4966_v6  ;;  %v2508_v23 = vadd.f32 %v2507_v61, %v2495_v21  ;;  %v5140_v27 = vld [vmem:[#allocation8 + $0x1e0] sm:$0xf]  ;;  %v5692_v61 = vld [vmem:[#allocation8 + $0x1f4] sm:$0xf]  ;;  %v5134_v4 = vld [vmem:[#allocation8 + $0x1d8] sm:$0xf0] }
 0x1a0   :  { %3145 = vmatpush.bf16.msrb.mxu3 %v4945_v12  ;;  %v5664_v12 = vld [vmem:[#allocation8 + $0x114] sm:$0xf]  ;;  %v5153_v2 = vor.u32 %v5692_v61, %v5150_v34  ;;  %v5118_v21 = vld [vmem:[#allocation8 + $0x1b8] sm:$0xf0] }
 0x1a1   :  { %v2533_v22 = vpop.f32.mrf.mxu2  ;;  %v2522_v8 = vpop.f32.mrf.mxu0  ;;  %v5041_v25 = vor.u32 %v5664_v12, %v5038_v13  ;;  %v2521_v28 = vadd.f32 %v2520_v36, %v2508_v23  ;;  %v5686_v12 = vld [vmem:[#allocation8 + $0x1c4] sm:$0xf]  ;;  %v5126_v13 = vld [vmem:[#allocation8 + $0x1c8] sm:$0xf0] }
 0x1a2   :  { %3158 = vmatpush.bf16.msrb.mxu1 %v5009_v16  ;;  %v575_v8 = vperm.slane %v6362_v42, 3  ;;  %v5682_v23 = vld [vmem:[#allocation8 + $0x1a4] sm:$0xf] }
 0x1a3   :  { %3171 = vmatpush.bf16.msrb.mxu2 %v5073_v17  ;;  %v2534_v33 = vadd.f32 %v2533_v22, %v2521_v28  ;;  %v5688_v22 = vld [vmem:[#allocation8 + $0x1d4] sm:$0xf]  ;;  %v5113_v26 = vor.u32 %v5682_v23, %v5110_v50  ;;  %v5717_v23 = vld [vmem:[#allocation14 + $0x38] sm:$0xff] }
 0x1a4   :  { %3146 = vmatpush.bf16.msrb.mxu3 %v4937_v24  ;;  %v5033_v24 = vor.u32 %v5662_v20, %v5030_v29  ;;  %v5137_v6 = vor.u32 %v5688_v22, %v5134_v4  ;;  %v5684_v29 = vld [vmem:[#allocation8 + $0x1b4] sm:$0xf]  ;;  %v5699_v22 = vld [vmem:[#allocation11 + $0x28] sm:$0xff] }
 0x1a5   :  { %v5680_v28 = vld [vmem:[#allocation8 + $0x194] sm:$0xf] }
 0x1a6   :  { %3159 = vmatpush.bf16.msrb.mxu1 %v5001_v32  ;;  %v2509_v18 = vpop.f32.mrf.mxu3  ;;  %v5141_v32 = vor.u32 %v5691_v31, %v5140_v27  ;;  %v5105_v42 = vor.u32 %v5680_v28, %v5102_v30  ;;  %v5716_v50 = vld [vmem:[#allocation14 + $0x30] sm:$0xff] }
 0x1a7   :  { %3172 = vmatpush.bf16.msrb.mxu2 %v5065_v55  ;;  %v5108_v55 = vld [vmem:[#allocation8 + $0x1a0] sm:$0xf] }
 0x1a8   :  { %3147 = vmatpush.bf16.msrb.mxu3 %v4929_v40  ;;  %3131 = vmatpush.bf16.msra.mxu0 %v5141_v32 }
 0x1a9   :  { %v2535_v16 = vpop.f32.mrf.mxu2 }
 0x1aa   :  { %3160 = vmatpush.bf16.msrb.mxu1 %v4993_v11  ;;  %v5121_v16 = vor.u32 %v5684_v29, %v5118_v21  ;;  %v5705_v29 = vld [vmem:[#allocation11 + $0x58] sm:$0xff]  ;;  %v5704_v21 = vld [vmem:[#allocation11 + $0x50] sm:$0xff] }
 0x1ab   :  { %3173 = vmatpush.bf16.msrb.mxu2 %v5057_v0  ;;  %v5093_v0 = vor.u32 %v5679_v60, %v5092_v59 }
 0x1ac   :  { %3148 = vmatpush.bf16.msrb.mxu3 %v4921_v51  ;;  %v5116_v51 = vld [vmem:[#allocation8 + $0x1b0] sm:$0xf] }
 0x1ad   :  { %v5117_v53 = vor.u32 %v5685_v52, %v5116_v51 }
 0x1ae   :  { %3161 = vmatpush.bf16.msrb.mxu1 %v4985_v43  ;;  %v5109_v43 = vor.u32 %v5683_v56, %v5108_v55 }
 0x1af   :  { %3174 = vmatpush.bf16.msrb.mxu2 %v5049_v7 }
 0x1b0   :  { %3149 = vmatpush.bf16.msrb.mxu3 %v4913_v1  ;;  %v5101_v1 = vor.u32 %v5681_v10, %v5100_v58 }
 0x1b2   :  { %3162 = vmatpush.bf16.msrb.mxu1 %v4977_v41  ;;  %v5145_v41 = vor.u32 %v5690_v54, %v5142_v3  ;;  %v5701_v3 = vld [vmem:[#allocation11 + $0x38] sm:$0xff] }
 0x1b3   :  { %3175 = vmatpush.bf16.msrb.mxu2 %v5041_v25 }
 0x1b4   :  { %3150 = vmatpush.bf16.msrb.mxu3 %v4905_v19 }
 0x1b6   :  { %3163 = vmatpush.bf16.msrb.mxu1 %v4969_v14  ;;  %v2546_v37 = vpop.f32.mrf.mxu1  ;;  %v5129_v14 = vor.u32 %v5686_v12, %v5126_v13  ;;  %v5696_v12 = vld [vmem:[#allocation11 + $0x10] sm:$0xff] }
 0x1b7   :  { %3151 = vmatmul.bf16.vlgmr.msrb.gmra.mxu3 %v6356_v39  ;;  %3176 = vmatpush.bf16.msrb.mxu2 %v5033_v24  ;;  %v2547_v40 = vadd.f32 %v2546_v37, %v2534_v33  ;;  %v5132_v39 = vld [vmem:[#allocation8 + $0x1d0] sm:$0xf]  ;;  %v5678_v33 = vld [vmem:[#allocation8 + $0x184] sm:$0xf]  ;;  %v5094_v37 = vld [vmem:[#allocation8 + $0x188] sm:$0xf0] }
 0x1b8   :  { %v5133_v44 = vor.u32 %v5689_v38, %v5132_v39  ;;  %3331 = vmatpush.bf16.msra.mxu3 %v5701_v3 }
 0x1b9   :  { %3164 = vmatmul.bf16.vlgmr.msrb.gmra.mxu1 %v6359_v63  ;;  %v2572_v9 = vpop.f32.mrf.mxu0  ;;  %v5124_v63 = vld [vmem:[#allocation8 + $0x1c0] sm:$0xf] }
 0x1ba   :  { %v2559_v17 = vpop.f32.mrf.mxu3  ;;  %3132 = vmatpush.bf16.msra.mxu0 %v5133_v44  ;;  %v5125_v11 = vor.u32 %v5687_v45, %v5124_v63  ;;  %v2573_v25 = vadd.f32 %v2572_v9, %v575_v8 }
 0x1bb   :  { %v2560_v48 = vadd.f32 %v2559_v17, %v2547_v40  ;;  %v5097_v40 = vor.u32 %v5678_v33, %v5094_v37 }
 0x1bd   :  { %v2695_v46 = vmax.f32 %v2560_v48, 0.0 }
 0x1be   :  { %v2548_v49 = vpop.f32.mrf.mxu1  ;;  %3133 = vmatpush.bf16.msra.mxu0 %v5125_v11 }
 0x1bf   :  { %v2699_v47 = vpack.c.bf16 %v2695_v46, %v2695_v46 }
 0x1c1   :  { %3125 = vmatmul.bf16.vlgmr.msra.gmra.mxu2 %v2699_v47  ;;  %v2585_v57 = vpop.f32.mrf.mxu2  ;;  %v2574_v35 = vpop.f32.mrf.mxu0 }
 0x1c2   :  { %v2561_v36 = vpop.f32.mrf.mxu3  ;;  %3134 = vmatpush.bf16.msra.mxu0 %v5117_v53  ;;  %v2586_v27 = vadd.f32 %v2585_v57, %v2573_v25  ;;  %v2765_v57 = vld [vmem:[#allocation10] sm:$0x3]  ;;  %v5707_v25 = vld [vmem:[#allocation11 + $0x68] sm:$0xff]  ;;  %3427 = vmatpush.bf16.msra.mxu2 %v5717_v23 }
 0x1c3   :  { %v2767_v35 = vperm.slane %v2765_v57, 0 }
 0x1c6   :  { %3135 = vmatpush.bf16.msra.mxu0 %v5109_v43  ;;  %3428 = vmatpush.bf16.msra.mxu2 %v5716_v50 }
 0x1c9   :  { %v2587_v62 = vpop.f32.mrf.mxu2 }
 0x1ca   :  { %3136 = vmatpush.bf16.msra.mxu0 %v5101_v1  ;;  %v2768_v62 = vperm.slane %v2765_v57, 1 }
 0x1ce   :  { %3137 = vmatpush.bf16.msra.mxu0 %v5093_v0 }
 0x1d1   :  { %3177 = vmatmul.bf16.vlgmr.msrb.gmra.mxu2 %v2699_v47 }
 0x1d2   :  { %3182 = vmatpush.bf16.msrb.mxu0 %v5153_v2 }
 0x1d6   :  { %v2611_v5 = vpop.f32.mrf.mxu1  ;;  %3183 = vmatpush.bf16.msrb.mxu0 %v5145_v41  ;;  %v5700_v41 = vld [vmem:[#allocation11 + $0x30] sm:$0xff] }
 0x1d7   :  { %3332 = vmatpush.bf16.msra.mxu3 %v5700_v41 }
 0x1d9   :  { %v2624_v7 = vpop.f32.mrf.mxu0 }
 0x1da   :  { %v2598_v19 = vpop.f32.mrf.mxu3  ;;  %3184 = vmatpush.bf16.msrb.mxu0 %v5137_v6  ;;  %v5698_v6 = vld [vmem:[#allocation11 + $0x20] sm:$0xff] }
 0x1db   :  { %v2599_v31 = vadd.f32 %v2598_v19, %v2586_v27  ;;  %v5708_v19 = vld [vmem:[#allocation11 + $0x70] sm:$0xff]  ;;  %3333 = vmatpush.bf16.msra.mxu3 %v5699_v22 }
 0x1dd   :  { %v2612_v39 = vadd.f32 %v2611_v5, %v2599_v31  ;;  %v5709_v5 = vld [vmem:[#allocation11 + $0x78] sm:$0xff] }
 0x1de   :  { %v2613_v15 = vpop.f32.mrf.mxu1  ;;  %3185 = vmatpush.bf16.msrb.mxu0 %v5129_v14  ;;  %3344 = vmatpush.bf16.msra.mxu1 %v5709_v5  ;;  %v5695_v14 = vld [vmem:[#allocation11 + $0x8] sm:$0xff] }
 0x1df   :  { %v2625_v38 = vadd.f32 %v2624_v7, %v2612_v39  ;;  %3334 = vmatpush.bf16.msra.mxu3 %v5698_v6  ;;  %v5697_v7 = vld [vmem:[#allocation11 + $0x18] sm:$0xff]  ;;  %v5726_v6 = vld [vmem:[#allocation20] sm:$0xff] }
 0x1e1   :  { %v2637_v18 = vpop.f32.mrf.mxu2  ;;  %v2626_v24 = vpop.f32.mrf.mxu0 }
 0x1e2   :  { %v2600_v20 = vpop.f32.mrf.mxu3  ;;  %3186 = vmatpush.bf16.msrb.mxu0 %v5121_v16  ;;  %v2638_v17 = vadd.f32 %v2637_v18, %v2625_v38  ;;  %3345 = vmatpush.bf16.msra.mxu1 %v5708_v19  ;;  %v5694_v18 = vld [vmem:[#allocation11] sm:$0xff]  ;;  %v5703_v16 = vld [vmem:[#allocation11 + $0x48] sm:$0xff] }
 0x1e3   :  { %3335 = vmatpush.bf16.msra.mxu3 %v5697_v7  ;;  %v5706_v20 = vld [vmem:[#allocation11 + $0x60] sm:$0xff] }
 0x1e4   :  { %v5702_v24 = vld [vmem:[#allocation11 + $0x40] sm:$0xff] }
 0x1e5   :  { %v5756_v7 = vld [vmem:[#allocation19] ss:$0 sm:$0xff] }
 0x1e6   :  { %3187 = vmatpush.bf16.msrb.mxu0 %v5113_v26  ;;  %3346 = vmatpush.bf16.msra.mxu1 %v5707_v25  ;;  %v5715_v26 = vld [vmem:[#allocation14 + $0x28] sm:$0xff]  ;;  %v5757_v25 = vld [vmem:[#allocation22] ss:$0 sm:$0xff] }
 0x1e7   :  { %3336 = vmatpush.bf16.msra.mxu3 %v5696_v12  ;;  %3429 = vmatpush.bf16.msra.mxu2 %v5715_v26 }
 0x1e9   :  { %v2639_v32 = vpop.f32.mrf.mxu2 }
 0x1ea   :  { %3188 = vmatpush.bf16.msrb.mxu0 %v5105_v42  ;;  %3347 = vmatpush.bf16.msra.mxu1 %v5706_v20  ;;  %v5714_v42 = vld [vmem:[#allocation14 + $0x20] sm:$0xff] }
 0x1eb   :  { %3337 = vmatpush.bf16.msra.mxu3 %v5695_v14  ;;  %3430 = vmatpush.bf16.msra.mxu2 %v5714_v42 }
 0x1ee   :  { %3189 = vmatpush.bf16.msrb.mxu0 %v5097_v40  ;;  %3348 = vmatpush.bf16.msra.mxu1 %v5705_v29 }
 0x1ef   :  { %3338 = vmatpush.bf16.msra.mxu3 %v5694_v18 }
 0x1f2   :  { %3349 = vmatpush.bf16.msra.mxu1 %v5704_v21 }
 0x1f6   :  { %v2663_v44 = vpop.f32.mrf.mxu1  ;;  %3350 = vmatpush.bf16.msra.mxu1 %v5703_v16 }
 0x1f9   :  { %v2676_v48 = vpop.f32.mrf.mxu0 }
 0x1fa   :  { %v2650_v9 = vpop.f32.mrf.mxu3  ;;  %3351 = vmatpush.bf16.msra.mxu1 %v5702_v24 }
 0x1fb   :  { %v2651_v63 = vadd.f32 %v2650_v9, %v2638_v17  ;;  %v5712_v9 = vld [vmem:[#allocation14 + $0x10] sm:$0xff] }
 0x1fd   :  { %v2664_v45 = vadd.f32 %v2663_v44, %v2651_v63  ;;  %v2689_v46 = vpop.f32.mrf.mxu2  ;;  %v5711_v63 = vld [vmem:[#allocation14 + $0x8] sm:$0xff] }
 0x1fe   :  { %v2665_v47 = vpop.f32.mrf.mxu1 }
 0x1ff   :  { %v2677_v11 = vadd.f32 %v2676_v48, %v2664_v45  ;;  %v5713_v48 = vld [vmem:[#allocation14 + $0x18] sm:$0xff]  ;;  %v5710_v45 = vld [vmem:[#allocation14] sm:$0xff]  ;;  %v5723_v47 = vld [vmem:[#allocation17 + $0x28] sm:$0xff] }
 0x200   :  { %3431 = vmatpush.bf16.msra.mxu2 %v5713_v48 }
 0x201   :  { %v2690_v49 = vadd.f32 %v2689_v46, %v2677_v11  ;;  %v2678_v51 = vpop.f32.mrf.mxu0  ;;  %v5725_v46 = vld [vmem:[#allocation17 + $0x38] sm:$0xff]  ;;  %v5724_v11 = vld [vmem:[#allocation17 + $0x30] sm:$0xff] }
 0x202   :  { %v2652_v52 = vpop.f32.mrf.mxu3 }
 0x203   :  { %v2696_v53 = vmax.f32 %v2690_v49, 0.0  ;;  %v5722_v49 = vld [vmem:[#allocation17 + $0x20] sm:$0xff]  ;;  %v5721_v52 = vld [vmem:[#allocation17 + $0x18] sm:$0xff] }
 0x204   :  { %3432 = vmatpush.bf16.msra.mxu2 %v5712_v9 }
 0x205   :  { %v2700_v55 = vpack.c.bf16 %v2696_v53, %v2696_v53  ;;  %v2691_v56 = vpop.f32.mrf.mxu2  ;;  %v5720_v53 = vld [vmem:[#allocation17 + $0x10] sm:$0xff] }
 0x207   :  { %3138 = vmatmul.bf16.vlgmr.msra.gmra.mxu0 %v2700_v55 }
 0x208   :  { %3433 = vmatpush.bf16.msra.mxu2 %v5711_v63  ;;  %3510 = vmatpush.bf16.msra.mxu0 %v5725_v46 }
 0x20c   :  { %3434 = vmatpush.bf16.msra.mxu2 %v5710_v45  ;;  %3511 = vmatpush.bf16.msra.mxu0 %v5724_v11 }
 0x210   :  { %3512 = vmatpush.bf16.msra.mxu0 %v5723_v47 }
 0x214   :  { %3513 = vmatpush.bf16.msra.mxu0 %v5722_v49 }
 0x216   :  { %v3113_v36 = vpop.f32.mrf.mxu1 }
 0x217   :  { %3190 = vmatmul.bf16.vlgmr.msrb.gmra.mxu0 %v2700_v55  ;;  %v5754_v55 = vld [vmem:[#allocation13] ss:$0 sm:$0xff] }
 0x218   :  { %3514 = vmatpush.bf16.msra.mxu0 %v5721_v52 }
 0x21a   :  { %v3100_v43 = vpop.f32.mrf.mxu3 }
 0x21b   :  { %v3101_v58 = vadd.f32 %v3100_v43, %v2767_v35 }
 0x21c   :  { %3515 = vmatpush.bf16.msra.mxu0 %v5720_v53 }
 0x21d   :  { %v3114_v10 = vadd.f32 %v3113_v36, %v3101_v58 }
 0x21e   :  { %v3115_v1 = vpop.f32.mrf.mxu1 }
 0x21f   :  { %v5719_v1 = vld [vmem:[#allocation17 + $0x8] sm:$0xff] }
 0x220   :  { %3516 = vmatpush.bf16.msra.mxu0 %v5719_v1 }
 0x222   :  { %v3102_v59 = vpop.f32.mrf.mxu3 }
 0x223   :  { %v5718_v59 = vld [vmem:[#allocation17] sm:$0xff] }
 0x224   :  { %3517 = vmatpush.bf16.msra.mxu0 %v5718_v59 }
 0x236   :  { %v3165_v60 = vpop.f32.mrf.mxu1 }
 0x23a   :  { %v3152_v0 = vpop.f32.mrf.mxu3 }
 0x23b   :  { %v3153_v61 = vadd.f32 %v3152_v0, %v2768_v62  ;;  %v5732_v62 = vld [vmem:[#allocation20 + $0x30] sm:$0xff]  ;;  %v5731_v0 = vld [vmem:[#allocation20 + $0x28] sm:$0xff] }
 0x23d   :  { %v3166_v34 = vadd.f32 %v3165_v60, %v3153_v61  ;;  %v5733_v60 = vld [vmem:[#allocation20 + $0x38] sm:$0xff]  ;;  %v5730_v61 = vld [vmem:[#allocation20 + $0x20] sm:$0xff] }
 0x23e   :  { %v3167_v2 = vpop.f32.mrf.mxu1  ;;  %3593 = vmatpush.bf16.msrb.mxu3 %v5733_v60 }
 0x23f   :  { %v5728_v2 = vld [vmem:[#allocation20 + $0x10] sm:$0xff] }
 0x242   :  { %v3154_v54 = vpop.f32.mrf.mxu3  ;;  %3594 = vmatpush.bf16.msrb.mxu3 %v5732_v62 }
 0x243   :  { %v5755_v54 = vld [vmem:[#allocation16] ss:$0 sm:$0xff] }
 0x244   :  { %v3126_v4 = vpop.f32.mrf.mxu2 }
 0x245   :  { %v3127_v27 = vadd.f32 %v3126_v4, %v3114_v10  ;;  %v5727_v4 = vld [vmem:[#allocation20 + $0x8] sm:$0xff] }
 0x246   :  { %3595 = vmatpush.bf16.msrb.mxu3 %v5731_v0 }
 0x24a   :  { %3596 = vmatpush.bf16.msrb.mxu3 %v5730_v61 }
 0x24c   :  { %v3128_v8 = vpop.f32.mrf.mxu2 }
 0x254   :  { %v3178_v13 = vpop.f32.mrf.mxu2 }
 0x255   :  { %v3179_v37 = vadd.f32 %v3178_v13, %v3166_v34  ;;  %v5729_v34 = vld [vmem:[#allocation20 + $0x18] sm:$0xff] }
 0x256   :  { %3597 = vmatpush.bf16.msrb.mxu3 %v5729_v34 }
 0x25a   :  { %3598 = vmatpush.bf16.msrb.mxu3 %v5728_v2 }
 0x25c   :  { %v3180_v15 = vpop.f32.mrf.mxu2 }
 0x25e   :  { %3599 = vmatpush.bf16.msrb.mxu3 %v5727_v4 }
 0x262   :  { %3600 = vmatpush.bf16.msrb.mxu3 %v5726_v6 }
 0x284   :  { %v3139_v28 = vpop.f32.mrf.mxu0 }
 0x285   :  { %v3140_v30 = vadd.f32 %v3139_v28, %v3127_v27 }
 0x287   :  { %v3195_v31 = vmax.f32 %v3140_v30, 0.0 }
 0x289   :  { %v3197_v32 = vpack.c.bf16 %v3195_v31, %v3195_v31 }
 0x28b   :  { %3339 = vmatmul.bf16.vlgmr.msra.gmra.mxu3 %v3197_v32 }
 0x28c   :  { %v3141_v33 = vpop.f32.mrf.mxu0 }
 0x294   :  { %v3191_v40 = vpop.f32.mrf.mxu0 }
 0x295   :  { %v3192_v39 = vadd.f32 %v3191_v40, %v3179_v37 }
 0x297   :  { %v3196_v38 = vmax.f32 %v3192_v39, 0.0 }
 0x299   :  { %v3198_v44 = vpack.c.bf16 %v3196_v38, %v3196_v38 }
 0x29b   :  { %3352 = vmatmul.bf16.vlgmr.msra.gmra.mxu1 %v3198_v44 }
 0x29c   :  { %v3193_v17 = vpop.f32.mrf.mxu0 }
 0x30e   :  { %v3340_v51 = vpop.f32.mrf.mxu3 }
 0x30f   :  { %v3341_v57 = vadd.f32 %v5754_v55, %v3340_v51 }
 0x316   :  { %v3342_v56 = vpop.f32.mrf.mxu3 }
 0x318   :  { %v3353_v36 = vpop.f32.mrf.mxu1 }
 0x319   :  { %v3354_v35 = vadd.f32 %v3353_v36, %v3341_v57 }
 0x31b   :  { %v3357_v43 = vmax.f32 %v3354_v35, 0.0 }
 0x31d   :  { %v3358_v58 = vpack.c.bf16 %v3357_v43, %v3357_v43 }
 0x31f   :  { %3435 = vmatmul.bf16.vlgmr.msra.gmra.mxu2 %v3358_v58 }
 0x320   :  { %v3355_v10 = vpop.f32.mrf.mxu1 }
 0x3a2   :  { %v3436_v3 = vpop.f32.mrf.mxu2 }
 0x3a3   :  { %v3437_v5 = vadd.f32 %v5755_v54, %v3436_v3 }
 0x3a5   :  { %v3440_v41 = vmax.f32 %v3437_v5, 0.0 }
 0x3a7   :  { %v3441_v19 = vpack.c.bf16 %v3440_v41, %v3440_v41 }
 0x3a9   :  { %3518 = vmatmul.bf16.vlgmr.msra.gmra.mxu0 %v3441_v19 }
 0x3aa   :  { %v3438_v22 = vpop.f32.mrf.mxu2 }
 0x426   :  { %v3519_v8 = vpop.f32.mrf.mxu0 }
 0x427   :  { %v3520_v12 = vadd.f32 %v5756_v7, %v3519_v8 }
 0x429   :  { %v3523_v13 = vmax.f32 %v3520_v12, 0.0 }
 0x42b   :  { %v3524_v15 = vpack.c.bf16 %v3523_v13, %v3523_v13 }
 0x42d   :  { %3601 = vmatmul.bf16.vlgmr.msrb.gmra.mxu3 %v3524_v15 }
 0x42e   :  { %v3521_v14 = vpop.f32.mrf.mxu0 }
 0x4b0   :  { %v3602_v18 = vpop.f32.mrf.mxu3 }
 0x4b1   :  { %v3603_v20 = vadd.f32 %v5757_v25, %v3602_v18 }
 0x4b3   :  { %3606 = vst [vmem:[#allocation23] sm:$0xff] %v3603_v20 }
 0x4b4   :  { %3617 = dma.vmem_to_hbm [thread:$0]  %s3613_s12, 128, %s3615_s30, [#allocation4]  }
 0x4b8   :  { %v3604_v29 = vpop.f32.mrf.mxu3 }
 0x4b9   :  { %6109 = dma.done.wait [#allocation4], 128  }
 0x4ba   :  { %6110 = vsyncadd [#allocation4], 4294967168 }
 0x4bb   :  { %3622 = vsyncpa [#allocation3], 1 }
 0x4bc   :  { %3623 = vsyncpa [#allocation6], 1 }
 0x4bd   :  { %3624 = vsyncpa [#allocation9], 1 }
 0x4be   :  { %3625 = vsyncpa [#allocation12], 1 }
 0x4bf   :  { %3626 = vsyncpa [#allocation15], 1 }
 0x4c0   :  { %3627 = vsyncpa [#allocation18], 1 }
 0x4c1   :  { %3628 = vsyncpa [#allocation21], 1 }
 0x4c2   :  { %3629 = vsyncpa [#allocation4], 1 }

</bundles_post_ra>
